<compile_context>
chip_gen: v7x
topology: tpu7x:2x2x1
jax: 0.10.0
libtpu: 0.0.40
codegen_flags: <defaults>
</compile_context>

<pallas_src>
import functools

import jax
import jax.numpy as jnp
from jax.experimental import pallas as pl
from jax.experimental.pallas import tpu as pltpu


_VMEM_LIMIT = 32 * 1024 * 1024   # generous vs ~1-3 MB tile footprint; safe on v5e/v6e/v7x
_NEG_SLOPE = 0.2
_BN_EPS = 1e-5
_TM_TARGET = 256                 # M-tile (multiple of 16 for bf16 sublane packing)
_TK_TARGET = 512                 # K-tile (multiple of 128 lanes)


def _round_up(x, m):
    return ((x + m - 1) // m) * m


def _choose_m_tiling(m):
    tm = min(_TM_TARGET, _round_up(m, 16))
    return _round_up(m, tm), tm


def _choose_k_tiling(k):
    kp = _round_up(k, 128)               # lane-dense K padding
    if kp <= _TK_TARGET:
        return kp, kp
    kp = _round_up(k, _TK_TARGET)
    return kp, _TK_TARGET


def _pad2d(a, rows, cols):
    pr, pc = rows - a.shape[0], cols - a.shape[1]
    if pr == 0 and pc == 0:
        return a
    return jnp.pad(a, ((0, pr), (0, pc)))


def _lrelu(y):
    return jnp.where(y > 0, y, _NEG_SLOPE * y)


# ----------------------------------------------------------------------------
# Pallas kernels
# ----------------------------------------------------------------------------
def _conv_bias_act_kernel(x_ref, w_ref, b_ref, o_ref, acc_ref, *, use_lrelu):
    """Tiled matmul + bias [+ LeakyReLU].  Grid = (M tiles, K tiles)."""
    k = pl.program_id(1)

    @pl.when(k == 0)
    def _():
        acc_ref[...] = jnp.zeros_like(acc_ref)

    acc_ref[...] += jnp.dot(x_ref[...], w_ref[...],
                            preferred_element_type=jnp.float32)

    @pl.when(k == pl.num_programs(1) - 1)
    def _():
        y = acc_ref[...] + b_ref[...]
        if use_lrelu:
            y = _lrelu(y)
        o_ref[...] = y.astype(o_ref.dtype)


def _conv_stats_kernel(x_ref, w_ref, o_ref, sum_ref, sq_ref, acc_ref):
    """Tiled matmul (no bias: absorbed by BN) emitting the raw conv output
    plus per-M-tile per-channel sum / sum-of-squares (f32, from the f32
    accumulator) for the two-phase batch-stat BatchNorm."""
    k = pl.program_id(1)

    @pl.when(k == 0)
    def _():
        acc_ref[...] = jnp.zeros_like(acc_ref)

    acc_ref[...] += jnp.dot(x_ref[...], w_ref[...],
                            preferred_element_type=jnp.float32)

    @pl.when(k == pl.num_programs(1) - 1)
    def _():
        y = acc_ref[...]
        o_ref[...] = y.astype(o_ref.dtype)
        s = jnp.sum(y, axis=0, keepdims=True)        # (1, C), XLU reduce
        q = jnp.sum(y * y, axis=0, keepdims=True)    # (1, C)
        sum_ref[...] = jnp.broadcast_to(s, sum_ref.shape)
        sq_ref[...] = jnp.broadcast_to(q, sq_ref.shape)


def _scale_shift_lrelu_kernel(x_ref, s_ref, t_ref, o_ref):
    """Phase-2 BatchNorm: per-channel scale/shift + LeakyReLU, f32 math."""
    y = x_ref[...].astype(jnp.float32) * s_ref[...] + t_ref[...]
    o_ref[...] = _lrelu(y).astype(o_ref.dtype)


# ----------------------------------------------------------------------------
# Pallas wrappers
# ----------------------------------------------------------------------------
def conv_bias_act(cols, w2d, bias, *, use_lrelu, out_dtype):
    """cols: (M, K) im2col patches, w2d: (K, C). Returns (M_pad, C)."""
    M, K = cols.shape
    C = w2d.shape[1]
    M_pad, tm = _choose_m_tiling(M)
    K_pad, tk = _choose_k_tiling(K)
    x = _pad2d(cols, M_pad, K_pad).astype(jnp.bfloat16)
    w = _pad2d(w2d, K_pad, C).astype(jnp.bfloat16)
    b = bias.reshape(1, C).astype(jnp.float32)
    grid = (M_pad // tm, K_pad // tk)
    kernel = functools.partial(_conv_bias_act_kernel, use_lrelu=use_lrelu)
    return pl.pallas_call(
        kernel,
        out_shape=jax.ShapeDtypeStruct((M_pad, C), out_dtype),
        grid=grid,
        in_specs=[
            pl.BlockSpec((tm, tk), lambda i, k: (i, k)),
            pl.BlockSpec((tk, C), lambda i, k: (k, 0)),
            pl.BlockSpec((1, C), lambda i, k: (0, 0)),
        ],
        out_specs=pl.BlockSpec((tm, C), lambda i, k: (i, 0)),
        scratch_shapes=[pltpu.VMEM((tm, C), jnp.float32)],
        compiler_params=pltpu.CompilerParams(
            dimension_semantics=("parallel", "arbitrary"),
            vmem_limit_bytes=_VMEM_LIMIT),
    )(x, w, b)


def conv_bn_stats(cols, w2d):
    """Phase-1 of a BN block: raw conv output (bf16) + per-channel sums.

    Zero-padded M rows / K columns contribute exactly zero to the sums, so the
    statistics stay exact; the caller divides by the true M."""
    M, K = cols.shape
    C = w2d.shape[1]
    M_pad, tm = _choose_m_tiling(M)
    K_pad, tk = _choose_k_tiling(K)
    x = _pad2d(cols, M_pad, K_pad).astype(jnp.bfloat16)
    w = _pad2d(w2d, K_pad, C).astype(jnp.bfloat16)
    Mt = M_pad // tm
    grid = (Mt, K_pad // tk)
    y, s_tiles, q_tiles = pl.pallas_call(
        _conv_stats_kernel,
        out_shape=(
            jax.ShapeDtypeStruct((M_pad, C), jnp.bfloat16),
            jax.ShapeDtypeStruct((Mt * 8, C), jnp.float32),
            jax.ShapeDtypeStruct((Mt * 8, C), jnp.float32),
        ),
        grid=grid,
        in_specs=[
            pl.BlockSpec((tm, tk), lambda i, k: (i, k)),
            pl.BlockSpec((tk, C), lambda i, k: (k, 0)),
        ],
        out_specs=(
            pl.BlockSpec((tm, C), lambda i, k: (i, 0)),
            pl.BlockSpec((8, C), lambda i, k: (i, 0)),
            pl.BlockSpec((8, C), lambda i, k: (i, 0)),
        ),
        scratch_shapes=[pltpu.VMEM((tm, C), jnp.float32)],
        compiler_params=pltpu.CompilerParams(
            dimension_semantics=("parallel", "arbitrary"),
            vmem_limit_bytes=_VMEM_LIMIT),
    )(x, w)
    # Tiny cross-tile reduction (Mt x C floats) done as plain-JAX glue.
    ssum = s_tiles.reshape(Mt, 8, C)[:, 0, :].sum(axis=0)
    ssq = q_tiles.reshape(Mt, 8, C)[:, 0, :].sum(axis=0)
    return y, ssum, ssq


def bn_lrelu_apply(y_raw, scale, shift):
    """Phase-2 of a BN block: y*scale + shift, LeakyReLU, bf16 writeback."""
    M_pad, C = y_raw.shape
    _, tm = _choose_m_tiling(M_pad)
    grid = (M_pad // tm,)
    return pl.pallas_call(
        _scale_shift_lrelu_kernel,
        out_shape=jax.ShapeDtypeStruct((M_pad, C), jnp.bfloat16),
        grid=grid,
        in_specs=[
            pl.BlockSpec((tm, C), lambda i: (i, 0)),
            pl.BlockSpec((1, C), lambda i: (0, 0)),
            pl.BlockSpec((1, C), lambda i: (0, 0)),
        ],
        out_specs=pl.BlockSpec((tm, C), lambda i: (i, 0)),
        compiler_params=pltpu.CompilerParams(
            dimension_semantics=("parallel",),
            vmem_limit_bytes=_VMEM_LIMIT),
    )(y_raw,
      scale.reshape(1, C).astype(jnp.float32),
      shift.reshape(1, C).astype(jnp.float32))


# ----------------------------------------------------------------------------
# Plain-JAX glue: im2col patch extraction (pad/slice/reshape only, bf16)
# ----------------------------------------------------------------------------
def im2col(x_nhwc, k, stride, pad_h, pad_w):
    x = jnp.pad(x_nhwc, ((0, 0), pad_h, pad_w, (0, 0)))
    N, H, W, C = x.shape
    Ho = (H - k) // stride + 1
    Wo = (W - k) // stride + 1
    patches = []
    for ki in range(k):
        for kj in range(k):
            patches.append(
                x[:, ki:ki + stride * Ho:stride, kj:kj + stride * Wo:stride, :])
    cols = jnp.stack(patches, axis=3)               # (N, Ho, Wo, k*k, C)
    return cols.reshape(N * Ho * Wo, k * k * C), (N, Ho, Wo)


# ----------------------------------------------------------------------------
# Discriminator forward (NCHW in -> NCHW out, like PyTorch)
# ----------------------------------------------------------------------------
def discriminator_forward(x_nchw, params):
    x = jnp.transpose(x_nchw, (0, 2, 3, 1)).astype(jnp.bfloat16)   # -> NHWC bf16

    # block0: Conv(3->64) + bias + LeakyReLU(0.2)   (no BN)
    p = params["block0"]
    cols, (N, Ho, Wo) = im2col(x, k=4, stride=2, pad_h=(1, 1), pad_w=(1, 1))
    M = N * Ho * Wo
    y = conv_bias_act(cols, p["w"], p["b"], use_lrelu=True,
                      out_dtype=jnp.bfloat16)
    x = y[:M].reshape(N, Ho, Wo, -1)

    # block1 / block2: Conv + BatchNorm(train-mode batch stats) + LeakyReLU,
    # two-phase (conv bias is absorbed by the BN mean subtraction).
    for idx in (1, 2):
        p = params[f"block{idx}"]
        cols, (N, Ho, Wo) = im2col(x, k=4, stride=2, pad_h=(1, 1), pad_w=(1, 1))
        M = N * Ho * Wo
        y_raw, ssum, ssq = conv_bn_stats(cols, p["w"])
        mean = ssum / M
        var = ssq / M - mean * mean                   # biased variance
        scale = p["gamma"] * jax.lax.rsqrt(var + _BN_EPS)
        shift = p["beta"] - mean * scale
        y = bn_lrelu_apply(y_raw, scale, shift)
        x = y[:M].reshape(N, Ho, Wo, -1)

    # output head: ZeroPad2d((1,0,1,0)) + Conv(256->1, k4, s1, p0) + bias.
    # C_out=1 is lane-sparse: pad output channels to 128 and slice channel 0.
    p = params["out"]
    cols, (N, Ho, Wo) = im2col(x, k=4, stride=1, pad_h=(1, 0), pad_w=(1, 0))
    M = N * Ho * Wo
    c_pad = 128
    w = jnp.zeros((p["w"].shape[0], c_pad), jnp.float32).at[:, :1].set(p["w"])
    b = jnp.zeros((c_pad,), jnp.float32).at[:1].set(p["b"])
    y = conv_bias_act(cols, w, b, use_lrelu=False, out_dtype=jnp.float32)
    y = y[:M, :1].reshape(N, Ho, Wo, 1)
    return jnp.transpose(y, (0, 3, 1, 2))             # -> NCHW


# ----------------------------------------------------------------------------
# Deterministic parameter init.  Weights stored pre-flattened as
# (kh*kw*Cin, Cout); a PyTorch Conv2d weight maps via
# w.permute(2, 3, 1, 0).reshape(kh*kw*Cin, Cout).
# ----------------------------------------------------------------------------
def init_params(key, in_channels=3):
    params = {}
    cin, cout = in_channels, 64
    for idx in range(3):
        key, kw, kb = jax.random.split(key, 3)
        w = jax.random.normal(kw, (4, 4, cin, cout), jnp.float32) * 0.05
        b = jax.random.normal(kb, (cout,), jnp.float32) * 0.05
        params[f"block{idx}"] = dict(
            w=w.reshape(4 * 4 * cin, cout),
            b=b,                                     # unused in fwd for BN blocks (absorbed)
            gamma=jnp.ones((cout,), jnp.float32),    # BatchNorm2d default init
            beta=jnp.zeros((cout,), jnp.float32))
        cin, cout = cout, cout * 2
    key, kw, kb = jax.random.split(key, 3)
    w = jax.random.normal(kw, (4, 4, cin, 1), jnp.float32) * 0.05
    b = jax.random.normal(kb, (1,), jnp.float32) * 0.05
    params["out"] = dict(w=w.reshape(4 * 4 * cin, 1), b=b,
                         gamma=jnp.ones((1,), jnp.float32),
                         beta=jnp.zeros((1,), jnp.float32))
    return params


if __name__ == "__main__":
    key = jax.random.PRNGKey(0)
    key, kx = jax.random.split(key)
    # Smallest spatial size that survives 3 stride-2 convs + the k=4 head: 32.
    x = jax.random.normal(kx, (2, 3, 32, 32), jnp.float32)   # NCHW, like PyTorch
    params = init_params(key, in_channels=3)

    fwd = jax.jit(discriminator_forward)
    out = fwd(x, params)
    jax.block_until_ready(out)

    assert out.shape == (2, 1, 2, 2), out.shape
    assert bool(jnp.all(jnp.isfinite(out)))
    print("KERNEL_OK")
</pallas_src>

<mosaic_0001>
module attributes {stable_mosaic.version = 11 : i64} {
  func.func @_conv_bias_act_kernel(%arg0: i32, %arg1: i32, %arg2: memref<256x128xbf16, #tpu.memory_space<vmem>>, %arg3: memref<128x64xbf16, #tpu.memory_space<vmem>>, %arg4: memref<1x64xf32, #tpu.memory_space<vmem>>, %arg5: memref<256x64xbf16, #tpu.memory_space<vmem>>, %arg6: memref<256x64xf32, #tpu.memory_space<vmem>>) attributes {dimension_semantics = [#tpu.dimension_semantics<parallel>, #tpu.dimension_semantics<arbitrary>], iteration_bounds = array<i64: 2, 1>, scalar_prefetch = 0 : i64, scratch_operands = 1 : i64, tpu.core_type = #tpu.core_type<tc>, window_params = [{transform_indices = @transform_0, window_bounds = array<i64: 256, 128>}, {transform_indices = @transform_1, window_bounds = array<i64: 128, 64>}, {pipeline_mode = #tpu.pipeline_mode<synchronous>, transform_indices = @transform_2, window_bounds = array<i64: 1, 64>}, {transform_indices = @transform_3, window_bounds = array<i64: 256, 64>}]} {
    %c0_i32 = arith.constant 0 : i32
    %0 = arith.cmpi eq, %arg1, %c0_i32 : i32
    %1 = arith.extui %0 : i1 to i32
    %c0_i32_0 = arith.constant 0 : i32
    %2 = arith.cmpi ne, %1, %c0_i32_0 : i32
    scf.if %2 {
      %cst_10 = arith.constant 0.000000e+00 : f32
      %12 = vector.broadcast %cst_10 : f32 to vector<256x64xf32>
      %c0_11 = arith.constant 0 : index
      %c0_12 = arith.constant 0 : index
      %13 = vector.load %arg6[%c0_11, %c0_12] : memref<256x64xf32, #tpu.memory_space<vmem>>, vector<256x64xf32>
      tpu.vector_store %arg6[%c0_11, %c0_12], %12 {strides = array<i32>} : memref<256x64xf32, #tpu.memory_space<vmem>>, vector<256x64xf32>,
    } else {
    }
    %c0 = arith.constant 0 : index
    %c0_1 = arith.constant 0 : index
    %3 = vector.load %arg6[%c0, %c0_1] : memref<256x64xf32, #tpu.memory_space<vmem>>, vector<256x64xf32>
    %c0_2 = arith.constant 0 : index
    %c0_3 = arith.constant 0 : index
    %4 = vector.load %arg2[%c0_2, %c0_3] : memref<256x128xbf16, #tpu.memory_space<vmem>>, vector<256x128xbf16>
    %c0_4 = arith.constant 0 : index
    %c0_5 = arith.constant 0 : index
    %5 = vector.load %arg3[%c0_4, %c0_5] : memref<128x64xbf16, #tpu.memory_space<vmem>>, vector<128x64xbf16>
    %cst = arith.constant dense<0.000000e+00> : vector<256x64xf32>
    %6 = tpu.matmul %4, %5, %cst {dimension_numbers = #tpu.dot_dimension_numbers<[1], [0], [0], [1], [0, 0, 1, 1], [], []>} : vector<256x128xbf16>, vector<128x64xbf16>, vector<256x64xf32> -> vector<256x64xf32>
    %7 = arith.addf %3, %6 : vector<256x64xf32>
    %c0_6 = arith.constant 0 : index
    %c0_7 = arith.constant 0 : index
    %8 = vector.load %arg6[%c0_6, %c0_7] : memref<256x64xf32, #tpu.memory_space<vmem>>, vector<256x64xf32>
    tpu.vector_store %arg6[%c0_6, %c0_7], %7 {strides = array<i32>} : memref<256x64xf32, #tpu.memory_space<vmem>>, vector<256x64xf32>,
    %c0_i32_8 = arith.constant 0 : i32
    %9 = arith.cmpi eq, %arg1, %c0_i32_8 : i32
    %10 = arith.extui %9 : i1 to i32
    %c0_i32_9 = arith.constant 0 : i32
    %11 = arith.cmpi ne, %10, %c0_i32_9 : i32
    scf.if %11 {
      %c0_10 = arith.constant 0 : index
      %c0_11 = arith.constant 0 : index
      %12 = vector.load %arg6[%c0_10, %c0_11] : memref<256x64xf32, #tpu.memory_space<vmem>>, vector<256x64xf32>
      %c0_12 = arith.constant 0 : index
      %c0_13 = arith.constant 0 : index
      %13 = vector.load %arg4[%c0_12, %c0_13] : memref<1x64xf32, #tpu.memory_space<vmem>>, vector<1x64xf32>
      %14 = vector.broadcast %13 : vector<1x64xf32> to vector<256x64xf32>
      %15 = arith.addf %12, %14 : vector<256x64xf32>
      %cst_14 = arith.constant 0.000000e+00 : f32
      %16 = vector.broadcast %cst_14 : f32 to vector<256x64xf32>
      %17 = arith.cmpf ogt, %15, %16 : vector<256x64xf32>
      %cst_15 = arith.constant 2.000000e-01 : f32
      %18 = vector.broadcast %cst_15 : f32 to vector<256x64xf32>
      %19 = arith.mulf %18, %15 : vector<256x64xf32>
      %20 = arith.select %17, %15, %19 : vector<256x64xi1>, vector<256x64xf32>
      %21 = arith.truncf %20 : vector<256x64xf32> to vector<256x64xbf16>
      %c0_16 = arith.constant 0 : index
      %c0_17 = arith.constant 0 : index
      %22 = vector.load %arg5[%c0_16, %c0_17] : memref<256x64xbf16, #tpu.memory_space<vmem>>, vector<256x64xbf16>
      tpu.vector_store %arg5[%c0_16, %c0_17], %21 {strides = array<i32>} : memref<256x64xbf16, #tpu.memory_space<vmem>>, vector<256x64xbf16>,
    } else {
    }
    return
  }
  func.func @transform_0(%arg0: i32, %arg1: i32) -> (i32, i32) {
    %c0_i32 = arith.constant 0 : i32
    return %arg0, %arg1 : i32, i32
  }
  func.func @transform_1(%arg0: i32, %arg1: i32) -> (i32, i32) {
    %c0_i32 = arith.constant 0 : i32
    %c0_i32_0 = arith.constant 0 : i32
    return %arg1, %c0_i32 : i32, i32
  }
  func.func @transform_2(%arg0: i32, %arg1: i32) -> (i32, i32) {
    %c0_i32 = arith.constant 0 : i32
    %c0_i32_0 = arith.constant 0 : i32
    %c0_i32_1 = arith.constant 0 : i32
    return %c0_i32, %c0_i32_0 : i32, i32
  }
  func.func @transform_3(%arg0: i32, %arg1: i32) -> (i32, i32) {
    %c0_i32 = arith.constant 0 : i32
    %c0_i32_0 = arith.constant 0 : i32
    return %arg0, %c0_i32 : i32, i32
  }
}

module attributes {stable_mosaic.version = 11 : i64} {
  func.func @_conv_stats_kernel(%arg0: i32, %arg1: i32, %arg2: memref<128x512xbf16, #tpu.memory_space<vmem>>, %arg3: memref<512x128xbf16, #tpu.memory_space<vmem>>, %arg4: memref<128x128xbf16, #tpu.memory_space<vmem>>, %arg5: memref<8x128xf32, #tpu.memory_space<vmem>>, %arg6: memref<8x128xf32, #tpu.memory_space<vmem>>, %arg7: memref<128x128xf32, #tpu.memory_space<vmem>>) attributes {dimension_semantics = [#tpu.dimension_semantics<parallel>, #tpu.dimension_semantics<arbitrary>], iteration_bounds = array<i64: 1, 2>, scalar_prefetch = 0 : i64, scratch_operands = 1 : i64, tpu.core_type = #tpu.core_type<tc>, window_params = [{transform_indices = @transform_0, window_bounds = array<i64: 128, 512>}, {transform_indices = @transform_1, window_bounds = array<i64: 512, 128>}, {transform_indices = @transform_2, window_bounds = array<i64: 128, 128>}, {transform_indices = @transform_3, window_bounds = array<i64: 8, 128>}, {transform_indices = @transform_4, window_bounds = array<i64: 8, 128>}]} {
    %c0_i32 = arith.constant 0 : i32
    %0 = arith.cmpi eq, %arg1, %c0_i32 : i32
    %1 = arith.extui %0 : i1 to i32
    %c0_i32_0 = arith.constant 0 : i32
    %2 = arith.cmpi ne, %1, %c0_i32_0 : i32
    scf.if %2 {
      %cst_9 = arith.constant 0.000000e+00 : f32
      %12 = vector.broadcast %cst_9 : f32 to vector<128x128xf32>
      %c0_10 = arith.constant 0 : index
      %c0_11 = arith.constant 0 : index
      %13 = vector.load %arg7[%c0_10, %c0_11] : memref<128x128xf32, #tpu.memory_space<vmem>>, vector<128x128xf32>
      tpu.vector_store %arg7[%c0_10, %c0_11], %12 {strides = array<i32>} : memref<128x128xf32, #tpu.memory_space<vmem>>, vector<128x128xf32>,
    } else {
    }
    %c0 = arith.constant 0 : index
    %c0_1 = arith.constant 0 : index
    %3 = vector.load %arg7[%c0, %c0_1] : memref<128x128xf32, #tpu.memory_space<vmem>>, vector<128x128xf32>
    %c0_2 = arith.constant 0 : index
    %c0_3 = arith.constant 0 : index
    %4 = vector.load %arg2[%c0_2, %c0_3] : memref<128x512xbf16, #tpu.memory_space<vmem>>, vector<128x512xbf16>
    %c0_4 = arith.constant 0 : index
    %c0_5 = arith.constant 0 : index
    %5 = vector.load %arg3[%c0_4, %c0_5] : memref<512x128xbf16, #tpu.memory_space<vmem>>, vector<512x128xbf16>
    %cst = arith.constant dense<0.000000e+00> : vector<128x128xf32>
    %6 = tpu.matmul %4, %5, %cst {dimension_numbers = #tpu.dot_dimension_numbers<[1], [0], [0], [1], [0, 0, 1, 1], [], []>} : vector<128x512xbf16>, vector<512x128xbf16>, vector<128x128xf32> -> vector<128x128xf32>
    %7 = arith.addf %3, %6 : vector<128x128xf32>
    %c0_6 = arith.constant 0 : index
    %c0_7 = arith.constant 0 : index
    %8 = vector.load %arg7[%c0_6, %c0_7] : memref<128x128xf32, #tpu.memory_space<vmem>>, vector<128x128xf32>
    tpu.vector_store %arg7[%c0_6, %c0_7], %7 {strides = array<i32>} : memref<128x128xf32, #tpu.memory_space<vmem>>, vector<128x128xf32>,
    %c1_i32 = arith.constant 1 : i32
    %9 = arith.cmpi eq, %arg1, %c1_i32 : i32
    %10 = arith.extui %9 : i1 to i32
    %c0_i32_8 = arith.constant 0 : i32
    %11 = arith.cmpi ne, %10, %c0_i32_8 : i32
    scf.if %11 {
      %c0_9 = arith.constant 0 : index
      %c0_10 = arith.constant 0 : index
      %12 = vector.load %arg7[%c0_9, %c0_10] : memref<128x128xf32, #tpu.memory_space<vmem>>, vector<128x128xf32>
      %13 = arith.truncf %12 : vector<128x128xf32> to vector<128x128xbf16>
      %c0_11 = arith.constant 0 : index
      %c0_12 = arith.constant 0 : index
      %14 = vector.load %arg4[%c0_11, %c0_12] : memref<128x128xbf16, #tpu.memory_space<vmem>>, vector<128x128xbf16>
      tpu.vector_store %arg4[%c0_11, %c0_12], %13 {strides = array<i32>} : memref<128x128xbf16, #tpu.memory_space<vmem>>, vector<128x128xbf16>,
      %cst_13 = arith.constant dense<0.000000e+00> : vector<128xf32>
      %15 = vector.multi_reduction <add>, %12, %cst_13 [0] : vector<128x128xf32> to vector<128xf32>
      %16 = vector.shape_cast %15 : vector<128xf32> to vector<1x128xf32>
      %17 = arith.mulf %12, %12 : vector<128x128xf32>
      %cst_14 = arith.constant dense<0.000000e+00> : vector<128xf32>
      %18 = vector.multi_reduction <add>, %17, %cst_14 [0] : vector<128x128xf32> to vector<128xf32>
      %19 = vector.shape_cast %18 : vector<128xf32> to vector<1x128xf32>
      %20 = vector.shape_cast %16 : vector<1x128xf32> to vector<1x128xf32>
      %21 = vector.broadcast %20 : vector<1x128xf32> to vector<8x128xf32>
      %c0_15 = arith.constant 0 : index
      %c0_16 = arith.constant 0 : index
      %22 = vector.load %arg5[%c0_15, %c0_16] : memref<8x128xf32, #tpu.memory_space<vmem>>, vector<8x128xf32>
      tpu.vector_store %arg5[%c0_15, %c0_16], %21 {strides = array<i32>} : memref<8x128xf32, #tpu.memory_space<vmem>>, vector<8x128xf32>,
      %23 = vector.shape_cast %19 : vector<1x128xf32> to vector<1x128xf32>
      %24 = vector.broadcast %23 : vector<1x128xf32> to vector<8x128xf32>
      %c0_17 = arith.constant 0 : index
      %c0_18 = arith.constant 0 : index
      %25 = vector.load %arg6[%c0_17, %c0_18] : memref<8x128xf32, #tpu.memory_space<vmem>>, vector<8x128xf32>
      tpu.vector_store %arg6[%c0_17, %c0_18], %24 {strides = array<i32>} : memref<8x128xf32, #tpu.memory_space<vmem>>, vector<8x128xf32>,
    } else {
    }
    return
  }
  func.func @transform_0(%arg0: i32, %arg1: i32) -> (i32, i32) {
    %c0_i32 = arith.constant 0 : i32
    return %arg0, %arg1 : i32, i32
  }
  func.func @transform_1(%arg0: i32, %arg1: i32) -> (i32, i32) {
    %c0_i32 = arith.constant 0 : i32
    %c0_i32_0 = arith.constant 0 : i32
    return %arg1, %c0_i32 : i32, i32
  }
  func.func @transform_2(%arg0: i32, %arg1: i32) -> (i32, i32) {
    %c0_i32 = arith.constant 0 : i32
    %c0_i32_0 = arith.constant 0 : i32
    return %arg0, %c0_i32 : i32, i32
  }
  func.func @transform_3(%arg0: i32, %arg1: i32) -> (i32, i32) {
    %c0_i32 = arith.constant 0 : i32
    %c0_i32_0 = arith.constant 0 : i32
    return %arg0, %c0_i32 : i32, i32
  }
  func.func @transform_4(%arg0: i32, %arg1: i32) -> (i32, i32) {
    %c0_i32 = arith.constant 0 : i32
    %c0_i32_0 = arith.constant 0 : i32
    return %arg0, %c0_i32 : i32, i32
  }
}

module attributes {stable_mosaic.version = 11 : i64} {
  func.func @_scale_shift_lrelu_kernel(%arg0: i32, %arg1: memref<128x128xbf16, #tpu.memory_space<vmem>>, %arg2: memref<1x128xf32, #tpu.memory_space<vmem>>, %arg3: memref<1x128xf32, #tpu.memory_space<vmem>>, %arg4: memref<128x128xbf16, #tpu.memory_space<vmem>>) attributes {dimension_semantics = [#tpu.dimension_semantics<parallel>], iteration_bounds = array<i64: 1>, scalar_prefetch = 0 : i64, scratch_operands = 0 : i64, tpu.core_type = #tpu.core_type<tc>, window_params = [{transform_indices = @transform_0, window_bounds = array<i64: 128, 128>}, {pipeline_mode = #tpu.pipeline_mode<synchronous>, transform_indices = @transform_1, window_bounds = array<i64: 1, 128>}, {pipeline_mode = #tpu.pipeline_mode<synchronous>, transform_indices = @transform_2, window_bounds = array<i64: 1, 128>}, {transform_indices = @transform_3, window_bounds = array<i64: 128, 128>}]} {
    %c0 = arith.constant 0 : index
    %c0_0 = arith.constant 0 : index
    %0 = vector.load %arg1[%c0, %c0_0] : memref<128x128xbf16, #tpu.memory_space<vmem>>, vector<128x128xbf16>
    %1 = arith.extf %0 : vector<128x128xbf16> to vector<128x128xf32>
    %c0_1 = arith.constant 0 : index
    %c0_2 = arith.constant 0 : index
    %2 = vector.load %arg2[%c0_1, %c0_2] : memref<1x128xf32, #tpu.memory_space<vmem>>, vector<1x128xf32>
    %3 = vector.broadcast %2 : vector<1x128xf32> to vector<128x128xf32>
    %4 = arith.mulf %1, %3 : vector<128x128xf32>
    %c0_3 = arith.constant 0 : index
    %c0_4 = arith.constant 0 : index
    %5 = vector.load %arg3[%c0_3, %c0_4] : memref<1x128xf32, #tpu.memory_space<vmem>>, vector<1x128xf32>
    %6 = vector.broadcast %5 : vector<1x128xf32> to vector<128x128xf32>
    %7 = arith.addf %4, %6 : vector<128x128xf32>
    %cst = arith.constant 0.000000e+00 : f32
    %8 = vector.broadcast %cst : f32 to vector<128x128xf32>
    %9 = arith.cmpf ogt, %7, %8 : vector<128x128xf32>
    %cst_5 = arith.constant 2.000000e-01 : f32
    %10 = vector.broadcast %cst_5 : f32 to vector<128x128xf32>
    %11 = arith.mulf %10, %7 : vector<128x128xf32>
    %12 = arith.select %9, %7, %11 : vector<128x128xi1>, vector<128x128xf32>
    %13 = arith.truncf %12 : vector<128x128xf32> to vector<128x128xbf16>
    %c0_6 = arith.constant 0 : index
    %c0_7 = arith.constant 0 : index
    %14 = vector.load %arg4[%c0_6, %c0_7] : memref<128x128xbf16, #tpu.memory_space<vmem>>, vector<128x128xbf16>
    tpu.vector_store %arg4[%c0_6, %c0_7], %13 {strides = array<i32>} : memref<128x128xbf16, #tpu.memory_space<vmem>>, vector<128x128xbf16>,
    return
  }
  func.func @transform_0(%arg0: i32) -> (i32, i32) {
    %c0_i32 = arith.constant 0 : i32
    %c0_i32_0 = arith.constant 0 : i32
    return %arg0, %c0_i32 : i32, i32
  }
  func.func @transform_1(%arg0: i32) -> (i32, i32) {
    %c0_i32 = arith.constant 0 : i32
    %c0_i32_0 = arith.constant 0 : i32
    %c0_i32_1 = arith.constant 0 : i32
    return %c0_i32, %c0_i32_0 : i32, i32
  }
  func.func @transform_2(%arg0: i32) -> (i32, i32) {
    %c0_i32 = arith.constant 0 : i32
    %c0_i32_0 = arith.constant 0 : i32
    %c0_i32_1 = arith.constant 0 : i32
    return %c0_i32, %c0_i32_0 : i32, i32
  }
  func.func @transform_3(%arg0: i32) -> (i32, i32) {
    %c0_i32 = arith.constant 0 : i32
    %c0_i32_0 = arith.constant 0 : i32
    return %arg0, %c0_i32 : i32, i32
  }
}

module attributes {stable_mosaic.version = 11 : i64} {
  func.func @_conv_stats_kernel(%arg0: i32, %arg1: i32, %arg2: memref<32x512xbf16, #tpu.memory_space<vmem>>, %arg3: memref<512x256xbf16, #tpu.memory_space<vmem>>, %arg4: memref<32x256xbf16, #tpu.memory_space<vmem>>, %arg5: memref<8x256xf32, #tpu.memory_space<vmem>>, %arg6: memref<8x256xf32, #tpu.memory_space<vmem>>, %arg7: memref<32x256xf32, #tpu.memory_space<vmem>>) attributes {dimension_semantics = [#tpu.dimension_semantics<parallel>, #tpu.dimension_semantics<arbitrary>], iteration_bounds = array<i64: 1, 4>, scalar_prefetch = 0 : i64, scratch_operands = 1 : i64, tpu.core_type = #tpu.core_type<tc>, window_params = [{transform_indices = @transform_0, window_bounds = array<i64: 32, 512>}, {transform_indices = @transform_1, window_bounds = array<i64: 512, 256>}, {transform_indices = @transform_2, window_bounds = array<i64: 32, 256>}, {transform_indices = @transform_3, window_bounds = array<i64: 8, 256>}, {transform_indices = @transform_4, window_bounds = array<i64: 8, 256>}]} {
    %c0_i32 = arith.constant 0 : i32
    %0 = arith.cmpi eq, %arg1, %c0_i32 : i32
    %1 = arith.extui %0 : i1 to i32
    %c0_i32_0 = arith.constant 0 : i32
    %2 = arith.cmpi ne, %1, %c0_i32_0 : i32
    scf.if %2 {
      %cst_9 = arith.constant 0.000000e+00 : f32
      %12 = vector.broadcast %cst_9 : f32 to vector<32x256xf32>
      %c0_10 = arith.constant 0 : index
      %c0_11 = arith.constant 0 : index
      %13 = vector.load %arg7[%c0_10, %c0_11] : memref<32x256xf32, #tpu.memory_space<vmem>>, vector<32x256xf32>
      tpu.vector_store %arg7[%c0_10, %c0_11], %12 {strides = array<i32>} : memref<32x256xf32, #tpu.memory_space<vmem>>, vector<32x256xf32>,
    } else {
    }
    %c0 = arith.constant 0 : index
    %c0_1 = arith.constant 0 : index
    %3 = vector.load %arg7[%c0, %c0_1] : memref<32x256xf32, #tpu.memory_space<vmem>>, vector<32x256xf32>
    %c0_2 = arith.constant 0 : index
    %c0_3 = arith.constant 0 : index
    %4 = vector.load %arg2[%c0_2, %c0_3] : memref<32x512xbf16, #tpu.memory_space<vmem>>, vector<32x512xbf16>
    %c0_4 = arith.constant 0 : index
    %c0_5 = arith.constant 0 : index
    %5 = vector.load %arg3[%c0_4, %c0_5] : memref<512x256xbf16, #tpu.memory_space<vmem>>, vector<512x256xbf16>
    %cst = arith.constant dense<0.000000e+00> : vector<32x256xf32>
    %6 = tpu.matmul %4, %5, %cst {dimension_numbers = #tpu.dot_dimension_numbers<[1], [0], [0], [1], [0, 0, 1, 1], [], []>} : vector<32x512xbf16>, vector<512x256xbf16>, vector<32x256xf32> -> vector<32x256xf32>
    %7 = arith.addf %3, %6 : vector<32x256xf32>
    %c0_6 = arith.constant 0 : index
    %c0_7 = arith.constant 0 : index
    %8 = vector.load %arg7[%c0_6, %c0_7] : memref<32x256xf32, #tpu.memory_space<vmem>>, vector<32x256xf32>
    tpu.vector_store %arg7[%c0_6, %c0_7], %7 {strides = array<i32>} : memref<32x256xf32, #tpu.memory_space<vmem>>, vector<32x256xf32>,
    %c3_i32 = arith.constant 3 : i32
    %9 = arith.cmpi eq, %arg1, %c3_i32 : i32
    %10 = arith.extui %9 : i1 to i32
    %c0_i32_8 = arith.constant 0 : i32
    %11 = arith.cmpi ne, %10, %c0_i32_8 : i32
    scf.if %11 {
      %c0_9 = arith.constant 0 : index
      %c0_10 = arith.constant 0 : index
      %12 = vector.load %arg7[%c0_9, %c0_10] : memref<32x256xf32, #tpu.memory_space<vmem>>, vector<32x256xf32>
      %13 = arith.truncf %12 : vector<32x256xf32> to vector<32x256xbf16>
      %c0_11 = arith.constant 0 : index
      %c0_12 = arith.constant 0 : index
      %14 = vector.load %arg4[%c0_11, %c0_12] : memref<32x256xbf16, #tpu.memory_space<vmem>>, vector<32x256xbf16>
      tpu.vector_store %arg4[%c0_11, %c0_12], %13 {strides = array<i32>} : memref<32x256xbf16, #tpu.memory_space<vmem>>, vector<32x256xbf16>,
      %cst_13 = arith.constant dense<0.000000e+00> : vector<256xf32>
      %15 = vector.multi_reduction <add>, %12, %cst_13 [0] : vector<32x256xf32> to vector<256xf32>
      %16 = vector.shape_cast %15 : vector<256xf32> to vector<1x256xf32>
      %17 = arith.mulf %12, %12 : vector<32x256xf32>
      %cst_14 = arith.constant dense<0.000000e+00> : vector<256xf32>
      %18 = vector.multi_reduction <add>, %17, %cst_14 [0] : vector<32x256xf32> to vector<256xf32>
      %19 = vector.shape_cast %18 : vector<256xf32> to vector<1x256xf32>
      %20 = vector.shape_cast %16 : vector<1x256xf32> to vector<1x256xf32>
      %21 = vector.broadcast %20 : vector<1x256xf32> to vector<8x256xf32>
      %c0_15 = arith.constant 0 : index
      %c0_16 = arith.constant 0 : index
      %22 = vector.load %arg5[%c0_15, %c0_16] : memref<8x256xf32, #tpu.memory_space<vmem>>, vector<8x256xf32>
      tpu.vector_store %arg5[%c0_15, %c0_16], %21 {strides = array<i32>} : memref<8x256xf32, #tpu.memory_space<vmem>>, vector<8x256xf32>,
      %23 = vector.shape_cast %19 : vector<1x256xf32> to vector<1x256xf32>
      %24 = vector.broadcast %23 : vector<1x256xf32> to vector<8x256xf32>
      %c0_17 = arith.constant 0 : index
      %c0_18 = arith.constant 0 : index
      %25 = vector.load %arg6[%c0_17, %c0_18] : memref<8x256xf32, #tpu.memory_space<vmem>>, vector<8x256xf32>
      tpu.vector_store %arg6[%c0_17, %c0_18], %24 {strides = array<i32>} : memref<8x256xf32, #tpu.memory_space<vmem>>, vector<8x256xf32>,
    } else {
    }
    return
  }
  func.func @transform_0(%arg0: i32, %arg1: i32) -> (i32, i32) {
    %c0_i32 = arith.constant 0 : i32
    return %arg0, %arg1 : i32, i32
  }
  func.func @transform_1(%arg0: i32, %arg1: i32) -> (i32, i32) {
    %c0_i32 = arith.constant 0 : i32
    %c0_i32_0 = arith.constant 0 : i32
    return %arg1, %c0_i32 : i32, i32
  }
  func.func @transform_2(%arg0: i32, %arg1: i32) -> (i32, i32) {
    %c0_i32 = arith.constant 0 : i32
    %c0_i32_0 = arith.constant 0 : i32
    return %arg0, %c0_i32 : i32, i32
  }
  func.func @transform_3(%arg0: i32, %arg1: i32) -> (i32, i32) {
    %c0_i32 = arith.constant 0 : i32
    %c0_i32_0 = arith.constant 0 : i32
    return %arg0, %c0_i32 : i32, i32
  }
  func.func @transform_4(%arg0: i32, %arg1: i32) -> (i32, i32) {
    %c0_i32 = arith.constant 0 : i32
    %c0_i32_0 = arith.constant 0 : i32
    return %arg0, %c0_i32 : i32, i32
  }
}

module attributes {stable_mosaic.version = 11 : i64} {
  func.func @_scale_shift_lrelu_kernel(%arg0: i32, %arg1: memref<32x256xbf16, #tpu.memory_space<vmem>>, %arg2: memref<1x256xf32, #tpu.memory_space<vmem>>, %arg3: memref<1x256xf32, #tpu.memory_space<vmem>>, %arg4: memref<32x256xbf16, #tpu.memory_space<vmem>>) attributes {dimension_semantics = [#tpu.dimension_semantics<parallel>], iteration_bounds = array<i64: 1>, scalar_prefetch = 0 : i64, scratch_operands = 0 : i64, tpu.core_type = #tpu.core_type<tc>, window_params = [{transform_indices = @transform_0, window_bounds = array<i64: 32, 256>}, {pipeline_mode = #tpu.pipeline_mode<synchronous>, transform_indices = @transform_1, window_bounds = array<i64: 1, 256>}, {pipeline_mode = #tpu.pipeline_mode<synchronous>, transform_indices = @transform_2, window_bounds = array<i64: 1, 256>}, {transform_indices = @transform_3, window_bounds = array<i64: 32, 256>}]} {
    %c0 = arith.constant 0 : index
    %c0_0 = arith.constant 0 : index
    %0 = vector.load %arg1[%c0, %c0_0] : memref<32x256xbf16, #tpu.memory_space<vmem>>, vector<32x256xbf16>
    %1 = arith.extf %0 : vector<32x256xbf16> to vector<32x256xf32>
    %c0_1 = arith.constant 0 : index
    %c0_2 = arith.constant 0 : index
    %2 = vector.load %arg2[%c0_1, %c0_2] : memref<1x256xf32, #tpu.memory_space<vmem>>, vector<1x256xf32>
    %3 = vector.broadcast %2 : vector<1x256xf32> to vector<32x256xf32>
    %4 = arith.mulf %1, %3 : vector<32x256xf32>
    %c0_3 = arith.constant 0 : index
    %c0_4 = arith.constant 0 : index
    %5 = vector.load %arg3[%c0_3, %c0_4] : memref<1x256xf32, #tpu.memory_space<vmem>>, vector<1x256xf32>
    %6 = vector.broadcast %5 : vector<1x256xf32> to vector<32x256xf32>
    %7 = arith.addf %4, %6 : vector<32x256xf32>
    %cst = arith.constant 0.000000e+00 : f32
    %8 = vector.broadcast %cst : f32 to vector<32x256xf32>
    %9 = arith.cmpf ogt, %7, %8 : vector<32x256xf32>
    %cst_5 = arith.constant 2.000000e-01 : f32
    %10 = vector.broadcast %cst_5 : f32 to vector<32x256xf32>
    %11 = arith.mulf %10, %7 : vector<32x256xf32>
    %12 = arith.select %9, %7, %11 : vector<32x256xi1>, vector<32x256xf32>
    %13 = arith.truncf %12 : vector<32x256xf32> to vector<32x256xbf16>
    %c0_6 = arith.constant 0 : index
    %c0_7 = arith.constant 0 : index
    %14 = vector.load %arg4[%c0_6, %c0_7] : memref<32x256xbf16, #tpu.memory_space<vmem>>, vector<32x256xbf16>
    tpu.vector_store %arg4[%c0_6, %c0_7], %13 {strides = array<i32>} : memref<32x256xbf16, #tpu.memory_space<vmem>>, vector<32x256xbf16>,
    return
  }
  func.func @transform_0(%arg0: i32) -> (i32, i32) {
    %c0_i32 = arith.constant 0 : i32
    %c0_i32_0 = arith.constant 0 : i32
    return %arg0, %c0_i32 : i32, i32
  }
  func.func @transform_1(%arg0: i32) -> (i32, i32) {
    %c0_i32 = arith.constant 0 : i32
    %c0_i32_0 = arith.constant 0 : i32
    %c0_i32_1 = arith.constant 0 : i32
    return %c0_i32, %c0_i32_0 : i32, i32
  }
  func.func @transform_2(%arg0: i32) -> (i32, i32) {
    %c0_i32 = arith.constant 0 : i32
    %c0_i32_0 = arith.constant 0 : i32
    %c0_i32_1 = arith.constant 0 : i32
    return %c0_i32, %c0_i32_0 : i32, i32
  }
  func.func @transform_3(%arg0: i32) -> (i32, i32) {
    %c0_i32 = arith.constant 0 : i32
    %c0_i32_0 = arith.constant 0 : i32
    return %arg0, %c0_i32 : i32, i32
  }
}

module attributes {stable_mosaic.version = 11 : i64} {
  func.func @_conv_bias_act_kernel(%arg0: i32, %arg1: i32, %arg2: memref<16x512xbf16, #tpu.memory_space<vmem>>, %arg3: memref<512x128xbf16, #tpu.memory_space<vmem>>, %arg4: memref<1x128xf32, #tpu.memory_space<vmem>>, %arg5: memref<16x128xf32, #tpu.memory_space<vmem>>, %arg6: memref<16x128xf32, #tpu.memory_space<vmem>>) attributes {dimension_semantics = [#tpu.dimension_semantics<parallel>, #tpu.dimension_semantics<arbitrary>], iteration_bounds = array<i64: 1, 8>, scalar_prefetch = 0 : i64, scratch_operands = 1 : i64, tpu.core_type = #tpu.core_type<tc>, window_params = [{transform_indices = @transform_0, window_bounds = array<i64: 16, 512>}, {transform_indices = @transform_1, window_bounds = array<i64: 512, 128>}, {pipeline_mode = #tpu.pipeline_mode<synchronous>, transform_indices = @transform_2, window_bounds = array<i64: 1, 128>}, {transform_indices = @transform_3, window_bounds = array<i64: 16, 128>}]} {
    %c0_i32 = arith.constant 0 : i32
    %0 = arith.cmpi eq, %arg1, %c0_i32 : i32
    %1 = arith.extui %0 : i1 to i32
    %c0_i32_0 = arith.constant 0 : i32
    %2 = arith.cmpi ne, %1, %c0_i32_0 : i32
    scf.if %2 {
      %cst_9 = arith.constant 0.000000e+00 : f32
      %12 = vector.broadcast %cst_9 : f32 to vector<16x128xf32>
      %c0_10 = arith.constant 0 : index
      %c0_11 = arith.constant 0 : index
      %13 = vector.load %arg6[%c0_10, %c0_11] : memref<16x128xf32, #tpu.memory_space<vmem>>, vector<16x128xf32>
      tpu.vector_store %arg6[%c0_10, %c0_11], %12 {strides = array<i32>} : memref<16x128xf32, #tpu.memory_space<vmem>>, vector<16x128xf32>,
    } else {
    }
    %c0 = arith.constant 0 : index
    %c0_1 = arith.constant 0 : index
    %3 = vector.load %arg6[%c0, %c0_1] : memref<16x128xf32, #tpu.memory_space<vmem>>, vector<16x128xf32>
    %c0_2 = arith.constant 0 : index
    %c0_3 = arith.constant 0 : index
    %4 = vector.load %arg2[%c0_2, %c0_3] : memref<16x512xbf16, #tpu.memory_space<vmem>>, vector<16x512xbf16>
    %c0_4 = arith.constant 0 : index
    %c0_5 = arith.constant 0 : index
    %5 = vector.load %arg3[%c0_4, %c0_5] : memref<512x128xbf16, #tpu.memory_space<vmem>>, vector<512x128xbf16>
    %cst = arith.constant dense<0.000000e+00> : vector<16x128xf32>
    %6 = tpu.matmul %4, %5, %cst {dimension_numbers = #tpu.dot_dimension_numbers<[1], [0], [0], [1], [0, 0, 1, 1], [], []>} : vector<16x512xbf16>, vector<512x128xbf16>, vector<16x128xf32> -> vector<16x128xf32>
    %7 = arith.addf %3, %6 : vector<16x128xf32>
    %c0_6 = arith.constant 0 : index
    %c0_7 = arith.constant 0 : index
    %8 = vector.load %arg6[%c0_6, %c0_7] : memref<16x128xf32, #tpu.memory_space<vmem>>, vector<16x128xf32>
    tpu.vector_store %arg6[%c0_6, %c0_7], %7 {strides = array<i32>} : memref<16x128xf32, #tpu.memory_space<vmem>>, vector<16x128xf32>,
    %c7_i32 = arith.constant 7 : i32
    %9 = arith.cmpi eq, %arg1, %c7_i32 : i32
    %10 = arith.extui %9 : i1 to i32
    %c0_i32_8 = arith.constant 0 : i32
    %11 = arith.cmpi ne, %10, %c0_i32_8 : i32
    scf.if %11 {
      %c0_9 = arith.constant 0 : index
      %c0_10 = arith.constant 0 : index
      %12 = vector.load %arg6[%c0_9, %c0_10] : memref<16x128xf32, #tpu.memory_space<vmem>>, vector<16x128xf32>
      %c0_11 = arith.constant 0 : index
      %c0_12 = arith.constant 0 : index
      %13 = vector.load %arg4[%c0_11, %c0_12] : memref<1x128xf32, #tpu.memory_space<vmem>>, vector<1x128xf32>
      %14 = vector.broadcast %13 : vector<1x128xf32> to vector<16x128xf32>
      %15 = arith.addf %12, %14 : vector<16x128xf32>
      %c0_13 = arith.constant 0 : index
      %c0_14 = arith.constant 0 : index
      %16 = vector.load %arg5[%c0_13, %c0_14] : memref<16x128xf32, #tpu.memory_space<vmem>>, vector<16x128xf32>
      tpu.vector_store %arg5[%c0_13, %c0_14], %15 {strides = array<i32>} : memref<16x128xf32, #tpu.memory_space<vmem>>, vector<16x128xf32>,
    } else {
    }
    return
  }
  func.func @transform_0(%arg0: i32, %arg1: i32) -> (i32, i32) {
    %c0_i32 = arith.constant 0 : i32
    return %arg0, %arg1 : i32, i32
  }
  func.func @transform_1(%arg0: i32, %arg1: i32) -> (i32, i32) {
    %c0_i32 = arith.constant 0 : i32
    %c0_i32_0 = arith.constant 0 : i32
    return %arg1, %c0_i32 : i32, i32
  }
  func.func @transform_2(%arg0: i32, %arg1: i32) -> (i32, i32) {
    %c0_i32 = arith.constant 0 : i32
    %c0_i32_0 = arith.constant 0 : i32
    %c0_i32_1 = arith.constant 0 : i32
    return %c0_i32, %c0_i32_0 : i32, i32
  }
  func.func @transform_3(%arg0: i32, %arg1: i32) -> (i32, i32) {
    %c0_i32 = arith.constant 0 : i32
    %c0_i32_0 = arith.constant 0 : i32
    return %arg0, %c0_i32 : i32, i32
  }
}

</mosaic_0001>

<bundles_post_ra>
// kernel: discriminator_forward.6
= control target key start
LH: loop header
LB: loop body
LE: loop exit
PB: predicated region body
PF: predicated region fallthrough
CT: control target
= control target key end

     0   :  { %s1404_s12 = smov 0   ;;  %s1406_s13 = smov 0   ;;  %s1697_s0 = inlined_call_operand.vmem [shape: bf16[512,128], index: 0, kind: input, shape index: {}]   ;;  %s1698_s1 = inlined_call_operand.vmem [shape: bf16[128,64], index: 1, kind: input, shape index: {}]   ;;  %s1699_s2 = inlined_call_operand.vmem [shape: f32[1,64], index: 2, kind: input, shape index: {}]   ;;  %s1700_s3 = inlined_call_operand.vmem [shape: bf16[512,64], index: 3, kind: output, shape index: {}]  }
   0x1   :  { %s1408_s14 = smov 0  }
   0x2 LB: > { %s25_s15 = sadd.s32 1, %s1377_s13  ;;  %p1126_p0 = scmp.ge.s32.totalorder %s1381_s14, 1  ;;  %s1381_s14 = sphi %s1408_s14, %s13_s14   ;;  %s1377_s13 = sphi %s1406_s13, %s1702_s13   ;;  %s1373_s12 = sphi %s1404_s12, %s1701_s12  }
   0x3   : > { %p27_p1 = scmp.ge.s32.totalorder %s25_s15, 2  ;;  %p166_p2 = scmp.lt.s32.totalorder %s1381_s14, 3 }
   0x5   : > { %s1704_s15 = smov (%p27_p1, %s25_s15), 0  ;;  %p167_p3 = pnand %p1126_p0, %p166_p2 }
   0x6   : > { %v1335_v0 = vld [vmem:[%s1698_s1] sm:$0xff] (!%p167_p3)   ;;  %s1127_s18 = sshll.u32 (!%p167_p3), %s1373_s12, 5  ;;  %v1336_v1 = vld [vmem:[%s1698_s1 + $0x8] sm:$0xff] (!%p167_p3)   ;;  %vm224_vm0 = vcmask (!%p167_p3), 523264   ;;  %v1337_v2 = vld [vmem:[%s1698_s1 + $0x10] sm:$0xff] (!%p167_p3)   ;;  %v1383_v3 = vmov (!%p167_p3), 0.0  }
   0x7   : > { %170 = sbr.rel (%p167_p3) target bundleno = 316 (0x13c), region = 32  ;;  %p199_p4 = scmp.lt.s32.totalorder (!%p167_p3), %s1127_s18, 63  ;;  %1246 = vmatprep.subr.bf16.mxu0 (!%p167_p3), %v1335_v0  ;;  %1294 = vmatprep.subr.bf16.mxu1 (!%p167_p3), %v1335_v0  ;;  %227 = vst.msk [vmem:[#allocation2 + $0x10] sm:$0xff] (!%p167_p3), %vm224_vm0, %v1383_v3  ;;  %225 = vst.msk [vmem:[#allocation2] sm:$0xff] (!%p167_p3), %vm224_vm0, %v1383_v3  ;;  %v1338_v4 = vld [vmem:[%s1698_s1 + $0x18] sm:$0xff] (!%p167_p3)   ;;  %v1339_v7 = vld [vmem:[%s1698_s1 + $0x20] sm:$0xff] (!%p167_p3)  }
   0x8   : > { %1247 = vmatpush3.bf16.msra.mxu0 (!%p167_p3), %v1335_v0  ;;  %1302 = vmatpush3.bf16.msra.mxu1 (!%p167_p3), %v1335_v0  ;;  %226 = vst.msk [vmem:[#allocation2 + $0x8] sm:$0xff] (!%p167_p3), %vm224_vm0, %v1383_v3  ;;  %228 = vst.msk [vmem:[#allocation2 + $0x18] sm:$0xff] (!%p167_p3), %vm224_vm0, %v1383_v3  ;;  %v1340_v8 = vld [vmem:[%s1698_s1 + $0x28] sm:$0xff] (!%p167_p3)   ;;  %v1341_v9 = vld [vmem:[%s1698_s1 + $0x30] sm:$0xff] (!%p167_p3)   ;;  %vm1005_vm1 = vcmask (!%p167_p3), 519168  }
   0x9   : > { %1248 = vmatprep.subr.bf16.mxu0 (!%p167_p3), %v1336_v1  ;;  %1295 = vmatprep.subr.bf16.mxu1 (!%p167_p3), %v1336_v1  ;;  %229 = vst.msk [vmem:[#allocation2 + $0x20] sm:$0xff] (!%p167_p3), %vm224_vm0, %v1383_v3  ;;  %230 = vst.msk [vmem:[#allocation2 + $0x28] sm:$0xff] (!%p167_p3), %vm224_vm0, %v1383_v3  ;;  %v1342_v10 = vld [vmem:[%s1698_s1 + $0x38] sm:$0xff] (!%p167_p3)   ;;  %v1515_v53 = vld [vmem:[%s1699_s2] ss:$0 sm:$0xff] (!%p167_p3) }
   0xa   : > { %231 = vst.msk [vmem:[#allocation2 + $0x30] sm:$0xff] (!%p167_p3), %vm224_vm0, %v1383_v3  ;;  %232 = vst.msk [vmem:[#allocation2 + $0x38] sm:$0xff] (!%p167_p3), %vm224_vm0, %v1383_v3 }
   0xb   : > { %233 = vst.msk [vmem:[#allocation2 + $0x40] sm:$0xff] (!%p167_p3), %vm224_vm0, %v1383_v3  ;;  %234 = vst.msk [vmem:[#allocation2 + $0x48] sm:$0xff] (!%p167_p3), %vm224_vm0, %v1383_v3 }
   0xc   : > { %235 = vst.msk [vmem:[#allocation2 + $0x50] sm:$0xff] (!%p167_p3), %vm224_vm0, %v1383_v3  ;;  %236 = vst.msk [vmem:[#allocation2 + $0x58] sm:$0xff] (!%p167_p3), %vm224_vm0, %v1383_v3  ;;  %1249 = vmatpush3.bf16.msra.mxu0 (!%p167_p3), %v1336_v1  ;;  %1303 = vmatpush3.bf16.msra.mxu1 (!%p167_p3), %v1336_v1 }
   0xd   : > { %237 = vst.msk [vmem:[#allocation2 + $0x60] sm:$0xff] (!%p167_p3), %vm224_vm0, %v1383_v3  ;;  %238 = vst.msk [vmem:[#allocation2 + $0x68] sm:$0xff] (!%p167_p3), %vm224_vm0, %v1383_v3  ;;  %1250 = vmatprep.subr.bf16.mxu0 (!%p167_p3), %v1337_v2  ;;  %1296 = vmatprep.subr.bf16.mxu1 (!%p167_p3), %v1337_v2 }
   0xe   : > { %s1706_s18 = smov (!%p199_p4, %s1127_s18), 63  ;;  %239 = vst.msk [vmem:[#allocation2 + $0x70] sm:$0xff] %vm224_vm0, %v1383_v3  ;;  %240 = vst.msk [vmem:[#allocation2 + $0x78] sm:$0xff] %vm224_vm0, %v1383_v3  ;;  %v259_v25 = vld [vmem:[#allocation2 + $0x10] sm:$0xff]  ;;  %v257_v27 = vld [vmem:[#allocation2] sm:$0xff] }
   0xf   : > { %s1128_s23 = sshll.u32 %s1706_s18, 2  ;;  %241 = vst.msk [vmem:[#allocation2 + $0x80] sm:$0xff] %vm224_vm0, %v1383_v3  ;;  %242 = vst.msk [vmem:[#allocation2 + $0x88] sm:$0xff] %vm224_vm0, %v1383_v3  ;;  %v260_v31 = vld [vmem:[#allocation2 + $0x18] sm:$0xff]  ;;  %v258_v37 = vld [vmem:[#allocation2 + $0x8] sm:$0xff] }
  0x10   : > { %243 = vst.msk [vmem:[#allocation2 + $0x90] sm:$0xff] %vm224_vm0, %v1383_v3  ;;  %244 = vst.msk [vmem:[#allocation2 + $0x98] sm:$0xff] %vm224_vm0, %v1383_v3  ;;  %s1471_s26 = scalar_lea.vmem %s1697_s0, %s1128_s23  ;;  %1251 = vmatpush3.bf16.msra.mxu0 %v1337_v2  ;;  %1304 = vmatpush3.bf16.msra.mxu1 %v1337_v2  ;;  %v261_v51 = vld [vmem:[#allocation2 + $0x20] sm:$0xff]  ;;  %v262_v62 = vld [vmem:[#allocation2 + $0x28] sm:$0xff]  ;;  %s1534_s17 = scalar_lea.vmem %s1700_s3, %s1128_s23 }
  0x11   : > { %245 = vst.msk [vmem:[#allocation2 + $0xa0] sm:$0xff] %vm224_vm0, %v1383_v3  ;;  %246 = vst.msk [vmem:[#allocation2 + $0xa8] sm:$0xff] %vm224_vm0, %v1383_v3  ;;  %v1343_v5 = vld [vmem:[%s1471_s26] sm:$0xff]   ;;  %1252 = vmatprep.subr.bf16.mxu0 %v1338_v4  ;;  %1297 = vmatprep.subr.bf16.mxu1 %v1338_v4  ;;  %v1345_v11 = vld [vmem:[%s1471_s26 + $0x8] sm:$0xff]  }
  0x12   : > { %247 = vst.msk [vmem:[#allocation2 + $0xb0] sm:$0xff] %vm224_vm0, %v1383_v3  ;;  %248 = vst.msk [vmem:[#allocation2 + $0xb8] sm:$0xff] %vm224_vm0, %v1383_v3  ;;  %v1344_v6 = vld [vmem:[%s1471_s26 + $0x40] sm:$0xff]   ;;  %1262 = vmatprep.mubr.bf16.mxu0 %v1343_v5  ;;  %v1346_v12 = vld [vmem:[%s1471_s26 + $0x48] sm:$0xff]  }
  0x13   : > { %249 = vst.msk [vmem:[#allocation2 + $0xc0] sm:$0xff] %vm224_vm0, %v1383_v3  ;;  %250 = vst.msk [vmem:[#allocation2 + $0xc8] sm:$0xff] %vm224_vm0, %v1383_v3  ;;  %1278 = vmatprep.mubr.bf16.mxu1 %v1344_v6  ;;  %v1347_v13 = vld [vmem:[%s1471_s26 + $0x10] sm:$0xff]   ;;  %v1349_v15 = vld [vmem:[%s1471_s26 + $0x18] sm:$0xff]  }
  0x14   : > { %251 = vst.msk [vmem:[#allocation2 + $0xd0] sm:$0xff] %vm224_vm0, %v1383_v3  ;;  %252 = vst.msk [vmem:[#allocation2 + $0xd8] sm:$0xff] %vm224_vm0, %v1383_v3  ;;  %1253 = vmatpush3.bf16.msra.mxu0 %v1338_v4  ;;  %1305 = vmatpush3.bf16.msra.mxu1 %v1338_v4  ;;  %v1348_v14 = vld [vmem:[%s1471_s26 + $0x50] sm:$0xff]   ;;  %v1350_v16 = vld [vmem:[%s1471_s26 + $0x58] sm:$0xff]  }
  0x15   : > { %253 = vst.msk [vmem:[#allocation2 + $0xe0] sm:$0xff] %vm224_vm0, %v1383_v3  ;;  %254 = vst.msk [vmem:[#allocation2 + $0xe8] sm:$0xff] %vm224_vm0, %v1383_v3  ;;  %1254 = vmatprep.subr.bf16.mxu0 %v1339_v7  ;;  %1298 = vmatprep.subr.bf16.mxu1 %v1339_v7  ;;  %v1351_v17 = vld [vmem:[%s1471_s26 + $0x20] sm:$0xff]   ;;  %v1353_v19 = vld [vmem:[%s1471_s26 + $0x28] sm:$0xff]  }
  0x16   : > { %255 = vst.msk [vmem:[#allocation2 + $0xf0] sm:$0xff] %vm224_vm0, %v1383_v3  ;;  %256 = vst.msk [vmem:[#allocation2 + $0xf8] sm:$0xff] %vm224_vm0, %v1383_v3  ;;  %v1352_v18 = vld [vmem:[%s1471_s26 + $0x60] sm:$0xff]   ;;  %v1354_v20 = vld [vmem:[%s1471_s26 + $0x68] sm:$0xff]  }
  0x17   : > { %v1355_v21 = vld [vmem:[%s1471_s26 + $0x30] sm:$0xff]   ;;  %v1357_v23 = vld [vmem:[%s1471_s26 + $0x38] sm:$0xff]   ;;  %v273_v28 = vld [vmem:[#allocation2 + $0x80] sm:$0xff] }
  0x18   : > { %1255 = vmatpush3.bf16.msra.mxu0 %v1339_v7  ;;  %1306 = vmatpush3.bf16.msra.mxu1 %v1339_v7  ;;  %v1356_v22 = vld [vmem:[%s1471_s26 + $0x70] sm:$0xff]   ;;  %v1358_v24 = vld [vmem:[%s1471_s26 + $0x78] sm:$0xff]   ;;  %v274_v38 = vld [vmem:[#allocation2 + $0x88] sm:$0xff] }
  0x19   : > { %1256 = vmatprep.subr.bf16.mxu0 %v1340_v8  ;;  %1299 = vmatprep.subr.bf16.mxu1 %v1340_v8  ;;  %v275_v26 = vld [vmem:[#allocation2 + $0x90] sm:$0xff]  ;;  %v276_v32 = vld [vmem:[#allocation2 + $0x98] sm:$0xff]  ;;  %v277_v52 = vld [vmem:[#allocation2 + $0xa0] sm:$0xff] }
  0x1a   : > { %v263_v49 = vld [vmem:[#allocation2 + $0x30] sm:$0xff]  ;;  %v264_v56 = vld [vmem:[#allocation2 + $0x38] sm:$0xff]  ;;  %v278_v63 = vld [vmem:[#allocation2 + $0xa8] sm:$0xff] }
  0x1b   : > { %v279_v50 = vld [vmem:[#allocation2 + $0xb0] sm:$0xff]  ;;  %v280_v57 = vld [vmem:[#allocation2 + $0xb8] sm:$0xff] }
  0x1c   : > { %1257 = vmatpush3.bf16.msra.mxu0 %v1340_v8  ;;  %1307 = vmatpush3.bf16.msra.mxu1 %v1340_v8 }
  0x1d   : > { %1258 = vmatprep.subr.bf16.mxu0 %v1341_v9  ;;  %1300 = vmatprep.subr.bf16.mxu1 %v1341_v9 }
  0x20   : > { %1259 = vmatpush3.bf16.msra.mxu0 %v1341_v9  ;;  %1308 = vmatpush3.bf16.msra.mxu1 %v1341_v9 }
  0x21   : > { %1260 = vmatprep.subr.bf16.mxu0 %v1342_v10  ;;  %1301 = vmatprep.subr.bf16.mxu1 %v1342_v10 }
  0x24   : > { %1261 = vmatpush3.bf16.msra.mxu0 %v1342_v10  ;;  %1309 = vmatpush3.bf16.msra.mxu1 %v1342_v10 }
  0x27   : > { %1263 = vmatmul.mubr.bf16.vlgmr.msra.gmra.mrb[0].mxu0 %v1345_v11  ;;  %1279 = vmatmul.mubr.bf16.vlgmr.msra.gmra.mrb[0].mxu1 %v1346_v12 }
  0x28   : > { %1266 = vmatprep.mubr.bf16.mxu0 %v1347_v13  ;;  %1282 = vmatprep.mubr.bf16.mxu1 %v1348_v14 }
  0x2f   : > { %1267 = vmatmul.mubr.bf16.gmra.mrb[4].mxu0 %v1349_v15  ;;  %1283 = vmatmul.mubr.bf16.gmra.mrb[4].mxu1 %v1350_v16 }
  0x30   : > { %1270 = vmatprep.mubr.bf16.mxu0 %v1351_v17  ;;  %1286 = vmatprep.mubr.bf16.mxu1 %v1352_v18 }
  0x37   : > { %1271 = vmatmul.mubr.bf16.gmra.mrb[8].mxu0 %v1353_v19  ;;  %1287 = vmatmul.mubr.bf16.gmra.mrb[8].mxu1 %v1354_v20 }
  0x38   : > { %1274 = vmatprep.mubr.bf16.mxu0 %v1355_v21  ;;  %1290 = vmatprep.mubr.bf16.mxu1 %v1356_v22 }
  0x3f   : > { %1275 = vmatmul.mubr.bf16.gmra.mrb[12].mxu0 %v1357_v23  ;;  %1291 = vmatmul.mubr.bf16.gmra.mrb[12].mxu1 %v1358_v24 }
  0xfa   : > { %v1264_v29 = vpop.f32.mrb[0].mxu0  ;;  %v1280_v30 = vpop.f32.mrb[0].mxu1 }
  0xfb   : > { %v644_v33 = vadd.f32 %v1264_v29, %v259_v25  ;;  %v660_v34 = vadd.f32 %v1280_v30, %v275_v26  ;;  %v515_v35 = vpop.f32.mrb[1].mxu0  ;;  %v579_v36 = vpop.f32.mrb[1].mxu1 }
  0xfc   : > { %v642_v39 = vadd.f32 %v515_v35, %v257_v27  ;;  %v658_v40 = vadd.f32 %v579_v36, %v273_v28  ;;  %v1265_v41 = vpop.f32.mrb[2].mxu0  ;;  %v1281_v42 = vpop.f32.mrb[2].mxu1 }
  0xfd   : > { %677 = vst.msk [vmem:[#allocation2 + $0x10] sm:$0xff] %vm224_vm0, %v644_v33  ;;  %693 = vst.msk [vmem:[#allocation2 + $0x90] sm:$0xff] %vm224_vm0, %v660_v34  ;;  %v645_v43 = vadd.f32 %v1265_v41, %v260_v31  ;;  %v661_v44 = vadd.f32 %v1281_v42, %v276_v32  ;;  %v518_v45 = vpop.f32.mrb[3].mxu0  ;;  %v582_v46 = vpop.f32.mrb[3].mxu1  ;;  %v267_v34 = vld [vmem:[#allocation2 + $0x50] sm:$0xff] }
  0xfe   : > { %675 = vst.msk [vmem:[#allocation2] sm:$0xff] %vm224_vm0, %v642_v39  ;;  %691 = vst.msk [vmem:[#allocation2 + $0x80] sm:$0xff] %vm224_vm0, %v658_v40  ;;  %v643_v47 = vadd.f32 %v518_v45, %v258_v37  ;;  %v659_v48 = vadd.f32 %v582_v46, %v274_v38 }
  0xff   : > { %678 = vst.msk [vmem:[#allocation2 + $0x18] sm:$0xff] %vm224_vm0, %v645_v43  ;;  %694 = vst.msk [vmem:[#allocation2 + $0x98] sm:$0xff] %vm224_vm0, %v661_v44 }
 0x100   : > { %676 = vst.msk [vmem:[#allocation2 + $0x8] sm:$0xff] %vm224_vm0, %v643_v47  ;;  %692 = vst.msk [vmem:[#allocation2 + $0x88] sm:$0xff] %vm224_vm0, %v659_v48 }
 0x102   : > { %v1268_v54 = vpop.f32.mrb[4].mxu0  ;;  %v1284_v55 = vpop.f32.mrb[4].mxu1 }
 0x103   : > { %v648_v58 = vadd.f32 %v1268_v54, %v263_v49  ;;  %v664_v59 = vadd.f32 %v1284_v55, %v279_v50  ;;  %v531_v60 = vpop.f32.mrb[5].mxu0  ;;  %v595_v61 = vpop.f32.mrb[5].mxu1 }
 0x104   : > { %v712_v0 = vld [vmem:[#allocation2 + $0x10] sm:$0xff]  ;;  %v646_v2 = vadd.f32 %v531_v60, %v261_v51  ;;  %v662_v3 = vadd.f32 %v595_v61, %v277_v52  ;;  %v1269_v4 = vpop.f32.mrb[6].mxu0  ;;  %v1285_v5 = vpop.f32.mrb[6].mxu1 }
 0x105   : > { %v728_v1 = vld [vmem:[#allocation2 + $0x90] sm:$0xff]  ;;  %v751_v6 = vadd.f32 %v1515_v53, %v712_v0  ;;  %v710_v8 = vld [vmem:[#allocation2] sm:$0xff]  ;;  %681 = vst.msk [vmem:[#allocation2 + $0x30] sm:$0xff] %vm224_vm0, %v648_v58  ;;  %697 = vst.msk [vmem:[#allocation2 + $0xb0] sm:$0xff] %vm224_vm0, %v664_v59  ;;  %v649_v10 = vadd.f32 %v1269_v4, %v264_v56  ;;  %v665_v11 = vadd.f32 %v1285_v5, %v280_v57  ;;  %v534_v12 = vpop.f32.mrb[7].mxu0  ;;  %v598_v13 = vpop.f32.mrb[7].mxu1 }
 0x106   : > { %v767_v7 = vadd.f32 %v1515_v53, %v728_v1  ;;  %v726_v9 = vld [vmem:[#allocation2 + $0x80] sm:$0xff]  ;;  %v749_v14 = vadd.f32 %v1515_v53, %v710_v8  ;;  %v713_v16 = vld [vmem:[#allocation2 + $0x18] sm:$0xff]  ;;  %679 = vst.msk [vmem:[#allocation2 + $0x20] sm:$0xff] %vm224_vm0, %v646_v2  ;;  %695 = vst.msk [vmem:[#allocation2 + $0xa0] sm:$0xff] %vm224_vm0, %v662_v3  ;;  %v647_v18 = vadd.f32 %v534_v12, %v262_v62 }
 0x107   : > { %v765_v15 = vadd.f32 %v1515_v53, %v726_v9  ;;  %v729_v17 = vld [vmem:[#allocation2 + $0x98] sm:$0xff]  ;;  %v663_v19 = vadd.f32 %v598_v13, %v278_v63  ;;  %vm783_vm2 = vcmp.gt.f32.partialorder %v751_v6, 0.0  ;;  %v815_v20 = vmul.f32 0.2, %v751_v6  ;;  %682 = vst.msk [vmem:[#allocation2 + $0x38] sm:$0xff] %vm224_vm0, %v649_v10  ;;  %698 = vst.msk [vmem:[#allocation2 + $0xb8] sm:$0xff] %vm224_vm0, %v665_v11 }
 0x108   : > { %vm799_vm3 = vcmp.gt.f32.partialorder %v767_v7, 0.0  ;;  %v831_v21 = vmul.f32 0.2, %v767_v7  ;;  %vm781_vm4 = vcmp.gt.f32.partialorder %v749_v14, 0.0  ;;  %v813_v22 = vmul.f32 0.2, %v749_v14 }
 0x109   : > { %vm797_vm5 = vcmp.gt.f32.partialorder %v765_v15, 0.0  ;;  %v829_v23 = vmul.f32 0.2, %v765_v15  ;;  %680 = vst.msk [vmem:[#allocation2 + $0x28] sm:$0xff] %vm224_vm0, %v647_v18  ;;  %696 = vst.msk [vmem:[#allocation2 + $0xa8] sm:$0xff] %vm224_vm0, %v663_v19  ;;  %v847_v24 = vsel %vm783_vm2, %v751_v6, %v815_v20  ;;  %v752_v26 = vadd.f32 %v1515_v53, %v713_v16  ;;  %v711_v28 = vld [vmem:[#allocation2 + $0x8] sm:$0xff] }
 0x10a   : > { %v863_v25 = vsel %vm799_vm3, %v767_v7, %v831_v21  ;;  %v768_v27 = vadd.f32 %v1515_v53, %v729_v17  ;;  %v727_v29 = vld [vmem:[#allocation2 + $0x88] sm:$0xff]  ;;  %v1192_v30 = vpack.c.bf16 %v847_v24, %v847_v24  ;;  %v845_v32 = vsel %vm781_vm4, %v749_v14, %v813_v22  ;;  %v1272_v35 = vpop.f32.mrb[8].mxu0  ;;  %v1538_v36 = vpop.f32.mrb[8].mxu1  ;;  %v283_v19 = vld [vmem:[#allocation2 + $0xd0] sm:$0xff] }
 0x10b   : > { %v1208_v31 = vpack.c.bf16 %v863_v25, %v863_v25  ;;  %v861_v33 = vsel %vm797_vm5, %v765_v15, %v829_v23  ;;  %v1190_v37 = vpack.c.bf16 %v845_v32, %v845_v32  ;;  %vm784_vm6 = vcmp.gt.f32.partialorder %v752_v26, 0.0  ;;  %v1540_v40 = vpop.f32.mrb[9].mxu0  ;;  %v1542_v41 = vpop.f32.mrb[9].mxu1 }
 0x10c   : > { %v1206_v38 = vpack.c.bf16 %v861_v33, %v861_v33  ;;  %v816_v39 = vmul.f32 0.2, %v752_v26  ;;  %1008 = vst.msk [vmem:[%s1534_s17 + $0x8] sm:$0xf] %vm1005_vm1, %v1192_v30  ;;  %vm800_vm7 = vcmp.gt.f32.partialorder %v768_v27, 0.0  ;;  %v750_v43 = vadd.f32 %v1515_v53, %v711_v28  ;;  %v716_v45 = vld [vmem:[#allocation2 + $0x30] sm:$0xff] }
 0x10d   : > { %1024 = vst.msk [vmem:[%s1534_s17 + $0x48] sm:$0xf] %vm1005_vm1, %v1208_v31  ;;  %v832_v42 = vmul.f32 0.2, %v768_v27  ;;  %v766_v44 = vadd.f32 %v1515_v53, %v727_v29  ;;  %v732_v46 = vld [vmem:[#allocation2 + $0xb0] sm:$0xff]  ;;  %v1550_v47 = vpop.f32.mrb[10].mxu0  ;;  %v755_v49 = vadd.f32 %v1515_v53, %v716_v45  ;;  %v652_v51 = vadd.f32 %v1272_v35, %v267_v34 }
 0x10e   : > { %1006 = vst.msk [vmem:[%s1534_s17] sm:$0xf] %vm1005_vm1, %v1190_v37  ;;  %1022 = vst.msk [vmem:[%s1534_s17 + $0x40] sm:$0xf] %vm1005_vm1, %v1206_v38  ;;  %v848_v48 = vsel %vm784_vm6, %v752_v26, %v816_v39  ;;  %v771_v50 = vadd.f32 %v1515_v53, %v732_v46  ;;  %v1558_v52 = vpop.f32.mrb[10].mxu1  ;;  %v1560_v54 = vpop.f32.mrb[11].mxu0  ;;  %v668_v34 = vadd.f32 %v1538_v36, %v283_v19 }
 0x10f   : > { %v1193_v55 = vpack.c.bf16 %v848_v48, %v848_v48  ;;  %v864_v56 = vsel %vm800_vm7, %v768_v27, %v832_v42  ;;  %vm782_vm8 = vcmp.gt.f32.partialorder %v750_v43, 0.0  ;;  %v814_v57 = vmul.f32 0.2, %v750_v43  ;;  %v714_v58 = vld [vmem:[#allocation2 + $0x20] sm:$0xff]  ;;  %v1563_v60 = vpop.f32.mrb[11].mxu1  ;;  %v717_v63 = vld [vmem:[#allocation2 + $0x38] sm:$0xff] }
 0x110   : > { %v730_v59 = vld [vmem:[#allocation2 + $0xa0] sm:$0xff]  ;;  %v1209_v61 = vpack.c.bf16 %v864_v56, %v864_v56  ;;  %vm798_vm9 = vcmp.gt.f32.partialorder %v766_v44, 0.0  ;;  %v830_v62 = vmul.f32 0.2, %v766_v44  ;;  %vm787_vm10 = vcmp.gt.f32.partialorder %v755_v49, 0.0  ;;  %685 = vst.msk [vmem:[#allocation2 + $0x50] sm:$0xff] %vm224_vm0, %v652_v51 }
 0x111   : > { %1009 = vst.msk [vmem:[%s1534_s17 + $0xc] sm:$0xf] %vm1005_vm1, %v1193_v55  ;;  %v846_v0 = vsel %vm782_vm8, %v750_v43, %v814_v57  ;;  %v819_v1 = vmul.f32 0.2, %v755_v49  ;;  %vm803_vm11 = vcmp.gt.f32.partialorder %v771_v50, 0.0  ;;  %v753_v5 = vadd.f32 %v1515_v53, %v714_v58  ;;  %v733_v11 = vld [vmem:[#allocation2 + $0xb8] sm:$0xff] }
 0x112   : > { %v835_v2 = vmul.f32 0.2, %v771_v50  ;;  %1025 = vst.msk [vmem:[%s1534_s17 + $0x4c] sm:$0xf] %vm1005_vm1, %v1209_v61  ;;  %v1191_v3 = vpack.c.bf16 %v846_v0, %v846_v0  ;;  %v862_v4 = vsel %vm798_vm9, %v766_v44, %v830_v62  ;;  %v769_v6 = vadd.f32 %v1515_v53, %v730_v59  ;;  %v715_v12 = vld [vmem:[#allocation2 + $0x28] sm:$0xff]  ;;  %v1573_v14 = vpop.f32.mrb[12].mxu0 }
 0x113   : > { %v1207_v7 = vpack.c.bf16 %v862_v4, %v862_v4  ;;  %v851_v8 = vsel %vm787_vm10, %v755_v49, %v819_v1  ;;  %v756_v10 = vadd.f32 %v1515_v53, %v717_v63  ;;  %v731_v13 = vld [vmem:[#allocation2 + $0xa8] sm:$0xff]  ;;  %v1575_v15 = vpop.f32.mrb[12].mxu1  ;;  %vm785_vm12 = vcmp.gt.f32.partialorder %v753_v5, 0.0  ;;  %v1579_v20 = vpop.f32.mrb[13].mxu0  ;;  %v265_v35 = vld [vmem:[#allocation2 + $0x40] sm:$0xff]  ;;  %v268_v45 = vld [vmem:[#allocation2 + $0x58] sm:$0xff] }
 0x114   : > { %v867_v9 = vsel %vm803_vm11, %v771_v50, %v835_v2  ;;  %1007 = vst.msk [vmem:[%s1534_s17 + $0x4] sm:$0xf] %vm1005_vm1, %v1191_v3  ;;  %v1196_v16 = vpack.c.bf16 %v851_v8, %v851_v8  ;;  %v817_v18 = vmul.f32 0.2, %v753_v5  ;;  %v1581_v21 = vpop.f32.mrb[13].mxu1  ;;  %vm801_vm13 = vcmp.gt.f32.partialorder %v769_v6, 0.0 }
 0x115   : > { %v1212_v17 = vpack.c.bf16 %v867_v9, %v867_v9  ;;  %1023 = vst.msk [vmem:[%s1534_s17 + $0x44] sm:$0xf] %vm1005_vm1, %v1207_v7  ;;  %v833_v22 = vmul.f32 0.2, %v769_v6  ;;  %vm788_vm14 = vcmp.gt.f32.partialorder %v756_v10, 0.0  ;;  %v772_v25 = vadd.f32 %v1515_v53, %v733_v11  ;;  %v1592_v28 = vpop.f32.mrb[14].mxu0 }
 0x116   : > { %v820_v23 = vmul.f32 0.2, %v756_v10  ;;  %1012 = vst.msk [vmem:[%s1534_s17 + $0x18] sm:$0xf] %vm1005_vm1, %v1196_v16  ;;  %v849_v24 = vsel %vm785_vm12, %v753_v5, %v817_v18  ;;  %v754_v26 = vadd.f32 %v1515_v53, %v715_v12  ;;  %v770_v27 = vadd.f32 %v1515_v53, %v731_v13  ;;  %v1594_v29 = vpop.f32.mrb[14].mxu1  ;;  %v281_v37 = vld [vmem:[#allocation2 + $0xc0] sm:$0xff] }
 0x117   : > { %1028 = vst.msk [vmem:[%s1534_s17 + $0x58] sm:$0xf] %vm1005_vm1, %v1212_v17  ;;  %v1194_v30 = vpack.c.bf16 %v849_v24, %v849_v24  ;;  %v865_v31 = vsel %vm801_vm13, %v769_v6, %v833_v22  ;;  %v720_v33 = vld [vmem:[#allocation2 + $0x50] sm:$0xff]  ;;  %v566_v38 = vpop.f32.mrb[15].mxu0  ;;  %v1597_v39 = vpop.f32.mrb[15].mxu1  ;;  %vm804_vm15 = vcmp.gt.f32.partialorder %v772_v25, 0.0  ;;  %v650_v51 = vadd.f32 %v1540_v40, %v265_v35 }
 0x118   : > { %v852_v32 = vsel %vm788_vm14, %v756_v10, %v820_v23  ;;  %v1210_v42 = vpack.c.bf16 %v865_v31, %v865_v31  ;;  %v836_v44 = vmul.f32 0.2, %v772_v25  ;;  %v284_v46 = vld [vmem:[#allocation2 + $0xd8] sm:$0xff]  ;;  %vm786_vm2 = vcmp.gt.f32.partialorder %v754_v26, 0.0  ;;  %701 = vst.msk [vmem:[#allocation2 + $0xd0] sm:$0xff] %vm224_vm0, %v668_v34  ;;  %v266_v56 = vld [vmem:[#allocation2 + $0x48] sm:$0xff] }
 0x119   : > { %v1197_v43 = vpack.c.bf16 %v852_v32, %v852_v32  ;;  %1010 = vst.msk [vmem:[%s1534_s17 + $0x10] sm:$0xf] %vm1005_vm1, %v1194_v30  ;;  %v818_v48 = vmul.f32 0.2, %v754_v26  ;;  %vm802_vm3 = vcmp.gt.f32.partialorder %v770_v27, 0.0  ;;  %v759_v50 = vadd.f32 %v1515_v53, %v720_v33  ;;  %v282_v57 = vld [vmem:[#allocation2 + $0xc8] sm:$0xff] }
 0x11a   : > { %v834_v49 = vmul.f32 0.2, %v770_v27  ;;  %1026 = vst.msk [vmem:[%s1534_s17 + $0x50] sm:$0xf] %vm1005_vm1, %v1210_v42  ;;  %v868_v36 = vsel %vm804_vm15, %v772_v25, %v836_v44  ;;  %v666_v55 = vadd.f32 %v1542_v41, %v281_v37  ;;  %v271_v58 = vld [vmem:[#allocation2 + $0x70] sm:$0xff]  ;;  %v653_v63 = vadd.f32 %v1550_v47, %v268_v45  ;;  %v269_v1 = vld [vmem:[#allocation2 + $0x60] sm:$0xff] }
 0x11b   : > { %1013 = vst.msk [vmem:[%s1534_s17 + $0x1c] sm:$0xf] %vm1005_vm1, %v1197_v43  ;;  %v1213_v59 = vpack.c.bf16 %v868_v36, %v868_v36  ;;  %v850_v61 = vsel %vm786_vm2, %v754_v26, %v818_v48  ;;  %v287_v0 = vld [vmem:[#allocation2 + $0xf0] sm:$0xff]  ;;  %v285_v2 = vld [vmem:[#allocation2 + $0xe0] sm:$0xff]  ;;  %vm791_vm4 = vcmp.gt.f32.partialorder %v759_v50, 0.0  ;;  %v272_v41 = vld [vmem:[#allocation2 + $0x78] sm:$0xff]  ;;  %v669_v47 = vadd.f32 %v1558_v52, %v284_v46 }
 0x11c   : > { %v866_v62 = vsel %vm802_vm3, %v770_v27, %v834_v49  ;;  %v1195_v3 = vpack.c.bf16 %v850_v61, %v850_v61  ;;  %v823_v40 = vmul.f32 0.2, %v759_v50  ;;  %683 = vst.msk [vmem:[#allocation2 + $0x40] sm:$0xff] %vm224_vm0, %v650_v51  ;;  %699 = vst.msk [vmem:[#allocation2 + $0xc0] sm:$0xff] %vm224_vm0, %v666_v55  ;;  %v288_v5 = vld [vmem:[#allocation2 + $0xf8] sm:$0xff]  ;;  %v270_v6 = vld [vmem:[#allocation2 + $0x68] sm:$0xff]  ;;  %v651_v7 = vadd.f32 %v1560_v54, %v266_v56 }
 0x11d   : > { %v1211_v4 = vpack.c.bf16 %v866_v62, %v866_v62  ;;  %1029 = vst.msk [vmem:[%s1534_s17 + $0x5c] sm:$0xf] %vm1005_vm1, %v1213_v59  ;;  %v667_v8 = vadd.f32 %v1563_v60, %v282_v57  ;;  %v656_v9 = vadd.f32 %v1573_v14, %v271_v58  ;;  %v286_v10 = vld [vmem:[#allocation2 + $0xe8] sm:$0xff]  ;;  %v672_v12 = vadd.f32 %v1575_v15, %v287_v0 }
 0x11e   : > { %686 = vst.msk [vmem:[#allocation2 + $0x58] sm:$0xff] %vm224_vm0, %v653_v63  ;;  %v855_v11 = vsel %vm791_vm4, %v759_v50, %v823_v40  ;;  %v654_v13 = vadd.f32 %v1579_v20, %v269_v1  ;;  %v670_v52 = vadd.f32 %v1581_v21, %v285_v2  ;;  %702 = vst.msk [vmem:[#allocation2 + $0xd8] sm:$0xff] %vm224_vm0, %v669_v47 }
 0x11f   : > { %1011 = vst.msk [vmem:[%s1534_s17 + $0x14] sm:$0xf] %vm1005_vm1, %v1195_v3  ;;  %1027 = vst.msk [vmem:[%s1534_s17 + $0x54] sm:$0xf] %vm1005_vm1, %v1211_v4  ;;  %v1200_v16 = vpack.c.bf16 %v855_v11, %v855_v11  ;;  %v657_v54 = vadd.f32 %v1592_v28, %v272_v41  ;;  %v673_v60 = vadd.f32 %v1594_v29, %v288_v5  ;;  %v736_v15 = vld [vmem:[#allocation2 + $0xd0] sm:$0xff] }
 0x120   : > { %684 = vst.msk [vmem:[#allocation2 + $0x48] sm:$0xff] %vm224_vm0, %v651_v7  ;;  %700 = vst.msk [vmem:[#allocation2 + $0xc8] sm:$0xff] %vm224_vm0, %v667_v8  ;;  %v655_v14 = vadd.f32 %v566_v38, %v270_v6  ;;  %v671_v17 = vadd.f32 %v1597_v39, %v286_v10  ;;  %v775_v18 = vadd.f32 %v1515_v53, %v736_v15 }
 0x121   : > { %689 = vst.msk [vmem:[#allocation2 + $0x70] sm:$0xff] %vm224_vm0, %v656_v9  ;;  %705 = vst.msk [vmem:[#allocation2 + $0xf0] sm:$0xff] %vm224_vm0, %v672_v12 }
 0x122   : > { %687 = vst.msk [vmem:[#allocation2 + $0x60] sm:$0xff] %vm224_vm0, %v654_v13  ;;  %703 = vst.msk [vmem:[#allocation2 + $0xe0] sm:$0xff] %vm224_vm0, %v670_v52  ;;  %vm807_vm5 = vcmp.gt.f32.partialorder %v775_v18, 0.0  ;;  %v839_v19 = vmul.f32 0.2, %v775_v18 }
 0x123   : > { %1016 = vst.msk [vmem:[%s1534_s17 + $0x28] sm:$0xf] %vm1005_vm1, %v1200_v16  ;;  %v718_v20 = vld [vmem:[#allocation2 + $0x40] sm:$0xff] }
 0x124   : > { %690 = vst.msk [vmem:[#allocation2 + $0x78] sm:$0xff] %vm224_vm0, %v657_v54  ;;  %706 = vst.msk [vmem:[#allocation2 + $0xf8] sm:$0xff] %vm224_vm0, %v673_v60  ;;  %v734_v21 = vld [vmem:[#allocation2 + $0xc0] sm:$0xff]  ;;  %v757_v22 = vadd.f32 %v1515_v53, %v718_v20  ;;  %v871_v25 = vsel %vm807_vm5, %v775_v18, %v839_v19 }
 0x125   : > { %688 = vst.msk [vmem:[#allocation2 + $0x68] sm:$0xff] %vm224_vm0, %v655_v14  ;;  %704 = vst.msk [vmem:[#allocation2 + $0xe8] sm:$0xff] %vm224_vm0, %v671_v17  ;;  %v773_v23 = vadd.f32 %v1515_v53, %v734_v21  ;;  %v721_v24 = vld [vmem:[#allocation2 + $0x58] sm:$0xff]  ;;  %v1216_v27 = vpack.c.bf16 %v871_v25, %v871_v25 }
 0x126   : > { %v760_v26 = vadd.f32 %v1515_v53, %v721_v24  ;;  %vm789_vm6 = vcmp.gt.f32.partialorder %v757_v22, 0.0  ;;  %v821_v28 = vmul.f32 0.2, %v757_v22  ;;  %v737_v29 = vld [vmem:[#allocation2 + $0xd8] sm:$0xff] }
 0x127   : > { %vm805_vm7 = vcmp.gt.f32.partialorder %v773_v23, 0.0  ;;  %v719_v30 = vld [vmem:[#allocation2 + $0x48] sm:$0xff]  ;;  %v837_v31 = vmul.f32 0.2, %v773_v23  ;;  %v776_v33 = vadd.f32 %v1515_v53, %v737_v29  ;;  %1032 = vst.msk [vmem:[%s1534_s17 + $0x68] sm:$0xf] %vm1005_vm1, %v1216_v27 }
 0x128   : > { %vm792_vm0 = vcmp.gt.f32.partialorder %v760_v26, 0.0  ;;  %v824_v32 = vmul.f32 0.2, %v760_v26  ;;  %v735_v34 = vld [vmem:[#allocation2 + $0xc8] sm:$0xff]  ;;  %v853_v35 = vsel %vm789_vm6, %v757_v22, %v821_v28  ;;  %v758_v37 = vadd.f32 %v1515_v53, %v719_v30  ;;  %v724_v39 = vld [vmem:[#allocation2 + $0x70] sm:$0xff] }
 0x129   : > { %v774_v38 = vadd.f32 %v1515_v53, %v735_v34  ;;  %v1198_v42 = vpack.c.bf16 %v853_v35, %v853_v35  ;;  %v869_v43 = vsel %vm805_vm7, %v773_v23, %v837_v31  ;;  %vm808_vm8 = vcmp.gt.f32.partialorder %v776_v33, 0.0  ;;  %v740_v45 = vld [vmem:[#allocation2 + $0xf0] sm:$0xff]  ;;  %v722_v46 = vld [vmem:[#allocation2 + $0x60] sm:$0xff] }
 0x12a   : > { %v856_v44 = vsel %vm792_vm0, %v760_v26, %v824_v32  ;;  %v738_v48 = vld [vmem:[#allocation2 + $0xe0] sm:$0xff]  ;;  %v1214_v49 = vpack.c.bf16 %v869_v43, %v869_v43  ;;  %v840_v50 = vmul.f32 0.2, %v776_v33  ;;  %vm790_vm9 = vcmp.gt.f32.partialorder %v758_v37, 0.0 }
 0x12b   : > { %v1201_v36 = vpack.c.bf16 %v856_v44, %v856_v44  ;;  %1014 = vst.msk [vmem:[%s1534_s17 + $0x20] sm:$0xf] %vm1005_vm1, %v1198_v42  ;;  %v822_v51 = vmul.f32 0.2, %v758_v37  ;;  %vm806_vm10 = vcmp.gt.f32.partialorder %v774_v38, 0.0  ;;  %v763_v56 = vadd.f32 %v1515_v53, %v724_v39  ;;  %v725_v1 = vld [vmem:[#allocation2 + $0x78] sm:$0xff] }
 0x12c   : > { %v838_v55 = vmul.f32 0.2, %v774_v38  ;;  %1030 = vst.msk [vmem:[%s1534_s17 + $0x60] sm:$0xf] %vm1005_vm1, %v1214_v49  ;;  %v872_v57 = vsel %vm808_vm8, %v776_v33, %v840_v50  ;;  %v779_v58 = vadd.f32 %v1515_v53, %v740_v45  ;;  %v761_v59 = vadd.f32 %v1515_v53, %v722_v46  ;;  %v741_v2 = vld [vmem:[#allocation2 + $0xf8] sm:$0xff]  ;;  %v723_v41 = vld [vmem:[#allocation2 + $0x68] sm:$0xff] }
 0x12d   : > { %1017 = vst.msk [vmem:[%s1534_s17 + $0x2c] sm:$0xf] %vm1005_vm1, %v1201_v36  ;;  %v777_v61 = vadd.f32 %v1515_v53, %v738_v48  ;;  %v1217_v62 = vpack.c.bf16 %v872_v57, %v872_v57  ;;  %v854_v63 = vsel %vm790_vm9, %v758_v37, %v822_v51  ;;  %vm795_vm11 = vcmp.gt.f32.partialorder %v763_v56, 0.0  ;;  %v739_v52 = vld [vmem:[#allocation2 + $0xe8] sm:$0xff] }
 0x12e   : > { %v870_v0 = vsel %vm806_vm10, %v774_v38, %v838_v55  ;;  %v1199_v3 = vpack.c.bf16 %v854_v63, %v854_v63  ;;  %v827_v40 = vmul.f32 0.2, %v763_v56  ;;  %vm811_vm12 = vcmp.gt.f32.partialorder %v779_v58, 0.0 }
 0x12f   : > { %v1215_v4 = vpack.c.bf16 %v870_v0, %v870_v0  ;;  %1033 = vst.msk [vmem:[%s1534_s17 + $0x6c] sm:$0xf] %vm1005_vm1, %v1217_v62  ;;  %v843_v5 = vmul.f32 0.2, %v779_v58  ;;  %vm793_vm13 = vcmp.gt.f32.partialorder %v761_v59, 0.0  ;;  %vm809_vm14 = vcmp.gt.f32.partialorder %v777_v61, 0.0 }
 0x130   : > { %v825_v6 = vmul.f32 0.2, %v761_v59  ;;  %1015 = vst.msk [vmem:[%s1534_s17 + $0x24] sm:$0xf] %vm1005_vm1, %v1199_v3  ;;  %v859_v47 = vsel %vm795_vm11, %v763_v56, %v827_v40  ;;  %v841_v7 = vmul.f32 0.2, %v777_v61  ;;  %v764_v8 = vadd.f32 %v1515_v53, %v725_v1 }
 0x131   : > { %1031 = vst.msk [vmem:[%s1534_s17 + $0x64] sm:$0xf] %vm1005_vm1, %v1215_v4  ;;  %v780_v9 = vadd.f32 %v1515_v53, %v741_v2  ;;  %v1204_v10 = vpack.c.bf16 %v859_v47, %v859_v47  ;;  %v875_v11 = vsel %vm811_vm12, %v779_v58, %v843_v5  ;;  %v762_v13 = vadd.f32 %v1515_v53, %v723_v41 }
 0x132   : > { %v857_v12 = vsel %vm793_vm13, %v761_v59, %v825_v6  ;;  %v1220_v16 = vpack.c.bf16 %v875_v11, %v875_v11  ;;  %v873_v60 = vsel %vm809_vm14, %v777_v61, %v841_v7  ;;  %vm796_vm15 = vcmp.gt.f32.partialorder %v764_v8, 0.0 }
 0x133   : > { %v1202_v54 = vpack.c.bf16 %v857_v12, %v857_v12  ;;  %1020 = vst.msk [vmem:[%s1534_s17 + $0x38] sm:$0xf] %vm1005_vm1, %v1204_v10  ;;  %v1218_v14 = vpack.c.bf16 %v873_v60, %v873_v60  ;;  %v828_v15 = vmul.f32 0.2, %v764_v8  ;;  %vm812_vm2 = vcmp.gt.f32.partialorder %v780_v9, 0.0 }
 0x134   : > { %v844_v17 = vmul.f32 0.2, %v780_v9  ;;  %1036 = vst.msk [vmem:[%s1534_s17 + $0x78] sm:$0xf] %vm1005_vm1, %v1220_v16  ;;  %vm794_vm3 = vcmp.gt.f32.partialorder %v762_v13, 0.0  ;;  %v778_v19 = vadd.f32 %v1515_v53, %v739_v52 }
 0x135   : > { %1018 = vst.msk [vmem:[%s1534_s17 + $0x30] sm:$0xf] %vm1005_vm1, %v1202_v54  ;;  %v826_v18 = vmul.f32 0.2, %v762_v13  ;;  %1034 = vst.msk [vmem:[%s1534_s17 + $0x70] sm:$0xf] %vm1005_vm1, %v1218_v14  ;;  %v860_v20 = vsel %vm796_vm15, %v764_v8, %v828_v15 }
 0x136   : > { %v876_v21 = vsel %vm812_vm2, %v780_v9, %v844_v17  ;;  %v1205_v22 = vpack.c.bf16 %v860_v20, %v860_v20  ;;  %vm810_vm4 = vcmp.gt.f32.partialorder %v778_v19, 0.0  ;;  %v842_v26 = vmul.f32 0.2, %v778_v19 }
 0x137   : > { %v1221_v23 = vpack.c.bf16 %v876_v21, %v876_v21  ;;  %v858_v24 = vsel %vm794_vm3, %v762_v13, %v826_v18 }
 0x138   : > { %v1203_v25 = vpack.c.bf16 %v858_v24, %v858_v24  ;;  %1021 = vst.msk [vmem:[%s1534_s17 + $0x3c] sm:$0xf] %vm1005_vm1, %v1205_v22  ;;  %v874_v27 = vsel %vm810_vm4, %v778_v19, %v842_v26 }
 0x139   : > { %1037 = vst.msk [vmem:[%s1534_s17 + $0x7c] sm:$0xf] %vm1005_vm1, %v1221_v23  ;;  %v1219_v28 = vpack.c.bf16 %v874_v27, %v874_v27 }
 0x13a   : > { %1019 = vst.msk [vmem:[%s1534_s17 + $0x34] sm:$0xf] %vm1005_vm1, %v1203_v25 }
 0x13b   : > { %1035 = vst.msk [vmem:[%s1534_s17 + $0x74] sm:$0xf] %vm1005_vm1, %v1219_v28 }
 0x13c PF: > { %s13_s14 = sadd.s32 1, %s1381_s14   ;;  %s1701_s12 = smov %s1377_s13 }
 0x13d   : > { %p10_p5 = scmp.ge.s32.totalorder %s13_s14, 4   ;;  %s1702_s13 = smov %s1704_s15 }
 0x13f   :  { %12 = sbr.rel (!%p10_p5) target bundleno = 2 (0x2), region = 73 }

// kernel: discriminator_forward.7
= control target key start
LH: loop header
LB: loop body
LE: loop exit
PB: predicated region body
PF: predicated region fallthrough
CT: control target
= control target key end

     0   :  { %s1830_s15 = smov 0   ;;  %s1832_s16 = smov 0   ;;  %s2063_s0 = inlined_call_operand.vmem [shape: bf16[128,1024], index: 0, kind: input, shape index: {}]   ;;  %s2064_s1 = inlined_call_operand.vmem [shape: bf16[1024,128], index: 1, kind: input, shape index: {}]   ;;  %s2065_s2 = inlined_call_operand.vmem [shape: bf16[128,128], index: 2, kind: output, shape index: {0}]   ;;  %s2066_s3 = inlined_call_operand.vmem [shape: f32[8,128], index: 3, kind: output, shape index: {1}]   ;;  %s2067_s4 = inlined_call_operand.vmem [shape: f32[8,128], index: 4, kind: output, shape index: {2}]  }
   0x1   :  { %s1834_s17 = smov 0   ;;  %s1836_s18 = smov 0  }
   0x2   :  { %s1838_s19 = smov 0  }
   0x3 LB: > { %s24_s20 = sadd.s32 1, %s1798_s18  ;;  %p43_p1 = scmp.ne.s32.totalorder %s1790_s16, %s1786_s15  ;;  %s1802_s19 = sphi %s1838_s19, %s15_s19   ;;  %s1798_s18 = sphi %s1836_s18, %s2071_s18   ;;  %s1794_s17 = sphi %s1834_s17, %s2070_s17   ;;  %s1790_s16 = sphi %s1832_s16, %s2069_s16   ;;  %s1786_s15 = sphi %s1830_s15, %s2068_s15  }
   0x4   : > { %p25_p0 = scmp.ge.s32.totalorder %s24_s20, 2  ;;  %p44_p2 = scmp.eq.s32.totalorder %s1802_s19, 0 }
   0x5   : > { %s36_s22 = sadd.s32 1, %s1790_s16  ;;  %p1355_p5 = scmp.ge.s32.totalorder %s1802_s19, 2 }
   0x6   : > { %s2073_s20 = smov (%p25_p0, %s24_s20), 0  ;;  %p45_p3 = por %p44_p2, %p43_p1 }
   0x7   : > { %s32_s21 = ssub.s32 %s1798_s18, %s2073_s20  ;;  %173 = sbr.rel (%p1355_p5) target bundleno = 34 (0x22), region = 16 }
   0x8   : > { %p34_p4 = scmp.eq.s32.totalorder %s32_s21, 0 }
   0xa   : > { %s1865_s23 = scalar_select %p34_p4, %s1790_s16, %s36_s22  }
   0xe   : > { %176 = sbr.rel (!%p45_p3) target bundleno = 34 (0x22), region = 20  ;;  %s178_s24 = sand.u32 (%p45_p3), 1, %s1790_s16  }
   0xf   : > { %s1451_s25 = sshll.u32 (%p45_p3), %s1798_s18, 4  ;;  %s1356_s26 = sshll.u32 (%p45_p3), %s178_s24, 8 }
  0x10   : > { %s1873_s29 = scalar_lea.vmem (%p45_p3), %s2063_s0, %s1451_s25  ;;  %s1878_s30 = scalar_lea.vmem (%p45_p3), [#allocation3], %s1356_s26 }
  0x11   : > { %v199_v0 = vld [vmem:[%s1873_s29] sm:$0xff] (%p45_p3)  ;;  %v201_v1 = vld [vmem:[%s1873_s29 + $0x8] sm:$0xff] (%p45_p3) }
  0x12   : > { %v203_v2 = vld [vmem:[%s1873_s29 + $0x20] sm:$0xff] (%p45_p3)  ;;  %200 = vst [vmem:[%s1878_s30] sm:$0xff] (%p45_p3), %v199_v0  ;;  %202 = vst [vmem:[%s1878_s30 + $0x8] sm:$0xff] (%p45_p3), %v201_v1  ;;  %v205_v3 = vld [vmem:[%s1873_s29 + $0x28] sm:$0xff] (%p45_p3) }
  0x13   : > { %204 = vst [vmem:[%s1878_s30 + $0x10] sm:$0xff] (%p45_p3), %v203_v2  ;;  %v207_v4 = vld [vmem:[%s1873_s29 + $0x40] sm:$0xff] (%p45_p3)  ;;  %v209_v5 = vld [vmem:[%s1873_s29 + $0x48] sm:$0xff] (%p45_p3)  ;;  %206 = vst [vmem:[%s1878_s30 + $0x18] sm:$0xff] (%p45_p3), %v205_v3 }
  0x14   : > { %208 = vst [vmem:[%s1878_s30 + $0x20] sm:$0xff] (%p45_p3), %v207_v4  ;;  %210 = vst [vmem:[%s1878_s30 + $0x28] sm:$0xff] (%p45_p3), %v209_v5  ;;  %v211_v6 = vld [vmem:[%s1873_s29 + $0x60] sm:$0xff] (%p45_p3)  ;;  %v213_v7 = vld [vmem:[%s1873_s29 + $0x68] sm:$0xff] (%p45_p3) }
  0x15   : > { %v215_v8 = vld [vmem:[%s1873_s29 + $0x80] sm:$0xff]  ;;  %212 = vst [vmem:[%s1878_s30 + $0x30] sm:$0xff] %v211_v6  ;;  %214 = vst [vmem:[%s1878_s30 + $0x38] sm:$0xff] %v213_v7  ;;  %v217_v9 = vld [vmem:[%s1873_s29 + $0x88] sm:$0xff] }
  0x16   : > { %216 = vst [vmem:[%s1878_s30 + $0x40] sm:$0xff] %v215_v8  ;;  %v219_v10 = vld [vmem:[%s1873_s29 + $0xa0] sm:$0xff]  ;;  %v221_v11 = vld [vmem:[%s1873_s29 + $0xa8] sm:$0xff]  ;;  %218 = vst [vmem:[%s1878_s30 + $0x48] sm:$0xff] %v217_v9 }
  0x17   : > { %220 = vst [vmem:[%s1878_s30 + $0x50] sm:$0xff] %v219_v10  ;;  %222 = vst [vmem:[%s1878_s30 + $0x58] sm:$0xff] %v221_v11  ;;  %v223_v12 = vld [vmem:[%s1873_s29 + $0xc0] sm:$0xff]  ;;  %v225_v13 = vld [vmem:[%s1873_s29 + $0xc8] sm:$0xff] }
  0x18   : > { %v227_v14 = vld [vmem:[%s1873_s29 + $0xe0] sm:$0xff]  ;;  %224 = vst [vmem:[%s1878_s30 + $0x60] sm:$0xff] %v223_v12  ;;  %226 = vst [vmem:[%s1878_s30 + $0x68] sm:$0xff] %v225_v13  ;;  %v229_v15 = vld [vmem:[%s1873_s29 + $0xe8] sm:$0xff] }
  0x19   : > { %228 = vst [vmem:[%s1878_s30 + $0x70] sm:$0xff] %v227_v14  ;;  %v231_v16 = vld [vmem:[%s1873_s29 + $0x100] sm:$0xff]  ;;  %v233_v17 = vld [vmem:[%s1873_s29 + $0x108] sm:$0xff]  ;;  %230 = vst [vmem:[%s1878_s30 + $0x78] sm:$0xff] %v229_v15 }
  0x1a   : > { %232 = vst [vmem:[%s1878_s30 + $0x80] sm:$0xff] %v231_v16  ;;  %234 = vst [vmem:[%s1878_s30 + $0x88] sm:$0xff] %v233_v17  ;;  %v235_v18 = vld [vmem:[%s1873_s29 + $0x120] sm:$0xff]  ;;  %v237_v19 = vld [vmem:[%s1873_s29 + $0x128] sm:$0xff] }
  0x1b   : > { %v239_v20 = vld [vmem:[%s1873_s29 + $0x140] sm:$0xff]  ;;  %236 = vst [vmem:[%s1878_s30 + $0x90] sm:$0xff] %v235_v18  ;;  %238 = vst [vmem:[%s1878_s30 + $0x98] sm:$0xff] %v237_v19  ;;  %v241_v21 = vld [vmem:[%s1873_s29 + $0x148] sm:$0xff] }
  0x1c   : > { %240 = vst [vmem:[%s1878_s30 + $0xa0] sm:$0xff] %v239_v20  ;;  %v243_v22 = vld [vmem:[%s1873_s29 + $0x160] sm:$0xff]  ;;  %v245_v23 = vld [vmem:[%s1873_s29 + $0x168] sm:$0xff]  ;;  %242 = vst [vmem:[%s1878_s30 + $0xa8] sm:$0xff] %v241_v21 }
  0x1d   : > { %244 = vst [vmem:[%s1878_s30 + $0xb0] sm:$0xff] %v243_v22  ;;  %246 = vst [vmem:[%s1878_s30 + $0xb8] sm:$0xff] %v245_v23  ;;  %v247_v24 = vld [vmem:[%s1873_s29 + $0x180] sm:$0xff]  ;;  %v249_v25 = vld [vmem:[%s1873_s29 + $0x188] sm:$0xff] }
  0x1e   : > { %v251_v26 = vld [vmem:[%s1873_s29 + $0x1a0] sm:$0xff]  ;;  %248 = vst [vmem:[%s1878_s30 + $0xc0] sm:$0xff] %v247_v24  ;;  %250 = vst [vmem:[%s1878_s30 + $0xc8] sm:$0xff] %v249_v25  ;;  %v253_v27 = vld [vmem:[%s1873_s29 + $0x1a8] sm:$0xff] }
  0x1f   : > { %252 = vst [vmem:[%s1878_s30 + $0xd0] sm:$0xff] %v251_v26  ;;  %v255_v28 = vld [vmem:[%s1873_s29 + $0x1c0] sm:$0xff]  ;;  %v257_v29 = vld [vmem:[%s1873_s29 + $0x1c8] sm:$0xff]  ;;  %254 = vst [vmem:[%s1878_s30 + $0xd8] sm:$0xff] %v253_v27 }
  0x20   : > { %256 = vst [vmem:[%s1878_s30 + $0xe0] sm:$0xff] %v255_v28  ;;  %258 = vst [vmem:[%s1878_s30 + $0xe8] sm:$0xff] %v257_v29  ;;  %v259_v30 = vld [vmem:[%s1873_s29 + $0x1e0] sm:$0xff]  ;;  %v261_v31 = vld [vmem:[%s1873_s29 + $0x1e8] sm:$0xff] }
  0x21   : > { %260 = vst [vmem:[%s1878_s30 + $0xf0] sm:$0xff] %v259_v30  ;;  %262 = vst [vmem:[%s1878_s30 + $0xf8] sm:$0xff] %v261_v31 }
  0x22 PF: > { %p1359_p6 = scmp.ge.s32.totalorder %s1802_s19, 1  ;;  %p276_p7 = scmp.lt.s32.totalorder %s1802_s19, 3 }
  0x24   : > { %p277_p8 = pnand %p1359_p6, %p276_p7 }
  0x25   : > { %s283_s5 = sand.u32 (!%p277_p8), 1, %s1786_s15   ;;  %s1361_s6 = sshll.u32 (!%p277_p8), %s1794_s17, 6 }
  0x26   : > { %280 = sbr.rel (%p277_p8) target bundleno = 392 (0x188), region = 47  ;;  %s1360_s7 = sshll.u32 (!%p277_p8), %s283_s5, 8 }
  0x27   : > { %p324_p9 = scmp.lt.s32.totalorder (!%p277_p8), %s1361_s6, 127  ;;  %s1950_s12 = scalar_lea.vmem (!%p277_p8), [#allocation3], %s1360_s7 }
  0x28   : > { %p1363_p10 = scmp.ne.s32.totalorder (!%p277_p8), %s1794_s17, 0 }
  0x2d   : > { %s2075_s6 = smov (!%p324_p9, %s1361_s6), 127  ;;  %347 = sbr.rel (%p1363_p10) target bundleno = 55 (0x37), region = 55 }
  0x2e   : > { %s1362_s8 = sshll.u32 %s2075_s6, 2  ;;  %v1804_v32 = vmov (!%p1363_p10), 0.0  }
  0x2f   : > { %s1948_s11 = scalar_lea.vmem %s2064_s1, %s1362_s8  ;;  %348 = vst [vmem:[#allocation2] sm:$0xff] (!%p1363_p10), %v1804_v32  ;;  %349 = vst [vmem:[#allocation2 + $0x8] sm:$0xff] (!%p1363_p10), %v1804_v32 }
  0x30   : > { %350 = vst [vmem:[#allocation2 + $0x10] sm:$0xff] (!%p1363_p10), %v1804_v32  ;;  %351 = vst [vmem:[#allocation2 + $0x18] sm:$0xff] (!%p1363_p10), %v1804_v32 }
  0x31   : > { %352 = vst [vmem:[#allocation2 + $0x20] sm:$0xff] (!%p1363_p10), %v1804_v32  ;;  %353 = vst [vmem:[#allocation2 + $0x28] sm:$0xff] (!%p1363_p10), %v1804_v32 }
  0x32   : > { %354 = vst [vmem:[#allocation2 + $0x30] sm:$0xff] (!%p1363_p10), %v1804_v32  ;;  %355 = vst [vmem:[#allocation2 + $0x38] sm:$0xff] (!%p1363_p10), %v1804_v32 }
  0x33   : > { %356 = vst [vmem:[#allocation2 + $0x40] sm:$0xff] (!%p1363_p10), %v1804_v32  ;;  %357 = vst [vmem:[#allocation2 + $0x48] sm:$0xff] (!%p1363_p10), %v1804_v32 }
  0x34   : > { %358 = vst [vmem:[#allocation2 + $0x50] sm:$0xff] %v1804_v32  ;;  %359 = vst [vmem:[#allocation2 + $0x58] sm:$0xff] %v1804_v32 }
  0x35   : > { %360 = vst [vmem:[#allocation2 + $0x60] sm:$0xff] %v1804_v32  ;;  %361 = vst [vmem:[#allocation2 + $0x68] sm:$0xff] %v1804_v32 }
  0x36   : > { %362 = vst [vmem:[#allocation2 + $0x70] sm:$0xff] %v1804_v32  ;;  %363 = vst [vmem:[#allocation2 + $0x78] sm:$0xff] %v1804_v32 }
  0x37 PF: > { %v1684_v33 = vld [vmem:[%s1948_s11 + $0x40] sm:$0xff]   ;;  %v1688_v37 = vld [vmem:[%s1948_s11 + $0x48] sm:$0xff]   ;;  %v1692_v41 = vld [vmem:[%s1948_s11 + $0x50] sm:$0xff]   ;;  %p1428_p11 = scmp.ne.s32.totalorder %s1794_s17, 1 }
  0x38   : > { %v1685_v34 = vld [vmem:[%s1948_s11 + $0xc0] sm:$0xff]   ;;  %1515 = vmatprep.subr.bf16.mxu0 %v1684_v33  ;;  %v1689_v38 = vld [vmem:[%s1948_s11 + $0xc8] sm:$0xff]   ;;  %v1693_v42 = vld [vmem:[%s1948_s11 + $0xd0] sm:$0xff]  }
  0x39   : > { %v1686_v35 = vld [vmem:[%s1948_s11] sm:$0xff]   ;;  %1579 = vmatprep.subr.bf16.mxu1 %v1685_v34  ;;  %v1690_v39 = vld [vmem:[%s1948_s11 + $0x8] sm:$0xff]   ;;  %v1694_v43 = vld [vmem:[%s1948_s11 + $0x10] sm:$0xff]  }
  0x3a   : > { %v1687_v36 = vld [vmem:[%s1948_s11 + $0x80] sm:$0xff]   ;;  %1516 = vmatpush3.bf16.msra.mxu0 %v1686_v35  ;;  %v1691_v40 = vld [vmem:[%s1948_s11 + $0x88] sm:$0xff]   ;;  %v1695_v44 = vld [vmem:[%s1948_s11 + $0x90] sm:$0xff]  }
  0x3b   : > { %1580 = vmatpush3.bf16.msra.mxu1 %v1687_v36  ;;  %1517 = vmatprep.subr.bf16.mxu0 %v1688_v37  ;;  %v1696_v45 = vld [vmem:[%s1948_s11 + $0x58] sm:$0xff]   ;;  %v1700_v49 = vld [vmem:[%s1948_s11 + $0x60] sm:$0xff]   ;;  %v1704_v53 = vld [vmem:[%s1948_s11 + $0x68] sm:$0xff]  }
  0x3c   : > { %1581 = vmatprep.subr.bf16.mxu1 %v1689_v38  ;;  %v1697_v46 = vld [vmem:[%s1948_s11 + $0xd8] sm:$0xff]   ;;  %v1701_v50 = vld [vmem:[%s1948_s11 + $0xe0] sm:$0xff]   ;;  %v1705_v54 = vld [vmem:[%s1948_s11 + $0xe8] sm:$0xff]  }
  0x3d   : > { %v1698_v47 = vld [vmem:[%s1948_s11 + $0x18] sm:$0xff]   ;;  %v1702_v51 = vld [vmem:[%s1948_s11 + $0x20] sm:$0xff]   ;;  %v1706_v55 = vld [vmem:[%s1948_s11 + $0x28] sm:$0xff]  }
  0x3e   : > { %1518 = vmatpush3.bf16.msra.mxu0 %v1690_v39  ;;  %v1699_v48 = vld [vmem:[%s1948_s11 + $0x98] sm:$0xff]   ;;  %v1703_v52 = vld [vmem:[%s1948_s11 + $0xa0] sm:$0xff]   ;;  %v1707_v56 = vld [vmem:[%s1948_s11 + $0xa8] sm:$0xff]  }
  0x3f   : > { %1582 = vmatpush3.bf16.msra.mxu1 %v1691_v40  ;;  %1519 = vmatprep.subr.bf16.mxu0 %v1692_v41  ;;  %v1708_v57 = vld [vmem:[%s1948_s11 + $0x70] sm:$0xff]   ;;  %v1712_v61 = vld [vmem:[%s1948_s11 + $0x78] sm:$0xff]  }
  0x40   : > { %1583 = vmatprep.subr.bf16.mxu1 %v1693_v42  ;;  %v1709_v58 = vld [vmem:[%s1948_s11 + $0xf0] sm:$0xff]   ;;  %v1713_v62 = vld [vmem:[%s1948_s11 + $0xf8] sm:$0xff]   ;;  %v364_v42 = vld [vmem:[#allocation2] sm:$0xff] }
  0x41   : > { %v1710_v59 = vld [vmem:[%s1948_s11 + $0x30] sm:$0xff]   ;;  %v1714_v63 = vld [vmem:[%s1948_s11 + $0x38] sm:$0xff]  }
  0x42   : > { %1520 = vmatpush3.bf16.msra.mxu0 %v1694_v43  ;;  %v1711_v60 = vld [vmem:[%s1948_s11 + $0xb0] sm:$0xff]   ;;  %v1715_v0 = vld [vmem:[%s1948_s11 + $0xb8] sm:$0xff]  }
  0x43   : > { %1584 = vmatpush3.bf16.msra.mxu1 %v1695_v44  ;;  %1521 = vmatprep.subr.bf16.mxu0 %v1696_v45  ;;  %v1716_v1 = vld [vmem:[%s1950_s12] ss:$16 sps:$4 sm:$0xff]   ;;  %v1718_v2 = vld [vmem:[%s1950_s12 + $0x4] ss:$16 sps:$4 sm:$0xff]   ;;  %v1719_v3 = vld [vmem:[%s1950_s12 + $0x8] ss:$16 sps:$4 sm:$0xff]  }
  0x44   : > { %1585 = vmatprep.subr.bf16.mxu1 %v1697_v46  ;;  %v1721_v4 = vld [vmem:[%s1950_s12 + $0xc] ss:$16 sps:$4 sm:$0xff]   ;;  %860 = vmatprep.mubr.bf16.mxu0 %v1718_v2  ;;  %v1722_v5 = vld [vmem:[%s1950_s12 + $0x24] ss:$16 sps:$4 sm:$0xff]   ;;  %v1726_v7 = vld [vmem:[%s1950_s12 + $0x20] ss:$16 sps:$4 sm:$0xff]  }
  0x45   : > { %957 = vmatprep.mubr.bf16.mxu1 %v1721_v4  ;;  %v1724_v6 = vld [vmem:[%s1950_s12 + $0x2c] ss:$16 sps:$4 sm:$0xff]   ;;  %v1727_v8 = vld [vmem:[%s1950_s12 + $0x28] ss:$16 sps:$4 sm:$0xff]   ;;  %v1728_v9 = vld [vmem:[%s1950_s12 + $0x44] ss:$16 sps:$4 sm:$0xff]  }
  0x46   : > { %1522 = vmatpush3.bf16.msra.mxu0 %v1698_v47  ;;  %v1730_v10 = vld [vmem:[%s1950_s12 + $0x4c] ss:$16 sps:$4 sm:$0xff]   ;;  %v1732_v11 = vld [vmem:[%s1950_s12 + $0x40] ss:$16 sps:$4 sm:$0xff]   ;;  %v1733_v12 = vld [vmem:[%s1950_s12 + $0x48] ss:$16 sps:$4 sm:$0xff]  }
  0x47   : > { %1586 = vmatpush3.bf16.msra.mxu1 %v1699_v48  ;;  %1523 = vmatprep.subr.bf16.mxu0 %v1700_v49  ;;  %v1734_v13 = vld [vmem:[%s1950_s12 + $0x64] ss:$16 sps:$4 sm:$0xff]   ;;  %v1736_v14 = vld [vmem:[%s1950_s12 + $0x6c] ss:$16 sps:$4 sm:$0xff]   ;;  %v1738_v15 = vld [vmem:[%s1950_s12 + $0x60] ss:$16 sps:$4 sm:$0xff]  }
  0x48   : > { %1587 = vmatprep.subr.bf16.mxu1 %v1701_v50  ;;  %v1739_v16 = vld [vmem:[%s1950_s12 + $0x68] ss:$16 sps:$4 sm:$0xff]   ;;  %v1740_v17 = vld [vmem:[%s1950_s12 + $0x84] ss:$16 sps:$4 sm:$0xff]   ;;  %v1742_v18 = vld [vmem:[%s1950_s12 + $0x8c] ss:$16 sps:$4 sm:$0xff]  }
  0x49   : > { %v1744_v19 = vld [vmem:[%s1950_s12 + $0x80] ss:$16 sps:$4 sm:$0xff]   ;;  %v1745_v20 = vld [vmem:[%s1950_s12 + $0x88] ss:$16 sps:$4 sm:$0xff]   ;;  %v1746_v21 = vld [vmem:[%s1950_s12 + $0xa4] ss:$16 sps:$4 sm:$0xff]  }
  0x4a   : > { %1524 = vmatpush3.bf16.msra.mxu0 %v1702_v51  ;;  %v1748_v22 = vld [vmem:[%s1950_s12 + $0xac] ss:$16 sps:$4 sm:$0xff]   ;;  %v1750_v23 = vld [vmem:[%s1950_s12 + $0xa0] ss:$16 sps:$4 sm:$0xff]   ;;  %v1751_v24 = vld [vmem:[%s1950_s12 + $0xa8] ss:$16 sps:$4 sm:$0xff]  }
  0x4b   : > { %1588 = vmatpush3.bf16.msra.mxu1 %v1703_v52  ;;  %1525 = vmatprep.subr.bf16.mxu0 %v1704_v53  ;;  %v1752_v25 = vld [vmem:[%s1950_s12 + $0xc4] ss:$16 sps:$4 sm:$0xff]   ;;  %v1754_v26 = vld [vmem:[%s1950_s12 + $0xcc] ss:$16 sps:$4 sm:$0xff]   ;;  %v1756_v27 = vld [vmem:[%s1950_s12 + $0xc0] ss:$16 sps:$4 sm:$0xff]  }
  0x4c   : > { %1589 = vmatprep.subr.bf16.mxu1 %v1705_v54  ;;  %v1757_v28 = vld [vmem:[%s1950_s12 + $0xc8] ss:$16 sps:$4 sm:$0xff]   ;;  %v1758_v29 = vld [vmem:[%s1950_s12 + $0xe4] ss:$16 sps:$4 sm:$0xff]   ;;  %v1760_v30 = vld [vmem:[%s1950_s12 + $0xec] ss:$16 sps:$4 sm:$0xff]  }
  0x4d   : > { %v1762_v31 = vld [vmem:[%s1950_s12 + $0xe0] ss:$16 sps:$4 sm:$0xff]   ;;  %v1763_v32 = vld [vmem:[%s1950_s12 + $0xe8] ss:$16 sps:$4 sm:$0xff]  }
  0x4e   : > { %1526 = vmatpush3.bf16.msra.mxu0 %v1706_v55  ;;  %v365_v47 = vld [vmem:[#allocation2 + $0x8] sm:$0xff] }
  0x4f   : > { %1590 = vmatpush3.bf16.msra.mxu1 %v1707_v56  ;;  %1527 = vmatprep.subr.bf16.mxu0 %v1708_v57 }
  0x50   : > { %1591 = vmatprep.subr.bf16.mxu1 %v1709_v58 }
  0x52   : > { %1528 = vmatpush3.bf16.msra.mxu0 %v1710_v59 }
  0x53   : > { %1592 = vmatpush3.bf16.msra.mxu1 %v1711_v60  ;;  %1529 = vmatprep.subr.bf16.mxu0 %v1712_v61  ;;  %v366_v60 = vld [vmem:[#allocation2 + $0x10] sm:$0xff] }
  0x54   : > { %1593 = vmatprep.subr.bf16.mxu1 %v1713_v62 }
  0x56   : > { %1530 = vmatpush3.bf16.msra.mxu0 %v1714_v63 }
  0x57   : > { %1594 = vmatpush3.bf16.msra.mxu1 %v1715_v0 }
  0x59   : > { %861 = vmatmul.mubr.bf16.vlgmr.msra.gmra.mrb[0].mxu0 %v1716_v1  ;;  %v367_v1 = vld [vmem:[#allocation2 + $0x18] sm:$0xff] }
  0x5a   : > { %958 = vmatmul.mubr.bf16.vlgmr.msra.gmra.mrb[0].mxu1 %v1719_v3  ;;  %868 = vmatprep.mubr.bf16.mxu0 %v1722_v5 }
  0x5b   : > { %965 = vmatprep.mubr.bf16.mxu1 %v1724_v6 }
  0x61   : > { %869 = vmatmul.mubr.bf16.gmra.mrb[4].mxu0 %v1726_v7 }
  0x62   : > { %966 = vmatmul.mubr.bf16.gmra.mrb[4].mxu1 %v1727_v8  ;;  %876 = vmatprep.mubr.bf16.mxu0 %v1728_v9 }
  0x63   : > { %973 = vmatprep.mubr.bf16.mxu1 %v1730_v10 }
  0x69   : > { %877 = vmatmul.mubr.bf16.gmra.mrb[8].mxu0 %v1732_v11 }
  0x6a   : > { %974 = vmatmul.mubr.bf16.gmra.mrb[8].mxu1 %v1733_v12  ;;  %884 = vmatprep.mubr.bf16.mxu0 %v1734_v13 }
  0x6b   : > { %981 = vmatprep.mubr.bf16.mxu1 %v1736_v14  ;;  %v368_v14 = vld [vmem:[#allocation2 + $0x20] sm:$0xff] }
  0x71   : > { %885 = vmatmul.mubr.bf16.gmra.mrb[12].mxu0 %v1738_v15 }
  0x72   : > { %982 = vmatmul.mubr.bf16.gmra.mrb[12].mxu1 %v1739_v16  ;;  %892 = vmatprep.mubr.bf16.mxu0 %v1740_v17 }
  0x73   : > { %989 = vmatprep.mubr.bf16.mxu1 %v1742_v18 }
  0x79   : > { %893 = vmatmul.mubr.bf16.gmra.mrb[16].mxu0 %v1744_v19  ;;  %v369_v19 = vld [vmem:[#allocation2 + $0x28] sm:$0xff] }
  0x7a   : > { %990 = vmatmul.mubr.bf16.gmra.mrb[16].mxu1 %v1745_v20  ;;  %900 = vmatprep.mubr.bf16.mxu0 %v1746_v21 }
  0x7b   : > { %997 = vmatprep.mubr.bf16.mxu1 %v1748_v22 }
  0x81   : > { %901 = vmatmul.mubr.bf16.gmra.mrb[20].mxu0 %v1750_v23 }
  0x82   : > { %998 = vmatmul.mubr.bf16.gmra.mrb[20].mxu1 %v1751_v24  ;;  %908 = vmatprep.mubr.bf16.mxu0 %v1752_v25 }
  0x83   : > { %1005 = vmatprep.mubr.bf16.mxu1 %v1754_v26 }
  0x89   : > { %909 = vmatmul.mubr.bf16.gmra.mrb[24].mxu0 %v1756_v27 }
  0x8a   : > { %1006 = vmatmul.mubr.bf16.gmra.mrb[24].mxu1 %v1757_v28  ;;  %916 = vmatprep.mubr.bf16.mxu0 %v1758_v29 }
  0x8b   : > { %1013 = vmatprep.mubr.bf16.mxu1 %v1760_v30 }
  0x91   : > { %917 = vmatmul.mubr.bf16.gmra.mrb[28].mxu0 %v1762_v31 }
  0x92   : > { %1014 = vmatmul.mubr.bf16.gmra.mrb[28].mxu1 %v1763_v32  ;;  %v370_v32 = vld [vmem:[#allocation2 + $0x30] sm:$0xff] }
 0x12c   : > { %v1531_v33 = vpop.f32.mrb[0].mxu0 }
 0x12d   : > { %v1595_v34 = vpop.f32.mrb[0].mxu1  ;;  %v1532_v35 = vpop.f32.mrb[1].mxu0 }
 0x12e   : > { %v1533_v36 = vadd.f32 %v1532_v35, %v1531_v33  ;;  %v1596_v37 = vpop.f32.mrb[1].mxu1  ;;  %v1534_v38 = vpop.f32.mrb[2].mxu0 }
 0x12f   : > { %v1597_v39 = vadd.f32 %v1596_v37, %v1595_v34  ;;  %v1598_v40 = vpop.f32.mrb[2].mxu1  ;;  %v1535_v41 = vpop.f32.mrb[3].mxu0  ;;  %v371_v37 = vld [vmem:[#allocation2 + $0x38] sm:$0xff] }
 0x130   : > { %v1536_v43 = vadd.f32 %v1535_v41, %v1534_v38  ;;  %v1599_v44 = vpop.f32.mrb[3].mxu1 }
 0x131   : > { %v960_v45 = vadd.f32 %v1597_v39, %v1533_v36  ;;  %v1600_v46 = vadd.f32 %v1599_v44, %v1598_v40 }
 0x133   : > { %v1022_v48 = vadd.f32 %v960_v45, %v364_v42  ;;  %v963_v49 = vadd.f32 %v1600_v46, %v1536_v43 }
 0x134   : > { %v1537_v50 = vpop.f32.mrb[4].mxu0 }
 0x135   : > { %1038 = vst [vmem:[#allocation2] sm:$0xff] %v1022_v48  ;;  %v1023_v51 = vadd.f32 %v963_v49, %v365_v47  ;;  %v1601_v52 = vpop.f32.mrb[4].mxu1  ;;  %v1538_v53 = vpop.f32.mrb[5].mxu0 }
 0x136   : > { %v1539_v54 = vadd.f32 %v1538_v53, %v1537_v50  ;;  %v1602_v55 = vpop.f32.mrb[5].mxu1  ;;  %v1540_v56 = vpop.f32.mrb[6].mxu0  ;;  %v372_v50 = vld [vmem:[#allocation2 + $0x40] sm:$0xff] }
 0x137   : > { %1039 = vst [vmem:[#allocation2 + $0x8] sm:$0xff] %v1023_v51  ;;  %v1603_v57 = vadd.f32 %v1602_v55, %v1601_v52  ;;  %v1604_v58 = vpop.f32.mrb[6].mxu1  ;;  %v1541_v59 = vpop.f32.mrb[7].mxu0  ;;  %v373_v55 = vld [vmem:[#allocation2 + $0x48] sm:$0xff] }
 0x138   : > { %v1542_v61 = vadd.f32 %v1541_v59, %v1540_v56  ;;  %v1605_v62 = vpop.f32.mrb[7].mxu1 }
 0x139   : > { %v968_v63 = vadd.f32 %v1603_v57, %v1539_v54  ;;  %v1606_v0 = vadd.f32 %v1605_v62, %v1604_v58 }
 0x13b   : > { %v1024_v2 = vadd.f32 %v968_v63, %v366_v60  ;;  %v971_v3 = vadd.f32 %v1606_v0, %v1542_v61 }
 0x13c   : > { %v1543_v4 = vpop.f32.mrb[8].mxu0 }
 0x13d   : > { %1040 = vst [vmem:[#allocation2 + $0x10] sm:$0xff] %v1024_v2  ;;  %v1025_v5 = vadd.f32 %v971_v3, %v367_v1  ;;  %v1607_v6 = vpop.f32.mrb[8].mxu1  ;;  %v1544_v7 = vpop.f32.mrb[9].mxu0 }
 0x13e   : > { %v1545_v8 = vadd.f32 %v1544_v7, %v1543_v4  ;;  %v1608_v9 = vpop.f32.mrb[9].mxu1  ;;  %v1546_v10 = vpop.f32.mrb[10].mxu0  ;;  %v374_v4 = vld [vmem:[#allocation2 + $0x50] sm:$0xff] }
 0x13f   : > { %1041 = vst [vmem:[#allocation2 + $0x18] sm:$0xff] %v1025_v5  ;;  %v1609_v11 = vadd.f32 %v1608_v9, %v1607_v6  ;;  %v1610_v12 = vpop.f32.mrb[10].mxu1  ;;  %v1547_v13 = vpop.f32.mrb[11].mxu0  ;;  %v375_v9 = vld [vmem:[#allocation2 + $0x58] sm:$0xff] }
 0x140   : > { %v1548_v15 = vadd.f32 %v1547_v13, %v1546_v10  ;;  %v1611_v16 = vpop.f32.mrb[11].mxu1 }
 0x141   : > { %v976_v17 = vadd.f32 %v1609_v11, %v1545_v8  ;;  %v1612_v18 = vadd.f32 %v1611_v16, %v1610_v12 }
 0x143   : > { %v1026_v20 = vadd.f32 %v976_v17, %v368_v14  ;;  %v979_v21 = vadd.f32 %v1612_v18, %v1548_v15 }
 0x144   : > { %v1549_v22 = vpop.f32.mrb[12].mxu0 }
 0x145   : > { %1042 = vst [vmem:[#allocation2 + $0x20] sm:$0xff] %v1026_v20  ;;  %v1027_v23 = vadd.f32 %v979_v21, %v369_v19  ;;  %v1613_v24 = vpop.f32.mrb[12].mxu1  ;;  %v1550_v25 = vpop.f32.mrb[13].mxu0 }
 0x146   : > { %v1551_v26 = vadd.f32 %v1550_v25, %v1549_v22  ;;  %v1614_v27 = vpop.f32.mrb[13].mxu1  ;;  %v1552_v28 = vpop.f32.mrb[14].mxu0  ;;  %v376_v22 = vld [vmem:[#allocation2 + $0x60] sm:$0xff] }
 0x147   : > { %1043 = vst [vmem:[#allocation2 + $0x28] sm:$0xff] %v1027_v23  ;;  %v1615_v29 = vadd.f32 %v1614_v27, %v1613_v24  ;;  %v1616_v30 = vpop.f32.mrb[14].mxu1  ;;  %v1553_v31 = vpop.f32.mrb[15].mxu0  ;;  %v377_v27 = vld [vmem:[#allocation2 + $0x68] sm:$0xff] }
 0x148   : > { %v1554_v33 = vadd.f32 %v1553_v31, %v1552_v28  ;;  %v1617_v34 = vpop.f32.mrb[15].mxu1 }
 0x149   : > { %v984_v35 = vadd.f32 %v1615_v29, %v1551_v26  ;;  %v1618_v36 = vadd.f32 %v1617_v34, %v1616_v30 }
 0x14b   : > { %v1028_v38 = vadd.f32 %v984_v35, %v370_v32  ;;  %v987_v39 = vadd.f32 %v1618_v36, %v1554_v33 }
 0x14c   : > { %v1555_v40 = vpop.f32.mrb[16].mxu0 }
 0x14d   : > { %1044 = vst [vmem:[#allocation2 + $0x30] sm:$0xff] %v1028_v38  ;;  %v1029_v41 = vadd.f32 %v987_v39, %v371_v37  ;;  %v1619_v42 = vpop.f32.mrb[16].mxu1  ;;  %v1556_v43 = vpop.f32.mrb[17].mxu0 }
 0x14e   : > { %v1557_v44 = vadd.f32 %v1556_v43, %v1555_v40  ;;  %v1620_v45 = vpop.f32.mrb[17].mxu1  ;;  %v1558_v46 = vpop.f32.mrb[18].mxu0  ;;  %v378_v40 = vld [vmem:[#allocation2 + $0x70] sm:$0xff] }
 0x14f   : > { %1045 = vst [vmem:[#allocation2 + $0x38] sm:$0xff] %v1029_v41  ;;  %v1621_v47 = vadd.f32 %v1620_v45, %v1619_v42  ;;  %v1622_v48 = vpop.f32.mrb[18].mxu1  ;;  %v1559_v49 = vpop.f32.mrb[19].mxu0  ;;  %v379_v45 = vld [vmem:[#allocation2 + $0x78] sm:$0xff] }
 0x150   : > { %v1560_v51 = vadd.f32 %v1559_v49, %v1558_v46  ;;  %v1623_v52 = vpop.f32.mrb[19].mxu1  ;;  %v1058_v49 = vld [vmem:[#allocation2] sm:$0xff] (!%p1428_p11) }
 0x151   : > { %v992_v53 = vadd.f32 %v1621_v47, %v1557_v44  ;;  %v1624_v54 = vadd.f32 %v1623_v52, %v1622_v48 }
 0x153   : > { %v1030_v56 = vadd.f32 %v992_v53, %v372_v50  ;;  %v995_v57 = vadd.f32 %v1624_v54, %v1560_v51  ;;  %v1059_v50 = vld [vmem:[#allocation2 + $0x8] sm:$0xff] (!%p1428_p11)  ;;  %v1060_v51 = vld [vmem:[#allocation2 + $0x10] sm:$0xff] (!%p1428_p11)  ;;  %v1175_v54 = vmul.f32 (!%p1428_p11), %v1058_v49, %v1058_v49 }
 0x154   : > { %v1561_v58 = vpop.f32.mrb[20].mxu0  ;;  %v1471_v52 = vpack.c.bf16 (!%p1428_p11), %v1059_v50, %v1058_v49  ;;  %v1154_v53 = vadd.f32 (!%p1428_p11), %v1059_v50, %v1058_v49 }
 0x155   : > { %1046 = vst [vmem:[#allocation2 + $0x40] sm:$0xff] %v1030_v56  ;;  %v1031_v59 = vadd.f32 %v995_v57, %v373_v55  ;;  %v1625_v60 = vpop.f32.mrb[20].mxu1  ;;  %v1562_v61 = vpop.f32.mrb[21].mxu0  ;;  %v1176_v55 = vmul.f32 (!%p1428_p11), %v1059_v50, %v1059_v50  ;;  %v1061_v56 = vld [vmem:[#allocation2 + $0x18] sm:$0xff] (!%p1428_p11)  ;;  %v1062_v57 = vld [vmem:[#allocation2 + $0x20] sm:$0xff] (!%p1428_p11) }
 0x156   : > { %v1563_v62 = vadd.f32 %v1562_v61, %v1561_v58  ;;  %v1626_v63 = vpop.f32.mrb[21].mxu1  ;;  %v1564_v0 = vpop.f32.mrb[22].mxu0  ;;  %v1063_v58 = vld [vmem:[#allocation2 + $0x28] sm:$0xff] (!%p1428_p11)  ;;  %1472 = vst [vmem:[%s2065_s2] sm:$0xff] (!%p1428_p11), %v1471_v52  }
 0x157   : > { %1047 = vst [vmem:[#allocation2 + $0x48] sm:$0xff] %v1031_v59  ;;  %v1627_v1 = vadd.f32 %v1626_v63, %v1625_v60  ;;  %v1628_v2 = vpop.f32.mrb[22].mxu1  ;;  %v1565_v3 = vpop.f32.mrb[23].mxu0  ;;  %v1476_v59 = vpack.c.bf16 (!%p1428_p11), %v1061_v56, %v1060_v51  ;;  %v1177_v60 = vmul.f32 (!%p1428_p11), %v1060_v51, %v1060_v51  ;;  %v1481_v61 = vpack.c.bf16 (!%p1428_p11), %v1063_v58, %v1062_v57 }
 0x158   : > { %v1566_v5 = vadd.f32 %v1565_v3, %v1564_v0  ;;  %v1629_v6 = vpop.f32.mrb[23].mxu1  ;;  %v1191_v63 = vadd.f32 (!%p1428_p11), %v1176_v55, %v1175_v54  ;;  %v1155_v0 = vadd.f32 (!%p1428_p11), %v1154_v53, %v1060_v51 }
 0x159   : > { %v1000_v7 = vadd.f32 %v1627_v1, %v1563_v62  ;;  %v1630_v8 = vadd.f32 %v1629_v6, %v1628_v2  ;;  %v1064_v62 = vld [vmem:[#allocation2 + $0x30] sm:$0xff] (!%p1428_p11)  ;;  %v1178_v1 = vmul.f32 (!%p1428_p11), %v1061_v56, %v1061_v56  ;;  %v1065_v2 = vld [vmem:[#allocation2 + $0x38] sm:$0xff] (!%p1428_p11)  ;;  %1508 = vst [vmem:[%s2065_s2 + $0x8] sm:$0xff] (!%p1428_p11), %v1476_v59   ;;  %1509 = vst [vmem:[%s2065_s2 + $0x10] sm:$0xff] (!%p1428_p11), %v1481_v61  }
 0x15b   : > { %v1032_v10 = vadd.f32 %v1000_v7, %v374_v4  ;;  %v1003_v11 = vadd.f32 %v1630_v8, %v1566_v5  ;;  %v1486_v5 = vpack.c.bf16 (!%p1428_p11), %v1065_v2, %v1064_v62  ;;  %v1156_v8 = vadd.f32 (!%p1428_p11), %v1155_v0, %v1061_v56 }
 0x15c   : > { %v1567_v12 = vpop.f32.mrb[24].mxu0  ;;  %v1066_v3 = vld [vmem:[#allocation2 + $0x40] sm:$0xff] (!%p1428_p11) }
 0x15d   : > { %1048 = vst [vmem:[#allocation2 + $0x50] sm:$0xff] %v1032_v10  ;;  %v1033_v13 = vadd.f32 %v1003_v11, %v375_v9  ;;  %v1631_v14 = vpop.f32.mrb[24].mxu1  ;;  %v1568_v15 = vpop.f32.mrb[25].mxu0  ;;  %v1192_v9 = vadd.f32 (!%p1428_p11), %v1191_v63, %v1177_v60  ;;  %v1179_v10 = vmul.f32 (!%p1428_p11), %v1062_v57, %v1062_v57  ;;  %1510 = vst [vmem:[%s2065_s2 + $0x18] sm:$0xff] (!%p1428_p11), %v1486_v5  }
 0x15e   : > { %v1569_v16 = vadd.f32 %v1568_v15, %v1567_v12  ;;  %v1632_v17 = vpop.f32.mrb[25].mxu1  ;;  %v1570_v18 = vpop.f32.mrb[26].mxu0  ;;  %v1067_v4 = vld [vmem:[#allocation2 + $0x48] sm:$0xff] (!%p1428_p11) }
 0x15f   : > { %1049 = vst [vmem:[#allocation2 + $0x58] sm:$0xff] %v1033_v13  ;;  %v1633_v19 = vadd.f32 %v1632_v17, %v1631_v14  ;;  %v1634_v20 = vpop.f32.mrb[26].mxu1  ;;  %v1571_v21 = vpop.f32.mrb[27].mxu0  ;;  %v1491_v6 = vpack.c.bf16 (!%p1428_p11), %v1067_v4, %v1066_v3  ;;  %v1157_v17 = vadd.f32 (!%p1428_p11), %v1156_v8, %v1062_v57 }
 0x160   : > { %v1572_v23 = vadd.f32 %v1571_v21, %v1570_v18  ;;  %v1635_v24 = vpop.f32.mrb[27].mxu1  ;;  %v1180_v18 = vmul.f32 (!%p1428_p11), %v1063_v58, %v1063_v58 }
 0x161   : > { %v1008_v25 = vadd.f32 %v1633_v19, %v1569_v16  ;;  %v1636_v26 = vadd.f32 %v1635_v24, %v1634_v20  ;;  %1511 = vst [vmem:[%s2065_s2 + $0x20] sm:$0xff] (!%p1428_p11), %v1491_v6   ;;  %v1193_v16 = vadd.f32 (!%p1428_p11), %v1192_v9, %v1178_v1  ;;  %v1181_v24 = vmul.f32 (!%p1428_p11), %v1064_v62, %v1064_v62 }
 0x163   : > { %v1034_v28 = vadd.f32 %v1008_v25, %v376_v22  ;;  %v1011_v29 = vadd.f32 %v1636_v26, %v1572_v23  ;;  %v1158_v22 = vadd.f32 (!%p1428_p11), %v1157_v17, %v1063_v58  ;;  %v1194_v23 = vadd.f32 (!%p1428_p11), %v1193_v16, %v1179_v10 }
 0x164   : > { %v1573_v30 = vpop.f32.mrb[28].mxu0  ;;  %v1068_v7 = vld [vmem:[#allocation2 + $0x50] sm:$0xff] (!%p1428_p11) }
 0x165   : > { %1050 = vst [vmem:[#allocation2 + $0x60] sm:$0xff] %v1034_v28  ;;  %v1035_v31 = vadd.f32 %v1011_v29, %v377_v27  ;;  %v1637_v32 = vpop.f32.mrb[28].mxu1  ;;  %v1574_v33 = vpop.f32.mrb[29].mxu0  ;;  %v1195_v25 = vadd.f32 (!%p1428_p11), %v1194_v23, %v1180_v18  ;;  %v1159_v26 = vadd.f32 (!%p1428_p11), %v1158_v22, %v1064_v62  ;;  %v1182_v27 = vmul.f32 (!%p1428_p11), %v1065_v2, %v1065_v2 }
 0x166   : > { %v1575_v34 = vadd.f32 %v1574_v33, %v1573_v30  ;;  %v1638_v35 = vpop.f32.mrb[29].mxu1  ;;  %v1576_v36 = vpop.f32.mrb[30].mxu0  ;;  %v1069_v11 = vld [vmem:[#allocation2 + $0x58] sm:$0xff] (!%p1428_p11)  ;;  %v1183_v30 = vmul.f32 (!%p1428_p11), %v1066_v3, %v1066_v3  ;;  %v1184_v33 = vmul.f32 (!%p1428_p11), %v1067_v4, %v1067_v4 }
 0x167   : > { %1051 = vst [vmem:[#allocation2 + $0x68] sm:$0xff] %v1035_v31  ;;  %v1639_v37 = vadd.f32 %v1638_v35, %v1637_v32  ;;  %v1640_v38 = vpop.f32.mrb[30].mxu1  ;;  %v1577_v39 = vpop.f32.mrb[31].mxu0  ;;  %v1496_v14 = vpack.c.bf16 (!%p1428_p11), %v1069_v11, %v1068_v7  ;;  %v1160_v28 = vadd.f32 (!%p1428_p11), %v1159_v26, %v1065_v2  ;;  %v1196_v29 = vadd.f32 (!%p1428_p11), %v1195_v25, %v1181_v24 }
 0x168   : > { %v1578_v41 = vadd.f32 %v1577_v39, %v1576_v36  ;;  %v1641_v42 = vpop.f32.mrb[31].mxu1  ;;  %v1185_v36 = vmul.f32 (!%p1428_p11), %v1068_v7, %v1068_v7  ;;  %v1186_v39 = vmul.f32 (!%p1428_p11), %v1069_v11, %v1069_v11 }
 0x169   : > { %v1016_v43 = vadd.f32 %v1639_v37, %v1575_v34  ;;  %v1642_v44 = vadd.f32 %v1641_v42, %v1640_v38  ;;  %1057 = sbr.rel (%p1428_p11) target bundleno = 392 (0x188), region = 59  ;;  %1512 = vst [vmem:[%s2065_s2 + $0x28] sm:$0xff] (!%p1428_p11), %v1496_v14   ;;  %v1197_v31 = vadd.f32 (!%p1428_p11), %v1196_v29, %v1182_v27  ;;  %v1161_v32 = vadd.f32 (!%p1428_p11), %v1160_v28, %v1066_v3 }
 0x16b   : > { %v1036_v46 = vadd.f32 %v1016_v43, %v378_v40  ;;  %v1019_v47 = vadd.f32 %v1642_v44, %v1578_v41  ;;  %v1162_v34 = vadd.f32 (!%p1428_p11), %v1161_v32, %v1067_v4  ;;  %v1198_v35 = vadd.f32 (!%p1428_p11), %v1197_v31, %v1183_v30 }
 0x16c   : > { %v1070_v12 = vld [vmem:[#allocation2 + $0x60] sm:$0xff] (!%p1428_p11) }
 0x16d   : > { %1052 = vst [vmem:[#allocation2 + $0x70] sm:$0xff] %v1036_v46  ;;  %v1037_v48 = vadd.f32 %v1019_v47, %v379_v45  ;;  %v1199_v37 = vadd.f32 (!%p1428_p11), %v1198_v35, %v1184_v33  ;;  %v1163_v38 = vadd.f32 (!%p1428_p11), %v1162_v34, %v1068_v7  ;;  %v1187_v42 = vmul.f32 (!%p1428_p11), %v1070_v12, %v1070_v12 }
 0x16e   : > { %v1071_v13 = vld [vmem:[#allocation2 + $0x68] sm:$0xff] (!%p1428_p11) }
 0x16f   : > { %1053 = vst [vmem:[#allocation2 + $0x78] sm:$0xff] %v1037_v48  ;;  %v1501_v15 = vpack.c.bf16 (!%p1428_p11), %v1071_v13, %v1070_v12  ;;  %v1164_v40 = vadd.f32 (!%p1428_p11), %v1163_v38, %v1069_v11  ;;  %v1200_v41 = vadd.f32 (!%p1428_p11), %v1199_v37, %v1185_v36  ;;  %v1188_v45 = vmul.f32 (!%p1428_p11), %v1071_v13, %v1071_v13 }
 0x171   : > { %1513 = vst [vmem:[%s2065_s2 + $0x30] sm:$0xff] %v1501_v15   ;;  %v1201_v43 = vadd.f32 %v1200_v41, %v1186_v39  ;;  %v1165_v44 = vadd.f32 %v1164_v40, %v1070_v12 }
 0x173   : > { %v1166_v46 = vadd.f32 %v1165_v44, %v1071_v13  ;;  %v1202_v47 = vadd.f32 %v1201_v43, %v1187_v42 }
 0x174   : > { %v1072_v19 = vld [vmem:[#allocation2 + $0x70] sm:$0xff] }
 0x175   : > { %v1189_v48 = vmul.f32 %v1072_v19, %v1072_v19  ;;  %v1203_v49 = vadd.f32 %v1202_v47, %v1188_v45  ;;  %v1167_v50 = vadd.f32 %v1166_v46, %v1072_v19 }
 0x176   : > { %v1073_v20 = vld [vmem:[#allocation2 + $0x78] sm:$0xff] }
 0x177   : > { %v1506_v21 = vpack.c.bf16 %v1073_v20, %v1072_v19  ;;  %v1190_v51 = vmul.f32 %v1073_v20, %v1073_v20  ;;  %v1168_v52 = vadd.f32 %v1167_v50, %v1073_v20  ;;  %v1204_v53 = vadd.f32 %v1203_v49, %v1189_v48 }
 0x179   : > { %1514 = vst [vmem:[%s2065_s2 + $0x38] sm:$0xff] %v1506_v21   ;;  %v1169_v54 = vrot.slane %v1168_v52, 4  ;;  %v1205_v55 = vadd.f32 %v1204_v53, %v1190_v51 }
 0x17b   : > { %v1170_v56 = vadd.f32 %v1169_v54, %v1168_v52  ;;  %v1206_v57 = vrot.slane %v1205_v55, 4 }
 0x17d   : > { %v1171_v58 = vrot.slane %v1170_v56, 2  ;;  %v1207_v59 = vadd.f32 %v1206_v57, %v1205_v55 }
 0x17f   : > { %v1172_v60 = vadd.f32 %v1171_v58, %v1170_v56  ;;  %v1208_v61 = vrot.slane %v1207_v59, 2 }
 0x181   : > { %v1173_v62 = vrot.slane %v1172_v60, 1  ;;  %v1209_v63 = vadd.f32 %v1208_v61, %v1207_v59 }
 0x183   : > { %v1174_v0 = vadd.f32 %v1173_v62, %v1172_v60  ;;  %v1210_v1 = vrot.slane %v1209_v63, 1 }
 0x185   : > { %1212 = vst [vmem:[%s2066_s3] sm:$0xff] %v1174_v0  ;;  %v1211_v2 = vadd.f32 %v1210_v1, %v1209_v63 }
 0x187   : > { %1213 = vst [vmem:[%s2067_s4] sm:$0xff] %v1211_v2 }
 0x188 PF: > { %s15_s19 = sadd.s32 1, %s1802_s19   ;;  %s2068_s15 = smov %s1790_s16 }
 0x189   : > { %p12_p12 = scmp.ge.s32.totalorder %s15_s19, 4   ;;  %s2069_s16 = smov %s1865_s23 }
 0x18a   : > { %s2070_s17 = smov %s1798_s18  ;;  %s2071_s18 = smov %s2073_s20 }
 0x18b   :  { %14 = sbr.rel (!%p12_p12) target bundleno = 3 (0x3), region = 121 }

// kernel: discriminator_forward.8
= control target key start
LH: loop header
LB: loop body
LE: loop exit
PB: predicated region body
PF: predicated region fallthrough
CT: control target
= control target key end

     0   :  { %s455_s0 = inlined_call_operand.vmem [shape: bf16[128,128], index: 0, kind: input, shape index: {}]   ;;  %s456_s1 = inlined_call_operand.vmem [shape: f32[1,128], index: 1, kind: input, shape index: {}]   ;;  %s457_s2 = inlined_call_operand.vmem [shape: f32[1,128], index: 2, kind: input, shape index: {}]   ;;  %s458_s3 = inlined_call_operand.vmem [shape: bf16[128,128], index: 3, kind: output, shape index: {}]  }
   0x1   :  { %v259_v0 = vld [vmem:[%s455_s0] sm:$0xff]   ;;  %v330_v4 = vld [vmem:[%s455_s0 + $0x8] sm:$0xff]   ;;  %v331_v5 = vld [vmem:[%s455_s0 + $0x10] sm:$0xff]  }
   0x2   :  { %v370_v1 = vld [vmem:[%s456_s1] ss:$0 sm:$0xff]  ;;  %v260_v2 = vunpack.c.l.bf16 %v259_v0  ;;  %v261_v3 = vunpack.c.h.bf16 %v259_v0  ;;  %v332_v6 = vld [vmem:[%s455_s0 + $0x18] sm:$0xff]   ;;  %v264_v8 = vunpack.c.l.bf16 %v330_v4  ;;  %v265_v9 = vunpack.c.h.bf16 %v330_v4  ;;  %v334_v35 = vld [vmem:[%s455_s0 + $0x28] sm:$0xff]  }
   0x3   :  { %v384_v7 = vld [vmem:[%s457_s2] ss:$0 sm:$0xff]  ;;  %v268_v10 = vunpack.c.l.bf16 %v331_v5  ;;  %v269_v11 = vunpack.c.h.bf16 %v331_v5  ;;  %v272_v14 = vunpack.c.l.bf16 %v332_v6  ;;  %v273_v15 = vunpack.c.h.bf16 %v332_v6  ;;  %v335_v48 = vld [vmem:[%s455_s0 + $0x30] sm:$0xff]   ;;  %v336_v4 = vld [vmem:[%s455_s0 + $0x38] sm:$0xff]  }
   0x4   :  { %v53_v12 = vmul.f32 %v260_v2, %v370_v1  ;;  %v54_v13 = vmul.f32 %v261_v3, %v370_v1  ;;  %v55_v16 = vmul.f32 %v264_v8, %v370_v1  ;;  %v56_v17 = vmul.f32 %v265_v9, %v370_v1  ;;  %v333_v34 = vld [vmem:[%s455_s0 + $0x20] sm:$0xff]  }
   0x5   :  { %v57_v18 = vmul.f32 %v268_v10, %v370_v1  ;;  %v58_v19 = vmul.f32 %v269_v11, %v370_v1  ;;  %v59_v22 = vmul.f32 %v272_v14, %v370_v1  ;;  %v60_v23 = vmul.f32 %v273_v15, %v370_v1 }
   0x6   :  { %v76_v20 = vadd.f32 %v384_v7, %v53_v12  ;;  %v77_v21 = vadd.f32 %v384_v7, %v54_v13  ;;  %v78_v24 = vadd.f32 %v384_v7, %v55_v16  ;;  %v79_v25 = vadd.f32 %v384_v7, %v56_v17 }
   0x7   :  { %v80_v26 = vadd.f32 %v384_v7, %v57_v18  ;;  %v81_v27 = vadd.f32 %v384_v7, %v58_v19  ;;  %v82_v42 = vadd.f32 %v384_v7, %v59_v22  ;;  %v83_v43 = vadd.f32 %v384_v7, %v60_v23 }
   0x8   :  { %vm92_vm0 = vcmp.gt.f32.partialorder %v76_v20, 0.0  ;;  %vm93_vm1 = vcmp.gt.f32.partialorder %v77_v21, 0.0  ;;  %v108_v28 = vmul.f32 0.2, %v76_v20  ;;  %v109_v29 = vmul.f32 0.2, %v77_v21 }
   0x9   :  { %vm94_vm2 = vcmp.gt.f32.partialorder %v78_v24, 0.0  ;;  %vm95_vm3 = vcmp.gt.f32.partialorder %v79_v25, 0.0  ;;  %v110_v30 = vmul.f32 0.2, %v78_v24  ;;  %v111_v31 = vmul.f32 0.2, %v79_v25 }
   0xa   :  { %v124_v32 = vsel %vm92_vm0, %v76_v20, %v108_v28  ;;  %v125_v33 = vsel %vm93_vm1, %v77_v21, %v109_v29  ;;  %vm96_vm4 = vcmp.gt.f32.partialorder %v80_v26, 0.0  ;;  %vm97_vm5 = vcmp.gt.f32.partialorder %v81_v27, 0.0 }
   0xb   :  { %v293_v36 = vpack.c.bf16 %v125_v33, %v124_v32  ;;  %v126_v37 = vsel %vm94_vm2, %v78_v24, %v110_v30  ;;  %v127_v38 = vsel %vm95_vm3, %v79_v25, %v111_v31  ;;  %v112_v39 = vmul.f32 0.2, %v80_v26 }
   0xc   :  { %v298_v40 = vpack.c.bf16 %v127_v38, %v126_v37  ;;  %v113_v41 = vmul.f32 0.2, %v81_v27  ;;  %v276_v45 = vunpack.c.l.bf16 %v333_v34  ;;  %v277_v46 = vunpack.c.h.bf16 %v333_v34 }
   0xd   :  { %294 = vst [vmem:[%s458_s3] sm:$0xff] %v293_v36   ;;  %v128_v44 = vsel %vm96_vm4, %v80_v26, %v112_v39  ;;  %v280_v47 = vunpack.c.l.bf16 %v334_v35  ;;  %vm98_vm6 = vcmp.gt.f32.partialorder %v82_v42, 0.0  ;;  %vm99_vm7 = vcmp.gt.f32.partialorder %v83_v43, 0.0 }
   0xe   :  { %337 = vst [vmem:[%s458_s3 + $0x8] sm:$0xff] %v298_v40   ;;  %v129_v49 = vsel %vm97_vm5, %v81_v27, %v113_v41  ;;  %v114_v50 = vmul.f32 0.2, %v82_v42  ;;  %v115_v52 = vmul.f32 0.2, %v83_v43  ;;  %v61_v53 = vmul.f32 %v276_v45, %v370_v1 }
   0xf   :  { %v303_v51 = vpack.c.bf16 %v129_v49, %v128_v44  ;;  %v62_v54 = vmul.f32 %v277_v46, %v370_v1  ;;  %v281_v56 = vunpack.c.h.bf16 %v334_v35  ;;  %v63_v57 = vmul.f32 %v280_v47, %v370_v1 }
  0x10   :  { %v130_v55 = vsel %vm98_vm6, %v82_v42, %v114_v50  ;;  %v284_v58 = vunpack.c.l.bf16 %v335_v48  ;;  %v131_v59 = vsel %vm99_vm7, %v83_v43, %v115_v52  ;;  %v84_v60 = vadd.f32 %v384_v7, %v61_v53 }
  0x11   :  { %338 = vst [vmem:[%s458_s3 + $0x10] sm:$0xff] %v303_v51   ;;  %v85_v61 = vadd.f32 %v384_v7, %v62_v54  ;;  %v285_v62 = vunpack.c.h.bf16 %v335_v48  ;;  %v308_v63 = vpack.c.bf16 %v131_v59, %v130_v55  ;;  %v64_v0 = vmul.f32 %v281_v56, %v370_v1 }
  0x12   :  { %v86_v2 = vadd.f32 %v384_v7, %v63_v57  ;;  %v65_v3 = vmul.f32 %v284_v58, %v370_v1  ;;  %vm100_vm8 = vcmp.gt.f32.partialorder %v84_v60, 0.0  ;;  %v116_v5 = vmul.f32 0.2, %v84_v60 }
  0x13   :  { %vm101_vm9 = vcmp.gt.f32.partialorder %v85_v61, 0.0  ;;  %v117_v6 = vmul.f32 0.2, %v85_v61  ;;  %339 = vst [vmem:[%s458_s3 + $0x18] sm:$0xff] %v308_v63   ;;  %v87_v8 = vadd.f32 %v384_v7, %v64_v0  ;;  %v66_v10 = vmul.f32 %v285_v62, %v370_v1 }
  0x14   :  { %vm102_vm10 = vcmp.gt.f32.partialorder %v86_v2, 0.0  ;;  %v118_v9 = vmul.f32 0.2, %v86_v2  ;;  %v132_v11 = vsel %vm100_vm8, %v84_v60, %v116_v5  ;;  %v88_v13 = vadd.f32 %v384_v7, %v65_v3 }
  0x15   :  { %v133_v12 = vsel %vm101_vm9, %v85_v61, %v117_v6  ;;  %v288_v14 = vunpack.c.l.bf16 %v336_v4  ;;  %vm103_vm11 = vcmp.gt.f32.partialorder %v87_v8, 0.0  ;;  %v119_v16 = vmul.f32 0.2, %v87_v8 }
  0x16   :  { %v313_v15 = vpack.c.bf16 %v133_v12, %v132_v11  ;;  %v134_v17 = vsel %vm102_vm10, %v86_v2, %v118_v9  ;;  %v89_v18 = vadd.f32 %v384_v7, %v66_v10  ;;  %vm104_vm12 = vcmp.gt.f32.partialorder %v88_v13, 0.0 }
  0x17   :  { %v120_v19 = vmul.f32 0.2, %v88_v13  ;;  %v289_v20 = vunpack.c.h.bf16 %v336_v4  ;;  %v135_v21 = vsel %vm103_vm11, %v87_v8, %v119_v16  ;;  %v67_v22 = vmul.f32 %v288_v14, %v370_v1 }
  0x18   :  { %340 = vst [vmem:[%s458_s3 + $0x20] sm:$0xff] %v313_v15   ;;  %v318_v23 = vpack.c.bf16 %v135_v21, %v134_v17  ;;  %vm105_vm13 = vcmp.gt.f32.partialorder %v89_v18, 0.0  ;;  %v121_v24 = vmul.f32 0.2, %v89_v18 }
  0x19   :  { %v136_v25 = vsel %vm104_vm12, %v88_v13, %v120_v19  ;;  %v68_v26 = vmul.f32 %v289_v20, %v370_v1  ;;  %v90_v27 = vadd.f32 %v384_v7, %v67_v22 }
  0x1a   :  { %341 = vst [vmem:[%s458_s3 + $0x28] sm:$0xff] %v318_v23   ;;  %v137_v28 = vsel %vm105_vm13, %v89_v18, %v121_v24 }
  0x1b   :  { %v323_v29 = vpack.c.bf16 %v137_v28, %v136_v25  ;;  %v91_v30 = vadd.f32 %v384_v7, %v68_v26  ;;  %vm106_vm14 = vcmp.gt.f32.partialorder %v90_v27, 0.0  ;;  %v122_v31 = vmul.f32 0.2, %v90_v27 }
  0x1d   :  { %342 = vst [vmem:[%s458_s3 + $0x30] sm:$0xff] %v323_v29   ;;  %vm107_vm15 = vcmp.gt.f32.partialorder %v91_v30, 0.0  ;;  %v123_v32 = vmul.f32 0.2, %v91_v30  ;;  %v138_v33 = vsel %vm106_vm14, %v90_v27, %v122_v31 }
  0x1f   :  { %v139_v1 = vsel %vm107_vm15, %v91_v30, %v123_v32 }
  0x20   :  { %v328_v34 = vpack.c.bf16 %v139_v1, %v138_v33 }
  0x22   :  { %343 = vst [vmem:[%s458_s3 + $0x38] sm:$0xff] %v328_v34  }

// kernel: discriminator_forward.10
= control target key start
LH: loop header
LB: loop body
LE: loop exit
PB: predicated region body
PF: predicated region fallthrough
CT: control target
= control target key end

     0   :  { %v28_v0 = vlaneseq  ;;  %s180_s0 = inlined_call_operand.vmem [shape: bf16[32,256], index: 0, kind: input, shape index: {}]   ;;  %s181_s1 = inlined_call_operand.vmem [shape: f32[1,256], index: 1, kind: input, shape index: {}]   ;;  %s182_s2 = inlined_call_operand.vmem [shape: f32[1,256], index: 2, kind: input, shape index: {}]   ;;  %s183_s3 = inlined_call_operand.vmem [shape: bf16[32,256], index: 3, kind: output, shape index: {}]  }
   0x1   :  { %v14_v1 = vld [vmem:[%s180_s0] sm:$0xff]  ;;  %v15_v3 = vld [vmem:[%s180_s0 + $0x8] sm:$0xff]  ;;  %v16_v4 = vld [vmem:[%s180_s0 + $0x10] sm:$0xff] }
   0x2   :  { %v29_v2 = vshrl.u32 %v28_v0, 7  ;;  %v17_v5 = vld [vmem:[%s180_s0 + $0x18] sm:$0xff]  ;;  %v18_v6 = vunpack.c.l.bf16 %v14_v1  ;;  %v19_v7 = vunpack.c.h.bf16 %v14_v1  ;;  %v26_v8 = vld [vmem:[%s181_s1] sm:$0x3]  ;;  %v20_v12 = vunpack.c.l.bf16 %v15_v3 }
   0x3   :  { %v46_v9 = vld [vmem:[%s182_s2] sm:$0x3]  ;;  %v21_v13 = vunpack.c.h.bf16 %v15_v3  ;;  %v22_v14 = vunpack.c.l.bf16 %v16_v4  ;;  %v23_v15 = vunpack.c.h.bf16 %v16_v4  ;;  %v24_v16 = vunpack.c.l.bf16 %v17_v5 }
   0x4   :  { %v30_v10 = vsub.s32 0, %v29_v2  ;;  %v34_v11 = vsub.s32 1, %v29_v2  ;;  %v25_v17 = vunpack.c.h.bf16 %v17_v5 }
   0x6   :  { %v31_v18 = vrot.slane %v26_v8, %v30_v10  ;;  %v35_v19 = vrot.slane %v26_v8, %v34_v11  ;;  %v51_v20 = vrot.slane %v46_v9, %v30_v10  ;;  %v55_v21 = vrot.slane %v46_v9, %v34_v11 }
   0x8   :  { %v38_v22 = vmul.f32 %v31_v18, %v18_v6  ;;  %v39_v23 = vmul.f32 %v35_v19, %v19_v7  ;;  %v40_v24 = vmul.f32 %v31_v18, %v20_v12  ;;  %v41_v25 = vmul.f32 %v35_v19, %v21_v13 }
   0x9   :  { %v42_v26 = vmul.f32 %v31_v18, %v22_v14  ;;  %v43_v27 = vmul.f32 %v35_v19, %v23_v15  ;;  %v44_v28 = vmul.f32 %v31_v18, %v24_v16  ;;  %v45_v29 = vmul.f32 %v35_v19, %v25_v17 }
   0xa   :  { %v58_v30 = vadd.f32 %v51_v20, %v38_v22  ;;  %v59_v31 = vadd.f32 %v55_v21, %v39_v23  ;;  %v60_v32 = vadd.f32 %v51_v20, %v40_v24  ;;  %v61_v33 = vadd.f32 %v55_v21, %v41_v25 }
   0xb   :  { %v62_v34 = vadd.f32 %v51_v20, %v42_v26  ;;  %v63_v35 = vadd.f32 %v55_v21, %v43_v27  ;;  %v64_v36 = vadd.f32 %v51_v20, %v44_v28  ;;  %v65_v37 = vadd.f32 %v55_v21, %v45_v29 }
   0xc   :  { %vm66_vm0 = vcmp.gt.f32.partialorder %v58_v30, 0.0  ;;  %vm67_vm1 = vcmp.gt.f32.partialorder %v59_v31, 0.0  ;;  %v74_v38 = vmul.f32 0.2, %v58_v30  ;;  %v75_v39 = vmul.f32 0.2, %v59_v31 }
   0xd   :  { %vm68_vm2 = vcmp.gt.f32.partialorder %v60_v32, 0.0  ;;  %vm69_vm3 = vcmp.gt.f32.partialorder %v61_v33, 0.0  ;;  %v76_v40 = vmul.f32 0.2, %v60_v32  ;;  %v77_v41 = vmul.f32 0.2, %v61_v33 }
   0xe   :  { %v82_v42 = vsel %vm66_vm0, %v58_v30, %v74_v38  ;;  %v83_v43 = vsel %vm67_vm1, %v59_v31, %v75_v39  ;;  %vm70_vm4 = vcmp.gt.f32.partialorder %v62_v34, 0.0  ;;  %vm71_vm5 = vcmp.gt.f32.partialorder %v63_v35, 0.0 }
   0xf   :  { %v126_v44 = vpack.c.bf16 %v83_v43, %v82_v42  ;;  %v84_v45 = vsel %vm68_vm2, %v60_v32, %v76_v40  ;;  %v85_v46 = vsel %vm69_vm3, %v61_v33, %v77_v41  ;;  %v78_v47 = vmul.f32 0.2, %v62_v34 }
  0x10   :  { %v127_v48 = vpack.c.bf16 %v85_v46, %v84_v45  ;;  %v79_v49 = vmul.f32 0.2, %v63_v35  ;;  %vm72_vm6 = vcmp.gt.f32.partialorder %v64_v36, 0.0  ;;  %vm73_vm7 = vcmp.gt.f32.partialorder %v65_v37, 0.0 }
  0x11   :  { %114 = vst [vmem:[%s183_s3] sm:$0xff] %v126_v44  ;;  %v86_v50 = vsel %vm70_vm4, %v62_v34, %v78_v47  ;;  %v80_v51 = vmul.f32 0.2, %v64_v36  ;;  %v81_v52 = vmul.f32 0.2, %v65_v37 }
  0x12   :  { %115 = vst [vmem:[%s183_s3 + $0x8] sm:$0xff] %v127_v48  ;;  %v87_v53 = vsel %vm71_vm5, %v63_v35, %v79_v49 }
  0x13   :  { %v128_v54 = vpack.c.bf16 %v87_v53, %v86_v50  ;;  %v88_v55 = vsel %vm72_vm6, %v64_v36, %v80_v51  ;;  %v89_v56 = vsel %vm73_vm7, %v65_v37, %v81_v52 }
  0x14   :  { %v129_v57 = vpack.c.bf16 %v89_v56, %v88_v55 }
  0x15   :  { %116 = vst [vmem:[%s183_s3 + $0x10] sm:$0xff] %v128_v54 }
  0x16   :  { %117 = vst [vmem:[%s183_s3 + $0x18] sm:$0xff] %v129_v57 }

// kernel: discriminator_forward.9
= control target key start
LH: loop header
LB: loop body
LE: loop exit
PB: predicated region body
PF: predicated region fallthrough
CT: control target
= control target key end

     0   :  { %s1435_s15 = smov 0   ;;  %s1437_s16 = smov 0   ;;  %s1602_s0 = inlined_call_operand.vmem [shape: bf16[32,2048], index: 0, kind: input, shape index: {}]   ;;  %s1603_s1 = inlined_call_operand.vmem [shape: bf16[2048,256], index: 1, kind: input, shape index: {}]   ;;  %s1604_s2 = inlined_call_operand.vmem [shape: bf16[32,256], index: 2, kind: output, shape index: {0}]   ;;  %s1605_s3 = inlined_call_operand.vmem [shape: f32[8,256], index: 3, kind: output, shape index: {1}]   ;;  %s1606_s4 = inlined_call_operand.vmem [shape: f32[8,256], index: 4, kind: output, shape index: {2}]  }
   0x1   :  { %s1439_s17 = smov 0   ;;  %s1441_s18 = smov 0  }
   0x2   :  { %s1443_s19 = smov 0  }
   0x3 LB: > { %s24_s20 = sadd.s32 1, %s1403_s18  ;;  %p43_p1 = scmp.ne.s32.totalorder %s1395_s16, %s1391_s15  ;;  %s1407_s19 = sphi %s1443_s19, %s15_s19   ;;  %s1403_s18 = sphi %s1441_s18, %s1610_s18   ;;  %s1399_s17 = sphi %s1439_s17, %s1609_s17   ;;  %s1395_s16 = sphi %s1437_s16, %s1608_s16   ;;  %s1391_s15 = sphi %s1435_s15, %s1607_s15  }
   0x4   : > { %p25_p0 = scmp.ge.s32.totalorder %s24_s20, 4  ;;  %p44_p2 = scmp.eq.s32.totalorder %s1407_s19, 0 }
   0x5   : > { %s36_s22 = sadd.s32 1, %s1395_s16  ;;  %p1113_p5 = scmp.ge.s32.totalorder %s1407_s19, 4 }
   0x6   : > { %s1612_s20 = smov (%p25_p0, %s24_s20), 0  ;;  %p45_p3 = por %p44_p2, %p43_p1 }
   0x7   : > { %s32_s21 = ssub.s32 %s1403_s18, %s1612_s20  ;;  %173 = sbr.rel (%p1113_p5) target bundleno = 22 (0x16), region = 16 }
   0x8   : > { %p34_p4 = scmp.eq.s32.totalorder %s32_s21, 0 }
   0xa   : > { %s1470_s23 = scalar_select %p34_p4, %s1395_s16, %s36_s22  }
   0xe   : > { %176 = sbr.rel (!%p45_p3) target bundleno = 22 (0x16), region = 20  ;;  %s178_s24 = sand.u32 (%p45_p3), 1, %s1395_s16  }
   0xf   : > { %s1206_s25 = sshll.u32 (%p45_p3), %s1403_s18, 4  ;;  %s1114_s26 = sshll.u32 (%p45_p3), %s178_s24, 6 }
  0x10   : > { %s186_s29 = scalar_lea.vmem (%p45_p3), %s1602_s0, %s1206_s25  ;;  %s180_s30 = scalar_lea.vmem (%p45_p3), [#allocation3], %s1114_s26 }
  0x11   : > { %v199_v0 = vld [vmem:[%s186_s29] sm:$0xff] (%p45_p3)  ;;  %v201_v1 = vld [vmem:[%s186_s29 + $0x8] sm:$0xff] (%p45_p3) }
  0x12   : > { %v203_v2 = vld [vmem:[%s186_s29 + $0x40] sm:$0xff] (%p45_p3)  ;;  %200 = vst [vmem:[%s180_s30] sm:$0xff] (%p45_p3), %v199_v0  ;;  %202 = vst [vmem:[%s180_s30 + $0x8] sm:$0xff] (%p45_p3), %v201_v1  ;;  %v205_v3 = vld [vmem:[%s186_s29 + $0x48] sm:$0xff] (%p45_p3) }
  0x13   : > { %204 = vst [vmem:[%s180_s30 + $0x10] sm:$0xff] (%p45_p3), %v203_v2  ;;  %v207_v4 = vld [vmem:[%s186_s29 + $0x80] sm:$0xff] (%p45_p3)  ;;  %v209_v5 = vld [vmem:[%s186_s29 + $0x88] sm:$0xff] (%p45_p3)  ;;  %206 = vst [vmem:[%s180_s30 + $0x18] sm:$0xff] (%p45_p3), %v205_v3 }
  0x14   : > { %208 = vst [vmem:[%s180_s30 + $0x20] sm:$0xff] (%p45_p3), %v207_v4  ;;  %210 = vst [vmem:[%s180_s30 + $0x28] sm:$0xff] (%p45_p3), %v209_v5  ;;  %v211_v6 = vld [vmem:[%s186_s29 + $0xc0] sm:$0xff] (%p45_p3)  ;;  %v213_v7 = vld [vmem:[%s186_s29 + $0xc8] sm:$0xff] (%p45_p3) }
  0x15   : > { %212 = vst [vmem:[%s180_s30 + $0x30] sm:$0xff] %v211_v6  ;;  %214 = vst [vmem:[%s180_s30 + $0x38] sm:$0xff] %v213_v7 }
  0x16 PF: > { %p1117_p6 = scmp.ge.s32.totalorder %s1407_s19, 1  ;;  %p229_p7 = scmp.lt.s32.totalorder %s1407_s19, 5 }
  0x18   : > { %p230_p8 = pnand %p1117_p6, %p229_p7 }
  0x19   : > { %s236_s5 = sand.u32 (!%p230_p8), 1, %s1391_s15   ;;  %s1119_s6 = sshll.u32 (!%p230_p8), %s1399_s17, 6 }
  0x1a   : > { %233 = sbr.rel (%p230_p8) target bundleno = 358 (0x166), region = 47  ;;  %s1118_s7 = sshll.u32 (!%p230_p8), %s236_s5, 6 }
  0x1b   : > { %p281_p9 = scmp.lt.s32.totalorder (!%p230_p8), %s1119_s6, 255  ;;  %s1487_s12 = scalar_lea.vmem (!%p230_p8), [#allocation3], %s1118_s7 }
  0x1c   : > { %p1122_p10 = scmp.ne.s32.totalorder (!%p230_p8), %s1399_s17, 0 }
  0x21   : > { %s1614_s6 = smov (!%p281_p9, %s1119_s6), 255  ;;  %307 = sbr.rel (%p1122_p10) target bundleno = 40 (0x28), region = 55 }
  0x22   : > { %s1207_s8 = sshll.u32 %s1614_s6, 3  ;;  %v1409_v8 = vmov (!%p1122_p10), 0.0  }
  0x23   : > { %s1485_s11 = scalar_lea.vmem %s1603_s1, %s1207_s8  ;;  %308 = vst [vmem:[#allocation2] sm:$0xff] (!%p1122_p10), %v1409_v8  ;;  %309 = vst [vmem:[#allocation2 + $0x8] sm:$0xff] (!%p1122_p10), %v1409_v8 }
  0x24   : > { %310 = vst [vmem:[#allocation2 + $0x10] sm:$0xff] (!%p1122_p10), %v1409_v8  ;;  %311 = vst [vmem:[#allocation2 + $0x18] sm:$0xff] (!%p1122_p10), %v1409_v8 }
  0x25   : > { %312 = vst [vmem:[#allocation2 + $0x20] sm:$0xff] (!%p1122_p10), %v1409_v8  ;;  %313 = vst [vmem:[#allocation2 + $0x28] sm:$0xff] (!%p1122_p10), %v1409_v8 }
  0x26   : > { %314 = vst [vmem:[#allocation2 + $0x30] sm:$0xff] (!%p1122_p10), %v1409_v8  ;;  %315 = vst [vmem:[#allocation2 + $0x38] sm:$0xff] (!%p1122_p10), %v1409_v8 }
  0x28 PF: > { %v1261_v9 = vld [vmem:[%s1485_s11 + $0x4] ss:$8 sps:$4 sm:$0xff]   ;;  %v1265_v11 = vld [vmem:[%s1485_s11] ss:$8 sps:$4 sm:$0xff]   ;;  %v1267_v13 = vld [vmem:[%s1485_s11 + $0x14] ss:$8 sps:$4 sm:$0xff]  }
  0x29   : > { %v1263_v10 = vld [vmem:[%s1485_s11 + $0x104] ss:$8 sps:$4 sm:$0xff]   ;;  %756 = vmatprep.subr.bf16.mxu1 %v1261_v9  ;;  %v1266_v12 = vld [vmem:[%s1485_s11 + $0x100] ss:$8 sps:$4 sm:$0xff]   ;;  %v1269_v14 = vld [vmem:[%s1485_s11 + $0x114] ss:$8 sps:$4 sm:$0xff]  }
  0x2a   : > { %809 = vmatprep.subr.bf16.mxu0 %v1263_v10  ;;  %757 = vmatpush1.bf16.msra.mxu1 %v1265_v11  ;;  %v1271_v15 = vld [vmem:[%s1485_s11 + $0x10] ss:$8 sps:$4 sm:$0xff]   ;;  %v1273_v17 = vld [vmem:[%s1485_s11 + $0x24] ss:$8 sps:$4 sm:$0xff]   ;;  %v1277_v19 = vld [vmem:[%s1485_s11 + $0x20] ss:$8 sps:$4 sm:$0xff]  }
  0x2b   : > { %810 = vmatpush1.bf16.msra.mxu0 %v1266_v12  ;;  %758 = vmatprep.subr.bf16.mxu1 %v1267_v13  ;;  %v1272_v16 = vld [vmem:[%s1485_s11 + $0x110] ss:$8 sps:$4 sm:$0xff]   ;;  %v1275_v18 = vld [vmem:[%s1485_s11 + $0x124] ss:$8 sps:$4 sm:$0xff]   ;;  %v1278_v20 = vld [vmem:[%s1485_s11 + $0x120] ss:$8 sps:$4 sm:$0xff]  }
  0x2c   : > { %811 = vmatprep.subr.bf16.mxu0 %v1269_v14  ;;  %v1279_v21 = vld [vmem:[%s1485_s11 + $0x34] ss:$8 sps:$4 sm:$0xff]   ;;  %v1283_v23 = vld [vmem:[%s1485_s11 + $0x30] ss:$8 sps:$4 sm:$0xff]   ;;  %v1285_v25 = vld [vmem:[%s1485_s11 + $0x44] ss:$8 sps:$4 sm:$0xff]  }
  0x2d   : > { %v1281_v22 = vld [vmem:[%s1485_s11 + $0x134] ss:$8 sps:$4 sm:$0xff]   ;;  %v1284_v24 = vld [vmem:[%s1485_s11 + $0x130] ss:$8 sps:$4 sm:$0xff]   ;;  %v1287_v26 = vld [vmem:[%s1485_s11 + $0x144] ss:$8 sps:$4 sm:$0xff]  }
  0x2e   : > { %759 = vmatpush1.bf16.msra.mxu1 %v1271_v15  ;;  %v1289_v27 = vld [vmem:[%s1485_s11 + $0x40] ss:$8 sps:$4 sm:$0xff]   ;;  %v1291_v29 = vld [vmem:[%s1485_s11 + $0x54] ss:$8 sps:$4 sm:$0xff]   ;;  %v1295_v31 = vld [vmem:[%s1485_s11 + $0x50] ss:$8 sps:$4 sm:$0xff]  }
  0x2f   : > { %812 = vmatpush1.bf16.msra.mxu0 %v1272_v16  ;;  %760 = vmatprep.subr.bf16.mxu1 %v1273_v17  ;;  %v1290_v28 = vld [vmem:[%s1485_s11 + $0x140] ss:$8 sps:$4 sm:$0xff]   ;;  %v1293_v30 = vld [vmem:[%s1485_s11 + $0x154] ss:$8 sps:$4 sm:$0xff]   ;;  %v1296_v32 = vld [vmem:[%s1485_s11 + $0x150] ss:$8 sps:$4 sm:$0xff]  }
  0x30   : > { %813 = vmatprep.subr.bf16.mxu0 %v1275_v18  ;;  %v1297_v33 = vld [vmem:[%s1485_s11 + $0x64] ss:$8 sps:$4 sm:$0xff]   ;;  %v1301_v35 = vld [vmem:[%s1485_s11 + $0x60] ss:$8 sps:$4 sm:$0xff]   ;;  %v1303_v37 = vld [vmem:[%s1485_s11 + $0x74] ss:$8 sps:$4 sm:$0xff]  }
  0x31   : > { %v1299_v34 = vld [vmem:[%s1485_s11 + $0x164] ss:$8 sps:$4 sm:$0xff]   ;;  %v1302_v36 = vld [vmem:[%s1485_s11 + $0x160] ss:$8 sps:$4 sm:$0xff]   ;;  %v1305_v38 = vld [vmem:[%s1485_s11 + $0x174] ss:$8 sps:$4 sm:$0xff]  }
  0x32   : > { %761 = vmatpush1.bf16.msra.mxu1 %v1277_v19  ;;  %v1307_v39 = vld [vmem:[%s1485_s11 + $0x70] ss:$8 sps:$4 sm:$0xff]   ;;  %v1309_v41 = vld [vmem:[%s1485_s11 + $0x84] ss:$8 sps:$4 sm:$0xff]   ;;  %v1313_v43 = vld [vmem:[%s1485_s11 + $0x80] ss:$8 sps:$4 sm:$0xff]  }
  0x33   : > { %814 = vmatpush1.bf16.msra.mxu0 %v1278_v20  ;;  %762 = vmatprep.subr.bf16.mxu1 %v1279_v21  ;;  %v1308_v40 = vld [vmem:[%s1485_s11 + $0x170] ss:$8 sps:$4 sm:$0xff]   ;;  %v1311_v42 = vld [vmem:[%s1485_s11 + $0x184] ss:$8 sps:$4 sm:$0xff]   ;;  %v1314_v44 = vld [vmem:[%s1485_s11 + $0x180] ss:$8 sps:$4 sm:$0xff]  }
  0x34   : > { %815 = vmatprep.subr.bf16.mxu0 %v1281_v22  ;;  %v1315_v45 = vld [vmem:[%s1485_s11 + $0x94] ss:$8 sps:$4 sm:$0xff]   ;;  %v1319_v47 = vld [vmem:[%s1485_s11 + $0x90] ss:$8 sps:$4 sm:$0xff]   ;;  %v1321_v49 = vld [vmem:[%s1485_s11 + $0xa4] ss:$8 sps:$4 sm:$0xff]  }
  0x35   : > { %v1317_v46 = vld [vmem:[%s1485_s11 + $0x194] ss:$8 sps:$4 sm:$0xff]   ;;  %v1320_v48 = vld [vmem:[%s1485_s11 + $0x190] ss:$8 sps:$4 sm:$0xff]   ;;  %v1323_v50 = vld [vmem:[%s1485_s11 + $0x1a4] ss:$8 sps:$4 sm:$0xff]  }
  0x36   : > { %763 = vmatpush1.bf16.msra.mxu1 %v1283_v23  ;;  %v1325_v51 = vld [vmem:[%s1485_s11 + $0xa0] ss:$8 sps:$4 sm:$0xff]   ;;  %v1327_v53 = vld [vmem:[%s1485_s11 + $0xb4] ss:$8 sps:$4 sm:$0xff]   ;;  %v1331_v55 = vld [vmem:[%s1485_s11 + $0xb0] ss:$8 sps:$4 sm:$0xff]  }
  0x37   : > { %816 = vmatpush1.bf16.msra.mxu0 %v1284_v24  ;;  %764 = vmatprep.subr.bf16.mxu1 %v1285_v25  ;;  %v1326_v52 = vld [vmem:[%s1485_s11 + $0x1a0] ss:$8 sps:$4 sm:$0xff]   ;;  %v1329_v54 = vld [vmem:[%s1485_s11 + $0x1b4] ss:$8 sps:$4 sm:$0xff]   ;;  %v1332_v56 = vld [vmem:[%s1485_s11 + $0x1b0] ss:$8 sps:$4 sm:$0xff]  }
  0x38   : > { %817 = vmatprep.subr.bf16.mxu0 %v1287_v26  ;;  %v1333_v57 = vld [vmem:[%s1485_s11 + $0xc4] ss:$8 sps:$4 sm:$0xff]   ;;  %v1337_v61 = vld [vmem:[%s1485_s11 + $0xc0] ss:$8 sps:$4 sm:$0xff]   ;;  %v1339_v63 = vld [vmem:[%s1485_s11 + $0xd4] ss:$8 sps:$4 sm:$0xff]  }
  0x39   : > { %v1359_v58 = vld [vmem:[%s1487_s12 + $0x4] ss:$16 sps:$4 sm:$0xff]   ;;  %v1362_v60 = vld [vmem:[%s1487_s12 + $0xc] ss:$16 sps:$4 sm:$0xff]   ;;  %v1338_v62 = vld [vmem:[%s1485_s11 + $0x1c0] ss:$8 sps:$4 sm:$0xff]  }
  0x3a   : > { %765 = vmatpush1.bf16.msra.mxu1 %v1289_v27  ;;  %v1335_v59 = vld [vmem:[%s1485_s11 + $0x1c4] ss:$8 sps:$4 sm:$0xff]   ;;  %788 = vmatprep.mubr.bf16.mxu1 %v1359_v58  ;;  %v1341_v0 = vld [vmem:[%s1485_s11 + $0x1d4] ss:$8 sps:$4 sm:$0xff]   ;;  %v1343_v1 = vld [vmem:[%s1485_s11 + $0xd0] ss:$8 sps:$4 sm:$0xff]  }
  0x3b   : > { %818 = vmatpush1.bf16.msra.mxu0 %v1290_v28  ;;  %766 = vmatprep.subr.bf16.mxu1 %v1291_v29  ;;  %v1344_v2 = vld [vmem:[%s1485_s11 + $0x1d0] ss:$8 sps:$4 sm:$0xff]   ;;  %v1345_v3 = vld [vmem:[%s1485_s11 + $0xe4] ss:$8 sps:$4 sm:$0xff]   ;;  %v1349_v5 = vld [vmem:[%s1485_s11 + $0xe0] ss:$8 sps:$4 sm:$0xff]  }
  0x3c   : > { %819 = vmatprep.subr.bf16.mxu0 %v1293_v30  ;;  %841 = vmatprep.mubr.bf16.mxu0 %v1362_v60  ;;  %v1347_v4 = vld [vmem:[%s1485_s11 + $0x1e4] ss:$8 sps:$4 sm:$0xff]   ;;  %v1350_v6 = vld [vmem:[%s1485_s11 + $0x1e0] ss:$8 sps:$4 sm:$0xff]   ;;  %v1351_v7 = vld [vmem:[%s1485_s11 + $0xf4] ss:$8 sps:$4 sm:$0xff]  }
  0x3d   : > { %v1353_v8 = vld [vmem:[%s1485_s11 + $0x1f4] ss:$8 sps:$4 sm:$0xff]   ;;  %v1355_v9 = vld [vmem:[%s1485_s11 + $0xf0] ss:$8 sps:$4 sm:$0xff]   ;;  %v316_v18 = vld [vmem:[#allocation2] sm:$0xff]  ;;  %p1195_p11 = scmp.ne.s32.totalorder %s1399_s17, 3 }
  0x3e   : > { %767 = vmatpush1.bf16.msra.mxu1 %v1295_v31  ;;  %v1356_v10 = vld [vmem:[%s1485_s11 + $0x1f0] ss:$8 sps:$4 sm:$0xff]   ;;  %v1363_v13 = vld [vmem:[%s1487_s12 + $0x24] ss:$16 sps:$4 sm:$0xff]   ;;  %v1365_v14 = vld [vmem:[%s1487_s12 + $0x2c] ss:$16 sps:$4 sm:$0xff]  }
  0x3f   : > { %820 = vmatpush1.bf16.msra.mxu0 %v1296_v32  ;;  %768 = vmatprep.subr.bf16.mxu1 %v1297_v33  ;;  %v1357_v11 = vld [vmem:[%s1487_s12] ss:$16 sps:$4 sm:$0xff]   ;;  %v1360_v12 = vld [vmem:[%s1487_s12 + $0x8] ss:$16 sps:$4 sm:$0xff]  }
  0x40   : > { %821 = vmatprep.subr.bf16.mxu0 %v1299_v34  ;;  %v1367_v15 = vld [vmem:[%s1487_s12 + $0x20] ss:$16 sps:$4 sm:$0xff]   ;;  %v1368_v16 = vld [vmem:[%s1487_s12 + $0x28] ss:$16 sps:$4 sm:$0xff]  }
  0x41   : > { %v317_v22 = vld [vmem:[#allocation2 + $0x8] sm:$0xff]  ;;  %v318_v26 = vld [vmem:[#allocation2 + $0x10] sm:$0xff]  ;;  %v319_v31 = vld [vmem:[#allocation2 + $0x18] sm:$0xff] }
  0x42   : > { %769 = vmatpush1.bf16.msra.mxu1 %v1301_v35 }
  0x43   : > { %822 = vmatpush1.bf16.msra.mxu0 %v1302_v36  ;;  %770 = vmatprep.subr.bf16.mxu1 %v1303_v37 }
  0x44   : > { %823 = vmatprep.subr.bf16.mxu0 %v1305_v38  ;;  %v320_v38 = vld [vmem:[#allocation2 + $0x20] sm:$0xff] }
  0x46   : > { %771 = vmatpush1.bf16.msra.mxu1 %v1307_v39 }
  0x47   : > { %824 = vmatpush1.bf16.msra.mxu0 %v1308_v40  ;;  %772 = vmatprep.subr.bf16.mxu1 %v1309_v41 }
  0x48   : > { %825 = vmatprep.subr.bf16.mxu0 %v1311_v42  ;;  %v321_v42 = vld [vmem:[#allocation2 + $0x28] sm:$0xff] }
  0x4a   : > { %773 = vmatpush1.bf16.msra.mxu1 %v1313_v43 }
  0x4b   : > { %826 = vmatpush1.bf16.msra.mxu0 %v1314_v44  ;;  %774 = vmatprep.subr.bf16.mxu1 %v1315_v45 }
  0x4c   : > { %827 = vmatprep.subr.bf16.mxu0 %v1317_v46  ;;  %v322_v46 = vld [vmem:[#allocation2 + $0x30] sm:$0xff] }
  0x4e   : > { %775 = vmatpush1.bf16.msra.mxu1 %v1319_v47 }
  0x4f   : > { %828 = vmatpush1.bf16.msra.mxu0 %v1320_v48  ;;  %776 = vmatprep.subr.bf16.mxu1 %v1321_v49 }
  0x50   : > { %829 = vmatprep.subr.bf16.mxu0 %v1323_v50 }
  0x52   : > { %777 = vmatpush1.bf16.msra.mxu1 %v1325_v51  ;;  %v323_v51 = vld [vmem:[#allocation2 + $0x38] sm:$0xff] }
  0x53   : > { %830 = vmatpush1.bf16.msra.mxu0 %v1326_v52  ;;  %778 = vmatprep.subr.bf16.mxu1 %v1327_v53 }
  0x54   : > { %831 = vmatprep.subr.bf16.mxu0 %v1329_v54 }
  0x56   : > { %779 = vmatpush1.bf16.msra.mxu1 %v1331_v55 }
  0x57   : > { %832 = vmatpush1.bf16.msra.mxu0 %v1332_v56  ;;  %780 = vmatprep.subr.bf16.mxu1 %v1333_v57 }
  0x58   : > { %833 = vmatprep.subr.bf16.mxu0 %v1335_v59 }
  0x5a   : > { %781 = vmatpush1.bf16.msra.mxu1 %v1337_v61 }
  0x5b   : > { %834 = vmatpush1.bf16.msra.mxu0 %v1338_v62  ;;  %782 = vmatprep.subr.bf16.mxu1 %v1339_v63 }
  0x5c   : > { %835 = vmatprep.subr.bf16.mxu0 %v1341_v0 }
  0x5e   : > { %783 = vmatpush1.bf16.msra.mxu1 %v1343_v1 }
  0x5f   : > { %836 = vmatpush1.bf16.msra.mxu0 %v1344_v2  ;;  %784 = vmatprep.subr.bf16.mxu1 %v1345_v3 }
  0x60   : > { %837 = vmatprep.subr.bf16.mxu0 %v1347_v4 }
  0x62   : > { %785 = vmatpush1.bf16.msra.mxu1 %v1349_v5 }
  0x63   : > { %838 = vmatpush1.bf16.msra.mxu0 %v1350_v6  ;;  %786 = vmatprep.subr.bf16.mxu1 %v1351_v7 }
  0x64   : > { %839 = vmatprep.subr.bf16.mxu0 %v1353_v8 }
  0x66   : > { %787 = vmatpush1.bf16.msra.mxu1 %v1355_v9 }
  0x67   : > { %840 = vmatpush1.bf16.msra.mxu0 %v1356_v10 }
  0x69   : > { %789 = vmatmul.mubr.bf16.vlgmr.msra.gmra.mrb[0].mxu1 %v1357_v11 }
  0x6a   : > { %842 = vmatmul.mubr.bf16.vlgmr.msra.gmra.mrb[0].mxu0 %v1360_v12  ;;  %798 = vmatprep.mubr.bf16.mxu1 %v1363_v13 }
  0x6b   : > { %851 = vmatprep.mubr.bf16.mxu0 %v1365_v14 }
  0x71   : > { %799 = vmatmul.mubr.bf16.gmra.mrb[4].mxu1 %v1367_v15 }
  0x72   : > { %852 = vmatmul.mubr.bf16.gmra.mrb[4].mxu0 %v1368_v16 }
 0x13c   : > { %v790_v17 = vpop.f32.mrb[0].mxu1 }
 0x13d   : > { %v843_v19 = vpop.f32.mrb[0].mxu0  ;;  %v792_v21 = vpop.f32.mrb[1].mxu1 }
 0x13e   : > { %v844_v20 = vadd.f32 %v843_v19, %v790_v17  ;;  %v845_v23 = vpop.f32.mrb[1].mxu0  ;;  %v794_v25 = vpop.f32.mrb[2].mxu1 }
 0x13f   : > { %v846_v24 = vadd.f32 %v845_v23, %v792_v21  ;;  %v847_v27 = vpop.f32.mrb[2].mxu0  ;;  %v796_v30 = vpop.f32.mrb[3].mxu1 }
 0x140   : > { %v862_v28 = vadd.f32 %v844_v20, %v316_v18  ;;  %v848_v29 = vadd.f32 %v847_v27, %v794_v25  ;;  %v849_v32 = vpop.f32.mrb[3].mxu0 }
 0x141   : > { %v863_v33 = vadd.f32 %v846_v24, %v317_v22  ;;  %v850_v34 = vadd.f32 %v849_v32, %v796_v30 }
 0x142   : > { %870 = vst [vmem:[#allocation2] sm:$0xff] %v862_v28  ;;  %v864_v35 = vadd.f32 %v848_v29, %v318_v26 }
 0x143   : > { %871 = vst [vmem:[#allocation2 + $0x8] sm:$0xff] %v863_v33  ;;  %v865_v36 = vadd.f32 %v850_v34, %v319_v31 }
 0x144   : > { %872 = vst [vmem:[#allocation2 + $0x10] sm:$0xff] %v864_v35  ;;  %v800_v37 = vpop.f32.mrb[4].mxu1 }
 0x145   : > { %873 = vst [vmem:[#allocation2 + $0x18] sm:$0xff] %v865_v36  ;;  %v853_v39 = vpop.f32.mrb[4].mxu0  ;;  %v802_v41 = vpop.f32.mrb[5].mxu1 }
 0x146   : > { %v854_v40 = vadd.f32 %v853_v39, %v800_v37  ;;  %v855_v43 = vpop.f32.mrb[5].mxu0  ;;  %v804_v45 = vpop.f32.mrb[6].mxu1 }
 0x147   : > { %v856_v44 = vadd.f32 %v855_v43, %v802_v41  ;;  %v857_v47 = vpop.f32.mrb[6].mxu0  ;;  %v806_v50 = vpop.f32.mrb[7].mxu1  ;;  %881 = sbr.rel (%p1195_p11) target bundleno = 358 (0x166), region = 59 }
 0x148   : > { %v866_v48 = vadd.f32 %v854_v40, %v320_v38  ;;  %v858_v49 = vadd.f32 %v857_v47, %v804_v45  ;;  %v859_v52 = vpop.f32.mrb[7].mxu0 }
 0x149   : > { %v867_v53 = vadd.f32 %v856_v44, %v321_v42  ;;  %v860_v54 = vadd.f32 %v859_v52, %v806_v50  ;;  %v882_v57 = vld [vmem:[#allocation2] sm:$0xff] (!%p1195_p11) }
 0x14a   : > { %874 = vst [vmem:[#allocation2 + $0x20] sm:$0xff] %v866_v48  ;;  %v868_v55 = vadd.f32 %v858_v49, %v322_v46  ;;  %v883_v58 = vld [vmem:[#allocation2 + $0x8] sm:$0xff] (!%p1195_p11)  ;;  %v936_v61 = vmul.f32 (!%p1195_p11), %v882_v57, %v882_v57 }
 0x14b   : > { %875 = vst [vmem:[#allocation2 + $0x28] sm:$0xff] %v867_v53  ;;  %v869_v56 = vadd.f32 %v860_v54, %v323_v51  ;;  %v884_v59 = vld [vmem:[#allocation2 + $0x10] sm:$0xff] (!%p1195_p11)  ;;  %v1208_v60 = vpack.c.bf16 (!%p1195_p11), %v883_v58, %v882_v57  ;;  %v937_v62 = vmul.f32 (!%p1195_p11), %v883_v58, %v883_v58 }
 0x14c   : > { %876 = vst [vmem:[#allocation2 + $0x30] sm:$0xff] %v868_v55  ;;  %v885_v63 = vld [vmem:[#allocation2 + $0x18] sm:$0xff] (!%p1195_p11)  ;;  %v918_v0 = vadd.f32 (!%p1195_p11), %v884_v59, %v882_v57  ;;  %v938_v5 = vmul.f32 (!%p1195_p11), %v884_v59, %v884_v59 }
 0x14d   : > { %877 = vst [vmem:[#allocation2 + $0x38] sm:$0xff] %v869_v56  ;;  %v1209_v3 = vpack.c.bf16 (!%p1195_p11), %v885_v63, %v884_v59  ;;  %v927_v4 = vadd.f32 (!%p1195_p11), %v885_v63, %v883_v58  ;;  %v939_v6 = vmul.f32 (!%p1195_p11), %v885_v63, %v885_v63  ;;  %914 = vst [vmem:[%s1604_s2] sm:$0xff] (!%p1195_p11), %v1208_v60 }
 0x14e   : > { %v944_v13 = vadd.f32 %v938_v5, %v936_v61 }
 0x14f   : > { %915 = vst [vmem:[%s1604_s2 + $0x8] sm:$0xff] %v1209_v3  ;;  %v953_v14 = vadd.f32 %v939_v6, %v937_v62 }
 0x151   : > { %v886_v1 = vld [vmem:[#allocation2 + $0x20] sm:$0xff] }
 0x152   : > { %v887_v2 = vld [vmem:[#allocation2 + $0x28] sm:$0xff]  ;;  %v919_v10 = vadd.f32 %v918_v0, %v886_v1  ;;  %v940_v11 = vmul.f32 %v886_v1, %v886_v1 }
 0x153   : > { %v888_v7 = vld [vmem:[#allocation2 + $0x30] sm:$0xff]  ;;  %v1210_v9 = vpack.c.bf16 %v887_v2, %v886_v1  ;;  %v941_v12 = vmul.f32 %v887_v2, %v887_v2  ;;  %v928_v15 = vadd.f32 %v927_v4, %v887_v2 }
 0x154   : > { %v889_v8 = vld [vmem:[#allocation2 + $0x38] sm:$0xff]  ;;  %v920_v17 = vadd.f32 %v919_v10, %v888_v7  ;;  %v942_v18 = vmul.f32 %v888_v7, %v888_v7  ;;  %v945_v20 = vadd.f32 %v944_v13, %v940_v11 }
 0x155   : > { %v1211_v16 = vpack.c.bf16 %v889_v8, %v888_v7  ;;  %916 = vst [vmem:[%s1604_s2 + $0x10] sm:$0xff] %v1210_v9  ;;  %v943_v19 = vmul.f32 %v889_v8, %v889_v8  ;;  %v954_v21 = vadd.f32 %v953_v14, %v941_v12  ;;  %v929_v22 = vadd.f32 %v928_v15, %v889_v8 }
 0x156   : > { %v921_v23 = vrot.slane %v920_v17, 4  ;;  %v946_v25 = vadd.f32 %v945_v20, %v942_v18 }
 0x157   : > { %917 = vst [vmem:[%s1604_s2 + $0x18] sm:$0xff] %v1211_v16  ;;  %v930_v24 = vrot.slane %v929_v22, 4  ;;  %v955_v26 = vadd.f32 %v954_v21, %v943_v19 }
 0x158   : > { %v922_v27 = vadd.f32 %v921_v23, %v920_v17  ;;  %v947_v29 = vrot.slane %v946_v25, 4 }
 0x159   : > { %v931_v28 = vadd.f32 %v930_v24, %v929_v22  ;;  %v956_v30 = vrot.slane %v955_v26, 4 }
 0x15a   : > { %v923_v31 = vrot.slane %v922_v27, 2  ;;  %v948_v33 = vadd.f32 %v947_v29, %v946_v25 }
 0x15b   : > { %v932_v32 = vrot.slane %v931_v28, 2  ;;  %v957_v34 = vadd.f32 %v956_v30, %v955_v26 }
 0x15c   : > { %v924_v35 = vadd.f32 %v923_v31, %v922_v27  ;;  %v949_v37 = vrot.slane %v948_v33, 2 }
 0x15d   : > { %v933_v36 = vadd.f32 %v932_v32, %v931_v28  ;;  %v958_v38 = vrot.slane %v957_v34, 2 }
 0x15e   : > { %v925_v39 = vrot.slane %v924_v35, 1  ;;  %v950_v41 = vadd.f32 %v949_v37, %v948_v33 }
 0x15f   : > { %v934_v40 = vrot.slane %v933_v36, 1  ;;  %v959_v42 = vadd.f32 %v958_v38, %v957_v34 }
 0x160   : > { %v926_v43 = vadd.f32 %v925_v39, %v924_v35  ;;  %v951_v45 = vrot.slane %v950_v41, 1 }
 0x161   : > { %v935_v44 = vadd.f32 %v934_v40, %v933_v36  ;;  %v960_v46 = vrot.slane %v959_v42, 1 }
 0x162   : > { %962 = vst [vmem:[%s1605_s3] sm:$0xff] %v926_v43  ;;  %v952_v47 = vadd.f32 %v951_v45, %v950_v41 }
 0x163   : > { %963 = vst [vmem:[%s1605_s3 + $0x8] sm:$0xff] %v935_v44  ;;  %v961_v48 = vadd.f32 %v960_v46, %v959_v42 }
 0x164   : > { %964 = vst [vmem:[%s1606_s4] sm:$0xff] %v952_v47 }
 0x165   : > { %965 = vst [vmem:[%s1606_s4 + $0x8] sm:$0xff] %v961_v48 }
 0x166 PF: > { %s15_s19 = sadd.s32 1, %s1407_s19   ;;  %s1607_s15 = smov %s1395_s16 }
 0x167   : > { %p12_p12 = scmp.ge.s32.totalorder %s15_s19, 6   ;;  %s1608_s16 = smov %s1470_s23 }
 0x168   : > { %s1609_s17 = smov %s1403_s18  ;;  %s1610_s18 = smov %s1612_s20 }
 0x169   :  { %14 = sbr.rel (!%p12_p12) target bundleno = 3 (0x3), region = 121 }

// kernel: discriminator_forward.11
= control target key start
LH: loop header
LB: loop body
LE: loop exit
PB: predicated region body
PF: predicated region fallthrough
CT: control target
= control target key end

     0   :  { %s952_s12 = smov 0   ;;  %s954_s13 = smov 0   ;;  %s1068_s0 = inlined_call_operand.vmem [shape: bf16[16,4096], index: 0, kind: input, shape index: {}]   ;;  %s1069_s1 = inlined_call_operand.vmem [shape: bf16[4096,128], index: 1, kind: input, shape index: {}]   ;;  %s1070_s2 = inlined_call_operand.vmem [shape: f32[1,128], index: 2, kind: input, shape index: {}]   ;;  %s1071_s3 = inlined_call_operand.vmem [shape: f32[16,128], index: 3, kind: output, shape index: {}]  }
   0x1   :  { %s956_s14 = smov 0   ;;  %s958_s15 = smov 0  }
   0x2   :  { %s960_s16 = smov 0  }
   0x3 LB: > { %s22_s17 = sadd.s32 1, %s925_s15  ;;  %p41_p1 = scmp.ne.s32.totalorder %s917_s13, %s913_s12  ;;  %s929_s16 = sphi %s960_s16, %s13_s16   ;;  %s925_s15 = sphi %s958_s15, %s1075_s15   ;;  %s921_s14 = sphi %s956_s14, %s1074_s14   ;;  %s917_s13 = sphi %s954_s13, %s1073_s13   ;;  %s913_s12 = sphi %s952_s12, %s1072_s12  }
   0x4   : > { %p23_p0 = scmp.ge.s32.totalorder %s22_s17, 8  ;;  %p42_p2 = scmp.eq.s32.totalorder %s929_s16, 0 }
   0x5   : > { %s34_s19 = sadd.s32 1, %s917_s13  ;;  %p716_p5 = scmp.ge.s32.totalorder %s929_s16, 8 }
   0x6   : > { %s1077_s17 = smov (%p23_p0, %s22_s17), 0  ;;  %p43_p3 = por %p42_p2, %p41_p1 }
   0x7   : > { %s30_s18 = ssub.s32 %s925_s15, %s1077_s17  ;;  %143 = sbr.rel (%p716_p5) target bundleno = 21 (0x15), region = 20 }
   0x8   : > { %p32_p4 = scmp.eq.s32.totalorder %s30_s18, 0 }
   0xa   : > { %s987_s20 = scalar_select %p32_p4, %s917_s13, %s34_s19  }
   0xe   : > { %146 = sbr.rel (!%p43_p3) target bundleno = 21 (0x15), region = 24  ;;  %s148_s21 = sand.u32 (%p43_p3), 1, %s917_s13  }
   0xf   : > { %s767_s22 = sshll.u32 (%p43_p3), %s925_s15, 4  ;;  %s717_s23 = sshll.u32 (%p43_p3), %s148_s21, 5 }
  0x10   : > { %s156_s26 = scalar_lea.vmem (%p43_p3), %s1068_s0, %s767_s22  ;;  %s150_s27 = scalar_lea.vmem (%p43_p3), [#allocation3], %s717_s23 }
  0x11   : > { %v169_v0 = vld [vmem:[%s156_s26] sm:$0xff] (%p43_p3)  ;;  %v171_v1 = vld [vmem:[%s156_s26 + $0x8] sm:$0xff] (%p43_p3) }
  0x12   : > { %v173_v2 = vld [vmem:[%s156_s26 + $0x80] sm:$0xff] (%p43_p3)  ;;  %170 = vst [vmem:[%s150_s27] sm:$0xff] (%p43_p3), %v169_v0  ;;  %172 = vst [vmem:[%s150_s27 + $0x8] sm:$0xff] (%p43_p3), %v171_v1  ;;  %v175_v3 = vld [vmem:[%s156_s26 + $0x88] sm:$0xff] (%p43_p3) }
  0x13   : > { %174 = vst [vmem:[%s150_s27 + $0x10] sm:$0xff] (%p43_p3), %v173_v2  ;;  %176 = vst [vmem:[%s150_s27 + $0x18] sm:$0xff] (%p43_p3), %v175_v3 }
  0x15 PF: > { %p720_p6 = scmp.ge.s32.totalorder %s929_s16, 1  ;;  %p190_p7 = scmp.lt.s32.totalorder %s929_s16, 9 }
  0x17   : > { %p191_p8 = pnand %p720_p6, %p190_p7 }
  0x18   : > { %s197_s28 = sand.u32 (!%p191_p8), 1, %s913_s12   ;;  %s722_s29 = sshll.u32 (!%p191_p8), %s921_s14, 6 }
  0x19   : > { %194 = sbr.rel (%p191_p8) target bundleno = 306 (0x132), region = 51  ;;  %s721_s30 = sshll.u32 (!%p191_p8), %s197_s28, 5 }
  0x1a   : > { %p228_p9 = scmp.lt.s32.totalorder (!%p191_p8), %s722_s29, 511  ;;  %s1004_s8 = scalar_lea.vmem (!%p191_p8), [#allocation3], %s721_s30 }
  0x1b   : > { %p724_p10 = scmp.ne.s32.totalorder (!%p191_p8), %s921_s14, 0 }
  0x20   : > { %s1079_s29 = smov (!%p228_p9, %s722_s29), 511  ;;  %243 = sbr.rel (%p724_p10) target bundleno = 39 (0x27), region = 59 }
  0x21   : > { %s723_s4 = sshll.u32 %s1079_s29, 2  ;;  %v931_v4 = vmov (!%p724_p10), 0.0  }
  0x22   : > { %s1002_s7 = scalar_lea.vmem %s1069_s1, %s723_s4  ;;  %244 = vst [vmem:[#allocation2] sm:$0xff] (!%p724_p10), %v931_v4  ;;  %245 = vst [vmem:[#allocation2 + $0x8] sm:$0xff] (!%p724_p10), %v931_v4 }
  0x27 PF: > { %v853_v5 = vld [vmem:[%s1002_s7 + $0x40] sm:$0xff]   ;;  %v857_v9 = vld [vmem:[%s1002_s7 + $0x48] sm:$0xff]   ;;  %v861_v13 = vld [vmem:[%s1002_s7 + $0x50] sm:$0xff]   ;;  %p761_p11 = scmp.ne.s32.totalorder %s921_s14, 7 }
  0x28   : > { %v854_v6 = vld [vmem:[%s1002_s7 + $0xc0] sm:$0xff]   ;;  %768 = vmatprep.subr.bf16.mxu0 %v853_v5  ;;  %v858_v10 = vld [vmem:[%s1002_s7 + $0xc8] sm:$0xff]   ;;  %v862_v14 = vld [vmem:[%s1002_s7 + $0xd0] sm:$0xff]  }
  0x29   : > { %v855_v7 = vld [vmem:[%s1002_s7] sm:$0xff]   ;;  %790 = vmatprep.subr.bf16.mxu1 %v854_v6  ;;  %v859_v11 = vld [vmem:[%s1002_s7 + $0x8] sm:$0xff]   ;;  %v863_v15 = vld [vmem:[%s1002_s7 + $0x10] sm:$0xff]  }
  0x2a   : > { %v856_v8 = vld [vmem:[%s1002_s7 + $0x80] sm:$0xff]   ;;  %769 = vmatpush3.bf16.msra.mxu0 %v855_v7  ;;  %v860_v12 = vld [vmem:[%s1002_s7 + $0x88] sm:$0xff]   ;;  %v864_v16 = vld [vmem:[%s1002_s7 + $0x90] sm:$0xff]  }
  0x2b   : > { %791 = vmatpush3.bf16.msra.mxu1 %v856_v8  ;;  %770 = vmatprep.subr.bf16.mxu0 %v857_v9  ;;  %v865_v17 = vld [vmem:[%s1002_s7 + $0x58] sm:$0xff]   ;;  %v869_v21 = vld [vmem:[%s1002_s7 + $0x60] sm:$0xff]   ;;  %v873_v25 = vld [vmem:[%s1002_s7 + $0x68] sm:$0xff]  }
  0x2c   : > { %792 = vmatprep.subr.bf16.mxu1 %v858_v10  ;;  %v866_v18 = vld [vmem:[%s1002_s7 + $0xd8] sm:$0xff]   ;;  %v870_v22 = vld [vmem:[%s1002_s7 + $0xe0] sm:$0xff]   ;;  %v874_v26 = vld [vmem:[%s1002_s7 + $0xe8] sm:$0xff]  }
  0x2d   : > { %v867_v19 = vld [vmem:[%s1002_s7 + $0x18] sm:$0xff]   ;;  %v871_v23 = vld [vmem:[%s1002_s7 + $0x20] sm:$0xff]   ;;  %v875_v27 = vld [vmem:[%s1002_s7 + $0x28] sm:$0xff]  }
  0x2e   : > { %771 = vmatpush3.bf16.msra.mxu0 %v859_v11  ;;  %v868_v20 = vld [vmem:[%s1002_s7 + $0x98] sm:$0xff]   ;;  %v872_v24 = vld [vmem:[%s1002_s7 + $0xa0] sm:$0xff]   ;;  %v876_v28 = vld [vmem:[%s1002_s7 + $0xa8] sm:$0xff]  }
  0x2f   : > { %793 = vmatpush3.bf16.msra.mxu1 %v860_v12  ;;  %772 = vmatprep.subr.bf16.mxu0 %v861_v13  ;;  %v877_v29 = vld [vmem:[%s1002_s7 + $0x70] sm:$0xff]   ;;  %v881_v33 = vld [vmem:[%s1002_s7 + $0x78] sm:$0xff]   ;;  %v246_v50 = vld [vmem:[#allocation2] sm:$0xff] }
  0x30   : > { %794 = vmatprep.subr.bf16.mxu1 %v862_v14  ;;  %v878_v30 = vld [vmem:[%s1002_s7 + $0xf0] sm:$0xff]   ;;  %v882_v34 = vld [vmem:[%s1002_s7 + $0xf8] sm:$0xff]   ;;  %v247_v55 = vld [vmem:[#allocation2 + $0x8] sm:$0xff] }
  0x31   : > { %v879_v31 = vld [vmem:[%s1002_s7 + $0x30] sm:$0xff]   ;;  %v883_v35 = vld [vmem:[%s1002_s7 + $0x38] sm:$0xff]   ;;  %v762_v60 = vld [vmem:[%s1070_s2] ss:$0 sm:$0xff] (!%p761_p11) }
  0x32   : > { %773 = vmatpush3.bf16.msra.mxu0 %v863_v15  ;;  %v880_v32 = vld [vmem:[%s1002_s7 + $0xb0] sm:$0xff]   ;;  %v884_v36 = vld [vmem:[%s1002_s7 + $0xb8] sm:$0xff]  }
  0x33   : > { %795 = vmatpush3.bf16.msra.mxu1 %v864_v16  ;;  %774 = vmatprep.subr.bf16.mxu0 %v865_v17  ;;  %v885_v37 = vld [vmem:[%s1004_s8] ss:$16 sps:$4 sm:$0xff]   ;;  %v887_v38 = vld [vmem:[%s1004_s8 + $0x4] ss:$16 sps:$4 sm:$0xff]   ;;  %v888_v39 = vld [vmem:[%s1004_s8 + $0x8] ss:$16 sps:$4 sm:$0xff]  }
  0x34   : > { %796 = vmatprep.subr.bf16.mxu1 %v866_v18  ;;  %v890_v40 = vld [vmem:[%s1004_s8 + $0xc] ss:$16 sps:$4 sm:$0xff]   ;;  %560 = vmatprep.mubr.bf16.mxu0 %v887_v38 }
  0x35   : > { %601 = vmatprep.mubr.bf16.mxu1 %v890_v40 }
  0x36   : > { %775 = vmatpush3.bf16.msra.mxu0 %v867_v19 }
  0x37   : > { %797 = vmatpush3.bf16.msra.mxu1 %v868_v20  ;;  %776 = vmatprep.subr.bf16.mxu0 %v869_v21 }
  0x38   : > { %798 = vmatprep.subr.bf16.mxu1 %v870_v22 }
  0x3a   : > { %777 = vmatpush3.bf16.msra.mxu0 %v871_v23 }
  0x3b   : > { %799 = vmatpush3.bf16.msra.mxu1 %v872_v24  ;;  %778 = vmatprep.subr.bf16.mxu0 %v873_v25 }
  0x3c   : > { %800 = vmatprep.subr.bf16.mxu1 %v874_v26 }
  0x3e   : > { %779 = vmatpush3.bf16.msra.mxu0 %v875_v27 }
  0x3f   : > { %801 = vmatpush3.bf16.msra.mxu1 %v876_v28  ;;  %780 = vmatprep.subr.bf16.mxu0 %v877_v29 }
  0x40   : > { %802 = vmatprep.subr.bf16.mxu1 %v878_v30 }
  0x42   : > { %781 = vmatpush3.bf16.msra.mxu0 %v879_v31 }
  0x43   : > { %803 = vmatpush3.bf16.msra.mxu1 %v880_v32  ;;  %782 = vmatprep.subr.bf16.mxu0 %v881_v33 }
  0x44   : > { %804 = vmatprep.subr.bf16.mxu1 %v882_v34 }
  0x46   : > { %783 = vmatpush3.bf16.msra.mxu0 %v883_v35 }
  0x47   : > { %805 = vmatpush3.bf16.msra.mxu1 %v884_v36 }
  0x49   : > { %561 = vmatmul.mubr.bf16.vlgmr.msra.gmra.mrb[0].mxu0 %v885_v37 }
  0x4a   : > { %602 = vmatmul.mubr.bf16.vlgmr.msra.gmra.mrb[0].mxu1 %v888_v39 }
 0x11c   : > { %v784_v41 = vpop.f32.mrb[0].mxu0 }
 0x11d   : > { %v806_v42 = vpop.f32.mrb[0].mxu1  ;;  %v785_v43 = vpop.f32.mrb[1].mxu0 }
 0x11e   : > { %v786_v44 = vadd.f32 %v785_v43, %v784_v41  ;;  %v807_v45 = vpop.f32.mrb[1].mxu1  ;;  %v787_v46 = vpop.f32.mrb[2].mxu0 }
 0x11f   : > { %v808_v47 = vadd.f32 %v807_v45, %v806_v42  ;;  %v809_v48 = vpop.f32.mrb[2].mxu1  ;;  %v788_v49 = vpop.f32.mrb[3].mxu0 }
 0x120   : > { %v789_v51 = vadd.f32 %v788_v49, %v787_v46  ;;  %v810_v52 = vpop.f32.mrb[3].mxu1 }
 0x121   : > { %v604_v53 = vadd.f32 %v808_v47, %v786_v44  ;;  %v811_v54 = vadd.f32 %v810_v52, %v809_v48  ;;  %617 = sbr.rel (%p761_p11) target bundleno = 306 (0x132), region = 63 }
 0x123   : > { %v610_v56 = vadd.f32 %v604_v53, %v246_v50  ;;  %v607_v57 = vadd.f32 %v811_v54, %v789_v51 }
 0x125   : > { %612 = vst [vmem:[#allocation2] sm:$0xff] %v610_v56  ;;  %v611_v58 = vadd.f32 %v607_v57, %v247_v55 }
 0x127   : > { %613 = vst [vmem:[#allocation2 + $0x8] sm:$0xff] %v611_v58 }
 0x12c   : > { %v618_v59 = vld [vmem:[#allocation2] sm:$0xff] }
 0x12d   : > { %v627_v62 = vadd.f32 %v762_v60, %v618_v59 }
 0x12e   : > { %v619_v61 = vld [vmem:[#allocation2 + $0x8] sm:$0xff] }
 0x12f   : > { %v628_v63 = vadd.f32 %v762_v60, %v619_v61  ;;  %629 = vst [vmem:[%s1071_s3] sm:$0xff] %v627_v62 }
 0x131   : > { %630 = vst [vmem:[%s1071_s3 + $0x8] sm:$0xff] %v628_v63 }
 0x132 PF: > { %s13_s16 = sadd.s32 1, %s929_s16   ;;  %s1072_s12 = smov %s917_s13 }
 0x133   : > { %p10_p12 = scmp.ge.s32.totalorder %s13_s16, 10   ;;  %s1073_s13 = smov %s987_s20 }
 0x134   : > { %s1074_s14 = smov %s925_s15  ;;  %s1075_s15 = smov %s1077_s17 }
 0x135   :  { %12 = sbr.rel (!%p10_p12) target bundleno = 3 (0x3), region = 101 }

</bundles_post_ra>
